<compile_context>
chip_gen: v7x
topology: tpu7x:2x2x1
jax: 0.10.0
libtpu: 0.0.40
codegen_flags: <defaults>
</compile_context>

<pallas_src>
import functools

import jax
import jax.numpy as jnp
from jax.experimental import pallas as pl
from jax.experimental.pallas import tpu as pltpu


def _layernorm(x, g, b, eps=1e-5):
    mu = jnp.mean(x, axis=-1, keepdims=True)
    var = jnp.mean((x - mu) ** 2, axis=-1, keepdims=True)
    return (x - mu) * jax.lax.rsqrt(var + eps) * g + b


def _erf(x):
    # Abramowitz & Stegun 7.1.26 (max abs err ~1.5e-7): exact-GELU semantics
    # built only from mul/add/exp/where, so no reliance on an erf lowering.
    p = 0.3275911
    a1, a2, a3, a4, a5 = (0.254829592, -0.284496736, 1.421413741,
                          -1.453152027, 1.061405429)
    z = jnp.abs(x)
    t = 1.0 / (1.0 + p * z)
    poly = ((((a5 * t + a4) * t + a3) * t + a2) * t + a1) * t
    y = 1.0 - poly * jnp.exp(-z * z)
    return jnp.where(x < 0.0, -y, y)


def _gelu_exact(x):
    # nn.GELU() default = exact erf formulation
    return 0.5 * x * (1.0 + _erf(x * 0.7071067811865476))


def decoder_block_kernel(
    # inputs
    x_ref,                        # (TQ, E)  f32   current query tile (batch squeezed)
    ln1_g_ref, ln1_b_ref,         # (1, E)   f32
    wq_ref, wk_ref, wv_ref,       # (E, E)   bf16  (head-ordered columns)
    bq_ref, bk_ref, bv_ref,       # (1, E)   f32
    wo_ref, bo_ref,               # (E, E)   bf16, (1, E) f32
    ln2_g_ref, ln2_b_ref,         # (1, E)   f32
    w1_ref, b1_ref,               # (E, 2E)  bf16, (1, 2E) f32
    w2_ref, b2_ref,               # (2E, E)  bf16, (1, E)  f32
    # outputs
    o_ref,                        # (TQ, E)  f32   (batch squeezed)
    # scratch (persists across the qi grid axis within a batch element)
    k_cache,                      # (nq, H, D, TQ) bf16  keys, lane-dense over position
    v_cache,                      # (nq, H, TQ, D) bf16
    m_sc, l_sc, acc_sc,           # (H,TQ,1) f32, (H,TQ,1) f32, (H,TQ,D) f32
    *, num_heads):
    TQ, E = x_ref.shape
    H = num_heads
    D = E // H
    qi = pl.program_id(1)

    # ---- LN1 on this query tile: shared by Q and by the K/V of these rows ----
    x_tile = x_ref[...]
    h1 = _layernorm(x_tile, ln1_g_ref[...], ln1_b_ref[...])
    h1_bf = h1.astype(jnp.bfloat16)

    # ---- project Q (1/sqrt(D) folded in), K, V; append K/V to the caches ----
    scale = 1.0 / float(D) ** 0.5
    q = jnp.dot(h1_bf, wq_ref[...], preferred_element_type=jnp.float32) + bq_ref[...]
    q_h = jnp.transpose((q * scale).astype(jnp.bfloat16).reshape(TQ, H, D),
                        (1, 0, 2))                                    # (H, TQ, D)
    k = jnp.dot(h1_bf, wk_ref[...], preferred_element_type=jnp.float32) + bk_ref[...]
    k_h = k.astype(jnp.bfloat16).T.reshape(H, D, TQ)                  # (H, D, TQ)
    v = jnp.dot(h1_bf, wv_ref[...], preferred_element_type=jnp.float32) + bv_ref[...]
    v_h = jnp.transpose(v.astype(jnp.bfloat16).reshape(TQ, H, D),
                        (1, 0, 2))                                    # (H, TQ, D)
    k_cache[qi] = k_h
    v_cache[qi] = v_h

    # ---- online-softmax state for this query tile (finite "-inf", no inf math) ----
    m_sc[...] = jnp.full(m_sc.shape, -1e30, jnp.float32)
    l_sc[...] = jnp.zeros(l_sc.shape, jnp.float32)
    acc_sc[...] = jnp.zeros(acc_sc.shape, jnp.float32)

    def online_update(s, v_blk):
        m_new = jnp.maximum(m_sc[...], jnp.max(s, axis=-1, keepdims=True))
        alpha = jnp.exp(m_sc[...] - m_new)
        p = jnp.exp(s - m_new)
        l_sc[...] = alpha * l_sc[...] + jnp.sum(p, axis=-1, keepdims=True)
        acc_sc[...] = alpha * acc_sc[...] + jnp.einsum(
            "hqk,hkd->hqd", p.astype(jnp.bfloat16), v_blk,
            preferred_element_type=jnp.float32)
        m_sc[...] = m_new

    # fully-visible key tiles (kt < qi): no masking work at all
    @pl.loop(0, qi)
    def _(kt):
        s = jnp.einsum("hqd,hdk->hqk", q_h, k_cache[kt],
                       preferred_element_type=jnp.float32)
        online_update(s, v_cache[kt])

    # diagonal key tile (just produced): static lower-triangular additive bias
    rows = jax.lax.broadcasted_iota(jnp.int32, (TQ, TQ), 0)
    cols = jax.lax.broadcasted_iota(jnp.int32, (TQ, TQ), 1)
    diag_bias = jnp.where(cols > rows, -1e30, 0.0).astype(jnp.float32)
    s_diag = jnp.einsum("hqd,hdk->hqk", q_h, k_h,
                        preferred_element_type=jnp.float32) + diag_bias[None]
    online_update(s_diag, v_h)
    # TODO(synk): attention dropout (p=0.1) is identity (eval mode).

    ctx = acc_sc[...] * pl.reciprocal(l_sc[...], approx=True)        # (H, TQ, D) f32
    ctx = jnp.transpose(ctx, (1, 0, 2)).reshape(TQ, E)
    attn = jnp.dot(ctx.astype(jnp.bfloat16), wo_ref[...],
                   preferred_element_type=jnp.float32) + bo_ref[...]
    # TODO(synk): residual-path dropout (p=0.1) is identity (eval mode).
    x1 = x_tile + attn

    # ---------------------- LN2 + MLP (Linear -> GELU -> Linear) -------------
    h2 = _layernorm(x1, ln2_g_ref[...], ln2_b_ref[...])
    z = jnp.dot(h2.astype(jnp.bfloat16), w1_ref[...],
                preferred_element_type=jnp.float32) + b1_ref[...]
    z = _gelu_exact(z)
    # TODO(synk): MLP dropout (p=0.1) is identity (eval mode).
    ff = jnp.dot(z.astype(jnp.bfloat16), w2_ref[...],
                 preferred_element_type=jnp.float32) + b2_ref[...]
    o_ref[...] = (x1 + ff).astype(o_ref.dtype)


def _vmem_limit_bytes():
    """Scoped VMEM ~= physical - 16 MiB (v5e/v6e: 112 MiB, v7x: 48 MiB)."""
    fallback = 48 * 1024 * 1024
    try:
        cap = int(getattr(pltpu.get_tpu_info(), "vmem_capacity_bytes", 0) or 0)
    except Exception:
        cap = 0
    if cap <= 0:
        return fallback
    return max(fallback, cap - 16 * 1024 * 1024)


def _pick_q_tile(S):
    """TQ=128 everywhere; 256 only on v6e (256-wide MXU + 128 MiB VMEM)."""
    tq = 128
    try:
        info = pltpu.get_tpu_info()
        if ("6" in str(getattr(info, "chip_version", "")) and
                int(getattr(info, "vmem_capacity_bytes", 0) or 0) >= 128 * 1024 * 1024):
            tq = 256
    except Exception:
        pass
    if S % tq != 0:
        tq = 128 if S % 128 == 0 else S   # small / ragged S: one full-sequence tile
    return tq


def transformer_decoder_block(x, params, num_heads):
    B, S, E = x.shape
    (ln1_g, ln1_b, wqkv, bqkv, wo, bo, ln2_g, ln2_b, w1, b1, w2, b2) = params
    H = num_heads
    D = E // H

    # Host-side repack of the fused QKV projection.  The module's qkv output is
    # per-head interleaved columns [q_h|k_h|v_h]; split into head-ordered
    # Wq/Wk/Wv so the kernel never slices sub-128 column blocks.
    wqkv_r = wqkv.reshape(E, H, 3, D)
    wq = wqkv_r[:, :, 0, :].reshape(E, E)
    wk = wqkv_r[:, :, 1, :].reshape(E, E)
    wv = wqkv_r[:, :, 2, :].reshape(E, E)
    bqkv_r = bqkv.reshape(H, 3, D)
    bq = bqkv_r[:, 0, :].reshape(1, E)
    bk = bqkv_r[:, 1, :].reshape(1, E)
    bv = bqkv_r[:, 2, :].reshape(1, E)

    bf16 = jnp.bfloat16
    kernel_params = [
        ln1_g, ln1_b,
        wq.astype(bf16), wk.astype(bf16), wv.astype(bf16),
        bq, bk, bv,
        wo.astype(bf16), bo,
        ln2_g, ln2_b,
        w1.astype(bf16), b1,
        w2.astype(bf16), b2,
    ]
    # TODO(synk): for very large E, tile w1/w2 over the hidden dim (keep them in
    # HBM + pltpu.emit_pipeline) instead of holding them fully VMEM-resident.

    tq = _pick_q_tile(S)
    nq = S // tq
    kernel = functools.partial(decoder_block_kernel, num_heads=H)

    def build(single_buffer_weights):
        def inv_spec(arr):
            nd = arr.ndim
            idx = lambda b, qi, _nd=nd: (0,) * _nd
            if single_buffer_weights:
                try:
                    # grid-invariant inputs: one resident copy instead of two
                    return pl.BlockSpec(arr.shape, idx, pipeline_mode=pl.Buffered(1))
                except Exception:
                    pass
            return pl.BlockSpec(arr.shape, idx)

        in_specs = [pl.BlockSpec((None, tq, E), lambda b, qi: (b, qi, 0))]
        in_specs += [inv_spec(p) for p in kernel_params]

        return pl.pallas_call(
            kernel,
            out_shape=jax.ShapeDtypeStruct((B, S, E), x.dtype),
            grid_spec=pltpu.PrefetchScalarGridSpec(
                num_scalar_prefetch=0,
                grid=(B, nq),
                in_specs=in_specs,
                out_specs=pl.BlockSpec((None, tq, E), lambda b, qi: (b, qi, 0)),
                scratch_shapes=[
                    pltpu.VMEM((nq, H, D, tq), jnp.bfloat16),   # K cache
                    pltpu.VMEM((nq, H, tq, D), jnp.bfloat16),   # V cache
                    pltpu.VMEM((H, tq, 1), jnp.float32),        # running max
                    pltpu.VMEM((H, tq, 1), jnp.float32),        # running denom
                    pltpu.VMEM((H, tq, D), jnp.float32),        # running PV acc
                ],
            ),
            compiler_params=pltpu.CompilerParams(
                # batch shards across cores; the query-tile axis stays sequential
                # because the K/V caches are carried across it in scratch.
                dimension_semantics=("parallel", "arbitrary"),
                vmem_limit_bytes=_vmem_limit_bytes(),
            ),
        )

    try:
        return jax.block_until_ready(build(True)(x, *kernel_params))
    except Exception:
        # fallback for JAX builds without BlockSpec pipeline_mode / Buffered(1)
        return build(False)(x, *kernel_params)


def reference_block(x, params, num_heads):
    (ln1_g, ln1_b, wqkv, bqkv, wo, bo, ln2_g, ln2_b, w1, b1, w2, b2) = params
    B, S, E = x.shape
    D = E // num_heads

    h = _layernorm(x, ln1_g, ln1_b)
    qkv = h @ wqkv + bqkv                                  # (B,S,3E)
    qkv = qkv.reshape(B, S, num_heads, 3 * D).transpose(0, 2, 1, 3)
    q, k, v = qkv[..., :D], qkv[..., D:2 * D], qkv[..., 2 * D:]
    s = jnp.einsum("bhqd,bhkd->bhqk", q, k)
    mask = jnp.triu(jnp.ones((S, S), bool), k=1)
    s = jnp.where(mask, -jnp.inf, s) / (D ** 0.5)
    w = jax.nn.softmax(s, axis=-1)
    ctx = jnp.einsum("bhqk,bhkd->bhqd", w, v).transpose(0, 2, 1, 3).reshape(B, S, E)
    x1 = x + (ctx @ wo + bo)

    h2 = _layernorm(x1, ln2_g, ln2_b)
    ff = _gelu_exact(h2 @ w1 + b1) @ w2 + b2
    return x1 + ff


if __name__ == "__main__":
    B, S, E, H = 2, 8, 32, 4    # batch, max_length/seq, emb_dim, num_heads

    key = jax.random.PRNGKey(0)
    ks = jax.random.split(key, 9)

    params = [
        jnp.ones((1, E), jnp.float32),                                  # ln1 gamma
        jnp.zeros((1, E), jnp.float32),                                 # ln1 beta
        0.02 * jax.random.normal(ks[0], (E, 3 * E), jnp.float32),       # W_qkv
        0.01 * jax.random.normal(ks[1], (1, 3 * E), jnp.float32),       # b_qkv
        0.02 * jax.random.normal(ks[2], (E, E), jnp.float32),           # W_out (attn)
        0.01 * jax.random.normal(ks[3], (1, E), jnp.float32),           # b_out
        jnp.ones((1, E), jnp.float32),                                  # ln2 gamma
        jnp.zeros((1, E), jnp.float32),                                 # ln2 beta
        0.02 * jax.random.normal(ks[4], (E, 2 * E), jnp.float32),       # W1 (mlp)
        0.01 * jax.random.normal(ks[5], (1, 2 * E), jnp.float32),       # b1
        0.02 * jax.random.normal(ks[6], (2 * E, E), jnp.float32),       # W2 (mlp)
        0.01 * jax.random.normal(ks[7], (1, E), jnp.float32),           # b2
    ]

    x = jax.random.normal(ks[8], (B, S, E), jnp.float32)

    out = jax.block_until_ready(transformer_decoder_block(x, params, num_heads=H))

    ref = reference_block(x, params, num_heads=H)
    assert out.shape == (B, S, E)
    err = jnp.max(jnp.abs(out - ref))
    # bf16 MXU operands + approx reciprocal -> compare against the f32
    # reference with a correspondingly looser tolerance.
    assert jnp.allclose(out, ref, rtol=2e-2, atol=2e-2), f"max abs err {err}"

    print("KERNEL_OK")
</pallas_src>

<mosaic_0001>
module attributes {stable_mosaic.version = 11 : i64} {
  func.func @decoder_block_kernel(%arg0: i32, %arg1: i32, %arg2: memref<1x8x32xf32, #tpu.memory_space<vmem>>, %arg3: memref<1x32xf32, #tpu.memory_space<vmem>>, %arg4: memref<1x32xf32, #tpu.memory_space<vmem>>, %arg5: memref<32x32xbf16, #tpu.memory_space<vmem>>, %arg6: memref<32x32xbf16, #tpu.memory_space<vmem>>, %arg7: memref<32x32xbf16, #tpu.memory_space<vmem>>, %arg8: memref<1x32xf32, #tpu.memory_space<vmem>>, %arg9: memref<1x32xf32, #tpu.memory_space<vmem>>, %arg10: memref<1x32xf32, #tpu.memory_space<vmem>>, %arg11: memref<32x32xbf16, #tpu.memory_space<vmem>>, %arg12: memref<1x32xf32, #tpu.memory_space<vmem>>, %arg13: memref<1x32xf32, #tpu.memory_space<vmem>>, %arg14: memref<1x32xf32, #tpu.memory_space<vmem>>, %arg15: memref<32x64xbf16, #tpu.memory_space<vmem>>, %arg16: memref<1x64xf32, #tpu.memory_space<vmem>>, %arg17: memref<64x32xbf16, #tpu.memory_space<vmem>>, %arg18: memref<1x32xf32, #tpu.memory_space<vmem>>, %arg19: memref<1x8x32xf32, #tpu.memory_space<vmem>>, %arg20: memref<1x4x8x8xbf16, #tpu.memory_space<vmem>>, %arg21: memref<1x4x8x8xbf16, #tpu.memory_space<vmem>>, %arg22: memref<4x8x1xf32, #tpu.memory_space<vmem>>, %arg23: memref<4x8x1xf32, #tpu.memory_space<vmem>>, %arg24: memref<4x8x8xf32, #tpu.memory_space<vmem>>) attributes {dimension_semantics = [#tpu.dimension_semantics<parallel>, #tpu.dimension_semantics<arbitrary>], iteration_bounds = array<i64: 2, 1>, scalar_prefetch = 0 : i64, scratch_operands = 5 : i64, tpu.core_type = #tpu.core_type<tc>, window_params = [{transform_indices = @transform_0, window_bounds = array<i64: 1, 8, 32>}, {pipeline_mode = #tpu.pipeline_mode<synchronous>, transform_indices = @transform_1, window_bounds = array<i64: 1, 32>}, {pipeline_mode = #tpu.pipeline_mode<synchronous>, transform_indices = @transform_2, window_bounds = array<i64: 1, 32>}, {pipeline_mode = #tpu.pipeline_mode<synchronous>, transform_indices = @transform_3, window_bounds = array<i64: 32, 32>}, {pipeline_mode = #tpu.pipeline_mode<synchronous>, transform_indices = @transform_4, window_bounds = array<i64: 32, 32>}, {pipeline_mode = #tpu.pipeline_mode<synchronous>, transform_indices = @transform_5, window_bounds = array<i64: 32, 32>}, {pipeline_mode = #tpu.pipeline_mode<synchronous>, transform_indices = @transform_6, window_bounds = array<i64: 1, 32>}, {pipeline_mode = #tpu.pipeline_mode<synchronous>, transform_indices = @transform_7, window_bounds = array<i64: 1, 32>}, {pipeline_mode = #tpu.pipeline_mode<synchronous>, transform_indices = @transform_8, window_bounds = array<i64: 1, 32>}, {pipeline_mode = #tpu.pipeline_mode<synchronous>, transform_indices = @transform_9, window_bounds = array<i64: 32, 32>}, {pipeline_mode = #tpu.pipeline_mode<synchronous>, transform_indices = @transform_10, window_bounds = array<i64: 1, 32>}, {pipeline_mode = #tpu.pipeline_mode<synchronous>, transform_indices = @transform_11, window_bounds = array<i64: 1, 32>}, {pipeline_mode = #tpu.pipeline_mode<synchronous>, transform_indices = @transform_12, window_bounds = array<i64: 1, 32>}, {pipeline_mode = #tpu.pipeline_mode<synchronous>, transform_indices = @transform_13, window_bounds = array<i64: 32, 64>}, {pipeline_mode = #tpu.pipeline_mode<synchronous>, transform_indices = @transform_14, window_bounds = array<i64: 1, 64>}, {pipeline_mode = #tpu.pipeline_mode<synchronous>, transform_indices = @transform_15, window_bounds = array<i64: 64, 32>}, {pipeline_mode = #tpu.pipeline_mode<synchronous>, transform_indices = @transform_16, window_bounds = array<i64: 1, 32>}, {transform_indices = @transform_17, window_bounds = array<i64: 1, 8, 32>}]} {
    %c0 = arith.constant 0 : index
    %c0_0 = arith.constant 0 : index
    %c0_1 = arith.constant 0 : index
    %0 = vector.load %arg2[%c0, %c0_0, %c0_1] : memref<1x8x32xf32, #tpu.memory_space<vmem>>, vector<1x8x32xf32>
    %1 = vector.shape_cast %0 : vector<1x8x32xf32> to vector<8x32xf32>
    %c0_2 = arith.constant 0 : index
    %c0_3 = arith.constant 0 : index
    %2 = vector.load %arg3[%c0_2, %c0_3] : memref<1x32xf32, #tpu.memory_space<vmem>>, vector<1x32xf32>
    %c0_4 = arith.constant 0 : index
    %c0_5 = arith.constant 0 : index
    %3 = vector.load %arg4[%c0_4, %c0_5] : memref<1x32xf32, #tpu.memory_space<vmem>>, vector<1x32xf32>
    %cst = arith.constant dense<0.000000e+00> : vector<8xf32>
    %4 = vector.multi_reduction <add>, %1, %cst [1] : vector<8x32xf32> to vector<8xf32>
    %5 = vector.shape_cast %4 : vector<8xf32> to vector<8x1xf32>
    %cst_6 = arith.constant 3.200000e+01 : f32
    %6 = vector.broadcast %cst_6 : f32 to vector<8x1xf32>
    %7 = arith.divf %5, %6 : vector<8x1xf32>
    %8 = vector.broadcast %7 : vector<8x1xf32> to vector<8x32xf32>
    %9 = arith.subf %1, %8 : vector<8x32xf32>
    %10 = arith.mulf %9, %9 : vector<8x32xf32>
    %cst_7 = arith.constant dense<0.000000e+00> : vector<8xf32>
    %11 = vector.multi_reduction <add>, %10, %cst_7 [1] : vector<8x32xf32> to vector<8xf32>
    %12 = vector.shape_cast %11 : vector<8xf32> to vector<8x1xf32>
    %cst_8 = arith.constant 3.200000e+01 : f32
    %13 = vector.broadcast %cst_8 : f32 to vector<8x1xf32>
    %14 = arith.divf %12, %13 : vector<8x1xf32>
    %15 = vector.broadcast %7 : vector<8x1xf32> to vector<8x32xf32>
    %16 = arith.subf %1, %15 : vector<8x32xf32>
    %cst_9 = arith.constant 9.99999974E-6 : f32
    %17 = vector.broadcast %cst_9 : f32 to vector<8x1xf32>
    %18 = arith.addf %14, %17 : vector<8x1xf32>
    %19 = math.rsqrt %18 : vector<8x1xf32>
    %20 = vector.broadcast %19 : vector<8x1xf32> to vector<8x32xf32>
    %21 = arith.mulf %16, %20 : vector<8x32xf32>
    %22 = vector.broadcast %2 : vector<1x32xf32> to vector<8x32xf32>
    %23 = arith.mulf %21, %22 : vector<8x32xf32>
    %24 = vector.broadcast %3 : vector<1x32xf32> to vector<8x32xf32>
    %25 = arith.addf %23, %24 : vector<8x32xf32>
    %26 = arith.truncf %25 : vector<8x32xf32> to vector<8x32xbf16>
    %c0_10 = arith.constant 0 : index
    %c0_11 = arith.constant 0 : index
    %27 = vector.load %arg5[%c0_10, %c0_11] : memref<32x32xbf16, #tpu.memory_space<vmem>>, vector<32x32xbf16>
    %cst_12 = arith.constant dense<0.000000e+00> : vector<8x32xf32>
    %28 = tpu.matmul %26, %27, %cst_12 {dimension_numbers = #tpu.dot_dimension_numbers<[1], [0], [0], [1], [0, 0, 1, 1], [], []>} : vector<8x32xbf16>, vector<32x32xbf16>, vector<8x32xf32> -> vector<8x32xf32>
    %c0_13 = arith.constant 0 : index
    %c0_14 = arith.constant 0 : index
    %29 = vector.load %arg8[%c0_13, %c0_14] : memref<1x32xf32, #tpu.memory_space<vmem>>, vector<1x32xf32>
    %30 = vector.broadcast %29 : vector<1x32xf32> to vector<8x32xf32>
    %31 = arith.addf %28, %30 : vector<8x32xf32>
    %cst_15 = arith.constant 0.353553385 : f32
    %32 = vector.broadcast %cst_15 : f32 to vector<8x32xf32>
    %33 = arith.mulf %31, %32 : vector<8x32xf32>
    %34 = arith.truncf %33 : vector<8x32xf32> to vector<8x32xbf16>
    %35 = vector.shape_cast %34 : vector<8x32xbf16> to vector<8x4x8xbf16>
    %36 = tpu.transpose %35, [1, 0, 2] : vector<8x4x8xbf16> -> vector<4x8x8xbf16>
    %c0_16 = arith.constant 0 : index
    %c0_17 = arith.constant 0 : index
    %37 = vector.load %arg6[%c0_16, %c0_17] : memref<32x32xbf16, #tpu.memory_space<vmem>>, vector<32x32xbf16>
    %cst_18 = arith.constant dense<0.000000e+00> : vector<8x32xf32>
    %38 = tpu.matmul %26, %37, %cst_18 {dimension_numbers = #tpu.dot_dimension_numbers<[1], [0], [0], [1], [0, 0, 1, 1], [], []>} : vector<8x32xbf16>, vector<32x32xbf16>, vector<8x32xf32> -> vector<8x32xf32>
    %c0_19 = arith.constant 0 : index
    %c0_20 = arith.constant 0 : index
    %39 = vector.load %arg9[%c0_19, %c0_20] : memref<1x32xf32, #tpu.memory_space<vmem>>, vector<1x32xf32>
    %40 = vector.broadcast %39 : vector<1x32xf32> to vector<8x32xf32>
    %41 = arith.addf %38, %40 : vector<8x32xf32>
    %42 = arith.truncf %41 : vector<8x32xf32> to vector<8x32xbf16>
    %43 = tpu.transpose %42, [1, 0] : vector<8x32xbf16> -> vector<32x8xbf16>
    %44 = vector.shape_cast %43 : vector<32x8xbf16> to vector<4x8x8xbf16>
    %c0_21 = arith.constant 0 : index
    %c0_22 = arith.constant 0 : index
    %45 = vector.load %arg7[%c0_21, %c0_22] : memref<32x32xbf16, #tpu.memory_space<vmem>>, vector<32x32xbf16>
    %cst_23 = arith.constant dense<0.000000e+00> : vector<8x32xf32>
    %46 = tpu.matmul %26, %45, %cst_23 {dimension_numbers = #tpu.dot_dimension_numbers<[1], [0], [0], [1], [0, 0, 1, 1], [], []>} : vector<8x32xbf16>, vector<32x32xbf16>, vector<8x32xf32> -> vector<8x32xf32>
    %c0_24 = arith.constant 0 : index
    %c0_25 = arith.constant 0 : index
    %47 = vector.load %arg10[%c0_24, %c0_25] : memref<1x32xf32, #tpu.memory_space<vmem>>, vector<1x32xf32>
    %48 = vector.broadcast %47 : vector<1x32xf32> to vector<8x32xf32>
    %49 = arith.addf %46, %48 : vector<8x32xf32>
    %50 = arith.truncf %49 : vector<8x32xf32> to vector<8x32xbf16>
    %51 = vector.shape_cast %50 : vector<8x32xbf16> to vector<8x4x8xbf16>
    %52 = tpu.transpose %51, [1, 0, 2] : vector<8x4x8xbf16> -> vector<4x8x8xbf16>
    %53 = arith.index_cast %arg1 : i32 to index
    %c0_26 = arith.constant 0 : index
    %c0_27 = arith.constant 0 : index
    %c0_28 = arith.constant 0 : index
    %54 = vector.load %arg20[%53, %c0_26, %c0_27, %c0_28] : memref<1x4x8x8xbf16, #tpu.memory_space<vmem>>, vector<1x4x8x8xbf16>
    %55 = vector.shape_cast %54 : vector<1x4x8x8xbf16> to vector<4x8x8xbf16>
    %56 = vector.shape_cast %44 : vector<4x8x8xbf16> to vector<1x4x8x8xbf16>
    tpu.vector_store %arg20[%53, %c0_26, %c0_27, %c0_28], %56 {strides = array<i32>} : memref<1x4x8x8xbf16, #tpu.memory_space<vmem>>, vector<1x4x8x8xbf16>,
    %57 = arith.index_cast %arg1 : i32 to index
    %c0_29 = arith.constant 0 : index
    %c0_30 = arith.constant 0 : index
    %c0_31 = arith.constant 0 : index
    %58 = vector.load %arg21[%57, %c0_29, %c0_30, %c0_31] : memref<1x4x8x8xbf16, #tpu.memory_space<vmem>>, vector<1x4x8x8xbf16>
    %59 = vector.shape_cast %58 : vector<1x4x8x8xbf16> to vector<4x8x8xbf16>
    %60 = vector.shape_cast %52 : vector<4x8x8xbf16> to vector<1x4x8x8xbf16>
    tpu.vector_store %arg21[%57, %c0_29, %c0_30, %c0_31], %60 {strides = array<i32>} : memref<1x4x8x8xbf16, #tpu.memory_space<vmem>>, vector<1x4x8x8xbf16>,
    %cst_32 = arith.constant -1.000000e+30 : f32
    %61 = vector.broadcast %cst_32 : f32 to vector<4x8x1xf32>
    %c0_33 = arith.constant 0 : index
    %c0_34 = arith.constant 0 : index
    %c0_35 = arith.constant 0 : index
    %62 = vector.load %arg22[%c0_33, %c0_34, %c0_35] : memref<4x8x1xf32, #tpu.memory_space<vmem>>, vector<4x8x1xf32>
    tpu.vector_store %arg22[%c0_33, %c0_34, %c0_35], %61 {strides = array<i32>} : memref<4x8x1xf32, #tpu.memory_space<vmem>>, vector<4x8x1xf32>,
    %cst_36 = arith.constant 0.000000e+00 : f32
    %63 = vector.broadcast %cst_36 : f32 to vector<4x8x1xf32>
    %c0_37 = arith.constant 0 : index
    %c0_38 = arith.constant 0 : index
    %c0_39 = arith.constant 0 : index
    %64 = vector.load %arg23[%c0_37, %c0_38, %c0_39] : memref<4x8x1xf32, #tpu.memory_space<vmem>>, vector<4x8x1xf32>
    tpu.vector_store %arg23[%c0_37, %c0_38, %c0_39], %63 {strides = array<i32>} : memref<4x8x1xf32, #tpu.memory_space<vmem>>, vector<4x8x1xf32>,
    %cst_40 = arith.constant 0.000000e+00 : f32
    %65 = vector.broadcast %cst_40 : f32 to vector<4x8x8xf32>
    %c0_41 = arith.constant 0 : index
    %c0_42 = arith.constant 0 : index
    %c0_43 = arith.constant 0 : index
    %66 = vector.load %arg24[%c0_41, %c0_42, %c0_43] : memref<4x8x8xf32, #tpu.memory_space<vmem>>, vector<4x8x8xf32>
    tpu.vector_store %arg24[%c0_41, %c0_42, %c0_43], %65 {strides = array<i32>} : memref<4x8x8xf32, #tpu.memory_space<vmem>>, vector<4x8x8xf32>,
    %c0_i32 = arith.constant 0 : i32
    %67 = arith.subi %arg1, %c0_i32 : i32
    %c1_i32 = arith.constant 1 : i32
    %c1_i32_44 = arith.constant 1 : i32
    %68 = arith.subi %c1_i32, %c1_i32_44 : i32
    %69 = arith.addi %67, %68 : i32
    %c1_i32_45 = arith.constant 1 : i32
    %70 = arith.divsi %69, %c1_i32_45 : i32
    %c1_i32_46 = arith.constant 1 : i32
    %c0_i32_47 = arith.constant 0 : i32
    %c0_i32_48 = arith.constant 0 : i32
    %71 = arith.subi %70, %c0_i32_48 : i32
    %72 = arith.addi %c0_i32_48, %71 : i32
    %c1_i32_49 = arith.constant 1 : i32
    scf.for %arg25 = %c0_i32_48 to %72 step %c1_i32_49  : i32 {
      %201 = arith.muli %arg25, %c1_i32_46 : i32
      %202 = arith.addi %c0_i32_47, %201 : i32
      %203 = arith.index_cast %202 : i32 to index
      %c0_125 = arith.constant 0 : index
      %c0_126 = arith.constant 0 : index
      %c0_127 = arith.constant 0 : index
      %204 = vector.load %arg20[%203, %c0_125, %c0_126, %c0_127] : memref<1x4x8x8xbf16, #tpu.memory_space<vmem>>, vector<1x4x8x8xbf16>
      %205 = vector.shape_cast %204 : vector<1x4x8x8xbf16> to vector<4x8x8xbf16>
      "tpu.trace_start"() <{level = 10 : i32, message = "hqd,hdk->hqk"}> : () -> ()
      %cst_128 = arith.constant dense<0.000000e+00> : vector<4x8x8xf32>
      %206 = tpu.matmul %36, %205, %cst_128 {dimension_numbers = #tpu.dot_dimension_numbers<[2], [1], [1], [2], [0, 0, 0, 1, 1, 2], [0], [0]>} : vector<4x8x8xbf16>, vector<4x8x8xbf16>, vector<4x8x8xf32> -> vector<4x8x8xf32>
      "tpu.trace_stop"() : () -> ()
      %207 = arith.index_cast %202 : i32 to index
      %c0_129 = arith.constant 0 : index
      %c0_130 = arith.constant 0 : index
      %c0_131 = arith.constant 0 : index
      %208 = vector.load %arg21[%207, %c0_129, %c0_130, %c0_131] : memref<1x4x8x8xbf16, #tpu.memory_space<vmem>>, vector<1x4x8x8xbf16>
      %209 = vector.shape_cast %208 : vector<1x4x8x8xbf16> to vector<4x8x8xbf16>
      %c0_132 = arith.constant 0 : index
      %c0_133 = arith.constant 0 : index
      %c0_134 = arith.constant 0 : index
      %210 = vector.load %arg22[%c0_132, %c0_133, %c0_134] : memref<4x8x1xf32, #tpu.memory_space<vmem>>, vector<4x8x1xf32>
      %cst_135 = arith.constant dense<0xFF800000> : vector<4x8xf32>
      %211 = vector.multi_reduction <maximumf>, %206, %cst_135 [2] : vector<4x8x8xf32> to vector<4x8xf32>
      %212 = vector.shape_cast %211 : vector<4x8xf32> to vector<4x8x1xf32>
      %213 = arith.maximumf %210, %212 : vector<4x8x1xf32>
      %c0_136 = arith.constant 0 : index
      %c0_137 = arith.constant 0 : index
      %c0_138 = arith.constant 0 : index
      %214 = vector.load %arg22[%c0_136, %c0_137, %c0_138] : memref<4x8x1xf32, #tpu.memory_space<vmem>>, vector<4x8x1xf32>
      %215 = arith.subf %214, %213 : vector<4x8x1xf32>
      %216 = math.exp %215 : vector<4x8x1xf32>
      %217 = vector.broadcast %213 : vector<4x8x1xf32> to vector<4x8x8xf32>
      %218 = arith.subf %206, %217 : vector<4x8x8xf32>
      %219 = math.exp %218 : vector<4x8x8xf32>
      %c0_139 = arith.constant 0 : index
      %c0_140 = arith.constant 0 : index
      %c0_141 = arith.constant 0 : index
      %220 = vector.load %arg23[%c0_139, %c0_140, %c0_141] : memref<4x8x1xf32, #tpu.memory_space<vmem>>, vector<4x8x1xf32>
      %221 = arith.mulf %216, %220 : vector<4x8x1xf32>
      %cst_142 = arith.constant dense<0.000000e+00> : vector<4x8xf32>
      %222 = vector.multi_reduction <add>, %219, %cst_142 [2] : vector<4x8x8xf32> to vector<4x8xf32>
      %223 = vector.shape_cast %222 : vector<4x8xf32> to vector<4x8x1xf32>
      %224 = arith.addf %221, %223 : vector<4x8x1xf32>
      %c0_143 = arith.constant 0 : index
      %c0_144 = arith.constant 0 : index
      %c0_145 = arith.constant 0 : index
      %225 = vector.load %arg23[%c0_143, %c0_144, %c0_145] : memref<4x8x1xf32, #tpu.memory_space<vmem>>, vector<4x8x1xf32>
      tpu.vector_store %arg23[%c0_143, %c0_144, %c0_145], %224 {strides = array<i32>} : memref<4x8x1xf32, #tpu.memory_space<vmem>>, vector<4x8x1xf32>,
      %c0_146 = arith.constant 0 : index
      %c0_147 = arith.constant 0 : index
      %c0_148 = arith.constant 0 : index
      %226 = vector.load %arg24[%c0_146, %c0_147, %c0_148] : memref<4x8x8xf32, #tpu.memory_space<vmem>>, vector<4x8x8xf32>
      %227 = vector.broadcast %216 : vector<4x8x1xf32> to vector<4x8x8xf32>
      %228 = arith.mulf %227, %226 : vector<4x8x8xf32>
      %229 = arith.truncf %219 : vector<4x8x8xf32> to vector<4x8x8xbf16>
      "tpu.trace_start"() <{level = 10 : i32, message = "hqk,hkd->hqd"}> : () -> ()
      %cst_149 = arith.constant dense<0.000000e+00> : vector<4x8x8xf32>
      %230 = tpu.matmul %229, %209, %cst_149 {dimension_numbers = #tpu.dot_dimension_numbers<[2], [1], [1], [2], [0, 0, 0, 1, 1, 2], [0], [0]>} : vector<4x8x8xbf16>, vector<4x8x8xbf16>, vector<4x8x8xf32> -> vector<4x8x8xf32>
      "tpu.trace_stop"() : () -> ()
      %231 = arith.addf %228, %230 : vector<4x8x8xf32>
      %c0_150 = arith.constant 0 : index
      %c0_151 = arith.constant 0 : index
      %c0_152 = arith.constant 0 : index
      %232 = vector.load %arg24[%c0_150, %c0_151, %c0_152] : memref<4x8x8xf32, #tpu.memory_space<vmem>>, vector<4x8x8xf32>
      tpu.vector_store %arg24[%c0_150, %c0_151, %c0_152], %231 {strides = array<i32>} : memref<4x8x8xf32, #tpu.memory_space<vmem>>, vector<4x8x8xf32>,
      %c0_153 = arith.constant 0 : index
      %c0_154 = arith.constant 0 : index
      %c0_155 = arith.constant 0 : index
      %233 = vector.load %arg22[%c0_153, %c0_154, %c0_155] : memref<4x8x1xf32, #tpu.memory_space<vmem>>, vector<4x8x1xf32>
      tpu.vector_store %arg22[%c0_153, %c0_154, %c0_155], %213 {strides = array<i32>} : memref<4x8x1xf32, #tpu.memory_space<vmem>>, vector<4x8x1xf32>,
    }
    %73 = tpu.iota {dimensions = array<i32: 0>} : vector<8x8xi32>
    %74 = tpu.iota {dimensions = array<i32: 1>} : vector<8x8xi32>
    %75 = arith.cmpi sgt, %74, %73 : vector<8x8xi32>
    %cst_50 = arith.constant -1.000000e+30 : f32
    %cst_51 = arith.constant 0.000000e+00 : f32
    %76 = vector.broadcast %cst_50 : f32 to vector<8x8xf32>
    %77 = vector.broadcast %cst_51 : f32 to vector<8x8xf32>
    %78 = arith.select %75, %76, %77 : vector<8x8xi1>, vector<8x8xf32>
    "tpu.trace_start"() <{level = 10 : i32, message = "hqd,hdk->hqk"}> : () -> ()
    %cst_52 = arith.constant dense<0.000000e+00> : vector<4x8x8xf32>
    %79 = tpu.matmul %36, %44, %cst_52 {dimension_numbers = #tpu.dot_dimension_numbers<[2], [1], [1], [2], [0, 0, 0, 1, 1, 2], [0], [0]>} : vector<4x8x8xbf16>, vector<4x8x8xbf16>, vector<4x8x8xf32> -> vector<4x8x8xf32>
    "tpu.trace_stop"() : () -> ()
    %80 = vector.shape_cast %78 : vector<8x8xf32> to vector<1x8x8xf32>
    %81 = vector.broadcast %80 : vector<1x8x8xf32> to vector<4x8x8xf32>
    %82 = arith.addf %79, %81 : vector<4x8x8xf32>
    %c0_53 = arith.constant 0 : index
    %c0_54 = arith.constant 0 : index
    %c0_55 = arith.constant 0 : index
    %83 = vector.load %arg22[%c0_53, %c0_54, %c0_55] : memref<4x8x1xf32, #tpu.memory_space<vmem>>, vector<4x8x1xf32>
    %cst_56 = arith.constant dense<0xFF800000> : vector<4x8xf32>
    %84 = vector.multi_reduction <maximumf>, %82, %cst_56 [2] : vector<4x8x8xf32> to vector<4x8xf32>
    %85 = vector.shape_cast %84 : vector<4x8xf32> to vector<4x8x1xf32>
    %86 = arith.maximumf %83, %85 : vector<4x8x1xf32>
    %c0_57 = arith.constant 0 : index
    %c0_58 = arith.constant 0 : index
    %c0_59 = arith.constant 0 : index
    %87 = vector.load %arg22[%c0_57, %c0_58, %c0_59] : memref<4x8x1xf32, #tpu.memory_space<vmem>>, vector<4x8x1xf32>
    %88 = arith.subf %87, %86 : vector<4x8x1xf32>
    %89 = math.exp %88 : vector<4x8x1xf32>
    %90 = vector.broadcast %86 : vector<4x8x1xf32> to vector<4x8x8xf32>
    %91 = arith.subf %82, %90 : vector<4x8x8xf32>
    %92 = math.exp %91 : vector<4x8x8xf32>
    %c0_60 = arith.constant 0 : index
    %c0_61 = arith.constant 0 : index
    %c0_62 = arith.constant 0 : index
    %93 = vector.load %arg23[%c0_60, %c0_61, %c0_62] : memref<4x8x1xf32, #tpu.memory_space<vmem>>, vector<4x8x1xf32>
    %94 = arith.mulf %89, %93 : vector<4x8x1xf32>
    %cst_63 = arith.constant dense<0.000000e+00> : vector<4x8xf32>
    %95 = vector.multi_reduction <add>, %92, %cst_63 [2] : vector<4x8x8xf32> to vector<4x8xf32>
    %96 = vector.shape_cast %95 : vector<4x8xf32> to vector<4x8x1xf32>
    %97 = arith.addf %94, %96 : vector<4x8x1xf32>
    %c0_64 = arith.constant 0 : index
    %c0_65 = arith.constant 0 : index
    %c0_66 = arith.constant 0 : index
    %98 = vector.load %arg23[%c0_64, %c0_65, %c0_66] : memref<4x8x1xf32, #tpu.memory_space<vmem>>, vector<4x8x1xf32>
    tpu.vector_store %arg23[%c0_64, %c0_65, %c0_66], %97 {strides = array<i32>} : memref<4x8x1xf32, #tpu.memory_space<vmem>>, vector<4x8x1xf32>,
    %c0_67 = arith.constant 0 : index
    %c0_68 = arith.constant 0 : index
    %c0_69 = arith.constant 0 : index
    %99 = vector.load %arg24[%c0_67, %c0_68, %c0_69] : memref<4x8x8xf32, #tpu.memory_space<vmem>>, vector<4x8x8xf32>
    %100 = vector.broadcast %89 : vector<4x8x1xf32> to vector<4x8x8xf32>
    %101 = arith.mulf %100, %99 : vector<4x8x8xf32>
    %102 = arith.truncf %92 : vector<4x8x8xf32> to vector<4x8x8xbf16>
    "tpu.trace_start"() <{level = 10 : i32, message = "hqk,hkd->hqd"}> : () -> ()
    %cst_70 = arith.constant dense<0.000000e+00> : vector<4x8x8xf32>
    %103 = tpu.matmul %102, %52, %cst_70 {dimension_numbers = #tpu.dot_dimension_numbers<[2], [1], [1], [2], [0, 0, 0, 1, 1, 2], [0], [0]>} : vector<4x8x8xbf16>, vector<4x8x8xbf16>, vector<4x8x8xf32> -> vector<4x8x8xf32>
    "tpu.trace_stop"() : () -> ()
    %104 = arith.addf %101, %103 : vector<4x8x8xf32>
    %c0_71 = arith.constant 0 : index
    %c0_72 = arith.constant 0 : index
    %c0_73 = arith.constant 0 : index
    %105 = vector.load %arg24[%c0_71, %c0_72, %c0_73] : memref<4x8x8xf32, #tpu.memory_space<vmem>>, vector<4x8x8xf32>
    tpu.vector_store %arg24[%c0_71, %c0_72, %c0_73], %104 {strides = array<i32>} : memref<4x8x8xf32, #tpu.memory_space<vmem>>, vector<4x8x8xf32>,
    %c0_74 = arith.constant 0 : index
    %c0_75 = arith.constant 0 : index
    %c0_76 = arith.constant 0 : index
    %106 = vector.load %arg22[%c0_74, %c0_75, %c0_76] : memref<4x8x1xf32, #tpu.memory_space<vmem>>, vector<4x8x1xf32>
    tpu.vector_store %arg22[%c0_74, %c0_75, %c0_76], %86 {strides = array<i32>} : memref<4x8x1xf32, #tpu.memory_space<vmem>>, vector<4x8x1xf32>,
    %c0_77 = arith.constant 0 : index
    %c0_78 = arith.constant 0 : index
    %c0_79 = arith.constant 0 : index
    %107 = vector.load %arg24[%c0_77, %c0_78, %c0_79] : memref<4x8x8xf32, #tpu.memory_space<vmem>>, vector<4x8x8xf32>
    %c0_80 = arith.constant 0 : index
    %c0_81 = arith.constant 0 : index
    %c0_82 = arith.constant 0 : index
    %108 = vector.load %arg23[%c0_80, %c0_81, %c0_82] : memref<4x8x1xf32, #tpu.memory_space<vmem>>, vector<4x8x1xf32>
    %109 = tpu.reciprocal %108 {approx = true} : vector<4x8x1xf32> -> vector<4x8x1xf32>
    %110 = vector.broadcast %109 : vector<4x8x1xf32> to vector<4x8x8xf32>
    %111 = arith.mulf %107, %110 : vector<4x8x8xf32>
    %112 = tpu.transpose %111, [1, 0, 2] : vector<4x8x8xf32> -> vector<8x4x8xf32>
    %113 = vector.shape_cast %112 : vector<8x4x8xf32> to vector<8x32xf32>
    %114 = arith.truncf %113 : vector<8x32xf32> to vector<8x32xbf16>
    %c0_83 = arith.constant 0 : index
    %c0_84 = arith.constant 0 : index
    %115 = vector.load %arg11[%c0_83, %c0_84] : memref<32x32xbf16, #tpu.memory_space<vmem>>, vector<32x32xbf16>
    %cst_85 = arith.constant dense<0.000000e+00> : vector<8x32xf32>
    %116 = tpu.matmul %114, %115, %cst_85 {dimension_numbers = #tpu.dot_dimension_numbers<[1], [0], [0], [1], [0, 0, 1, 1], [], []>} : vector<8x32xbf16>, vector<32x32xbf16>, vector<8x32xf32> -> vector<8x32xf32>
    %c0_86 = arith.constant 0 : index
    %c0_87 = arith.constant 0 : index
    %117 = vector.load %arg12[%c0_86, %c0_87] : memref<1x32xf32, #tpu.memory_space<vmem>>, vector<1x32xf32>
    %118 = vector.broadcast %117 : vector<1x32xf32> to vector<8x32xf32>
    %119 = arith.addf %116, %118 : vector<8x32xf32>
    %120 = arith.addf %1, %119 : vector<8x32xf32>
    %c0_88 = arith.constant 0 : index
    %c0_89 = arith.constant 0 : index
    %121 = vector.load %arg13[%c0_88, %c0_89] : memref<1x32xf32, #tpu.memory_space<vmem>>, vector<1x32xf32>
    %c0_90 = arith.constant 0 : index
    %c0_91 = arith.constant 0 : index
    %122 = vector.load %arg14[%c0_90, %c0_91] : memref<1x32xf32, #tpu.memory_space<vmem>>, vector<1x32xf32>
    %cst_92 = arith.constant dense<0.000000e+00> : vector<8xf32>
    %123 = vector.multi_reduction <add>, %120, %cst_92 [1] : vector<8x32xf32> to vector<8xf32>
    %124 = vector.shape_cast %123 : vector<8xf32> to vector<8x1xf32>
    %cst_93 = arith.constant 3.200000e+01 : f32
    %125 = vector.broadcast %cst_93 : f32 to vector<8x1xf32>
    %126 = arith.divf %124, %125 : vector<8x1xf32>
    %127 = vector.broadcast %126 : vector<8x1xf32> to vector<8x32xf32>
    %128 = arith.subf %120, %127 : vector<8x32xf32>
    %129 = arith.mulf %128, %128 : vector<8x32xf32>
    %cst_94 = arith.constant dense<0.000000e+00> : vector<8xf32>
    %130 = vector.multi_reduction <add>, %129, %cst_94 [1] : vector<8x32xf32> to vector<8xf32>
    %131 = vector.shape_cast %130 : vector<8xf32> to vector<8x1xf32>
    %cst_95 = arith.constant 3.200000e+01 : f32
    %132 = vector.broadcast %cst_95 : f32 to vector<8x1xf32>
    %133 = arith.divf %131, %132 : vector<8x1xf32>
    %134 = vector.broadcast %126 : vector<8x1xf32> to vector<8x32xf32>
    %135 = arith.subf %120, %134 : vector<8x32xf32>
    %cst_96 = arith.constant 9.99999974E-6 : f32
    %136 = vector.broadcast %cst_96 : f32 to vector<8x1xf32>
    %137 = arith.addf %133, %136 : vector<8x1xf32>
    %138 = math.rsqrt %137 : vector<8x1xf32>
    %139 = vector.broadcast %138 : vector<8x1xf32> to vector<8x32xf32>
    %140 = arith.mulf %135, %139 : vector<8x32xf32>
    %141 = vector.broadcast %121 : vector<1x32xf32> to vector<8x32xf32>
    %142 = arith.mulf %140, %141 : vector<8x32xf32>
    %143 = vector.broadcast %122 : vector<1x32xf32> to vector<8x32xf32>
    %144 = arith.addf %142, %143 : vector<8x32xf32>
    %145 = arith.truncf %144 : vector<8x32xf32> to vector<8x32xbf16>
    %c0_97 = arith.constant 0 : index
    %c0_98 = arith.constant 0 : index
    %146 = vector.load %arg15[%c0_97, %c0_98] : memref<32x64xbf16, #tpu.memory_space<vmem>>, vector<32x64xbf16>
    %cst_99 = arith.constant dense<0.000000e+00> : vector<8x64xf32>
    %147 = tpu.matmul %145, %146, %cst_99 {dimension_numbers = #tpu.dot_dimension_numbers<[1], [0], [0], [1], [0, 0, 1, 1], [], []>} : vector<8x32xbf16>, vector<32x64xbf16>, vector<8x64xf32> -> vector<8x64xf32>
    %c0_100 = arith.constant 0 : index
    %c0_101 = arith.constant 0 : index
    %148 = vector.load %arg16[%c0_100, %c0_101] : memref<1x64xf32, #tpu.memory_space<vmem>>, vector<1x64xf32>
    %149 = vector.broadcast %148 : vector<1x64xf32> to vector<8x64xf32>
    %150 = arith.addf %147, %149 : vector<8x64xf32>
    %cst_102 = arith.constant 5.000000e-01 : f32
    %151 = vector.broadcast %cst_102 : f32 to vector<8x64xf32>
    %152 = arith.mulf %151, %150 : vector<8x64xf32>
    %cst_103 = arith.constant 0.707106769 : f32
    %153 = vector.broadcast %cst_103 : f32 to vector<8x64xf32>
    %154 = arith.mulf %150, %153 : vector<8x64xf32>
    %155 = math.absf %154 : vector<8x64xf32>
    %cst_104 = arith.constant 0.327591091 : f32
    %156 = vector.broadcast %cst_104 : f32 to vector<8x64xf32>
    %157 = arith.mulf %156, %155 : vector<8x64xf32>
    %cst_105 = arith.constant 1.000000e+00 : f32
    %158 = vector.broadcast %cst_105 : f32 to vector<8x64xf32>
    %159 = arith.addf %158, %157 : vector<8x64xf32>
    %cst_106 = arith.constant 1.000000e+00 : f32
    %160 = vector.broadcast %cst_106 : f32 to vector<8x64xf32>
    %161 = arith.divf %160, %159 : vector<8x64xf32>
    %cst_107 = arith.constant 1.06140542 : f32
    %162 = vector.broadcast %cst_107 : f32 to vector<8x64xf32>
    %163 = arith.mulf %162, %161 : vector<8x64xf32>
    %cst_108 = arith.constant -1.45315206 : f32
    %164 = vector.broadcast %cst_108 : f32 to vector<8x64xf32>
    %165 = arith.addf %163, %164 : vector<8x64xf32>
    %166 = arith.mulf %165, %161 : vector<8x64xf32>
    %cst_109 = arith.constant 1.42141378 : f32
    %167 = vector.broadcast %cst_109 : f32 to vector<8x64xf32>
    %168 = arith.addf %166, %167 : vector<8x64xf32>
    %169 = arith.mulf %168, %161 : vector<8x64xf32>
    %cst_110 = arith.constant -0.284496725 : f32
    %170 = vector.broadcast %cst_110 : f32 to vector<8x64xf32>
    %171 = arith.addf %169, %170 : vector<8x64xf32>
    %172 = arith.mulf %171, %161 : vector<8x64xf32>
    %cst_111 = arith.constant 0.254829586 : f32
    %173 = vector.broadcast %cst_111 : f32 to vector<8x64xf32>
    %174 = arith.addf %172, %173 : vector<8x64xf32>
    %175 = arith.mulf %174, %161 : vector<8x64xf32>
    %cst_112 = arith.constant 0.000000e+00 : f32
    %176 = vector.broadcast %cst_112 : f32 to vector<8x64xf32>
    %177 = arith.subf %176, %155 : vector<8x64xf32>
    %178 = arith.mulf %177, %155 : vector<8x64xf32>
    %179 = math.exp %178 : vector<8x64xf32>
    %180 = arith.mulf %175, %179 : vector<8x64xf32>
    %cst_113 = arith.constant 1.000000e+00 : f32
    %181 = vector.broadcast %cst_113 : f32 to vector<8x64xf32>
    %182 = arith.subf %181, %180 : vector<8x64xf32>
    %cst_114 = arith.constant 0.000000e+00 : f32
    %183 = vector.broadcast %cst_114 : f32 to vector<8x64xf32>
    %184 = arith.cmpf olt, %154, %183 : vector<8x64xf32>
    %cst_115 = arith.constant 0.000000e+00 : f32
    %185 = vector.broadcast %cst_115 : f32 to vector<8x64xf32>
    %186 = arith.subf %185, %182 : vector<8x64xf32>
    %187 = arith.select %184, %186, %182 : vector<8x64xi1>, vector<8x64xf32>
    %cst_116 = arith.constant 1.000000e+00 : f32
    %188 = vector.broadcast %cst_116 : f32 to vector<8x64xf32>
    %189 = arith.addf %188, %187 : vector<8x64xf32>
    %190 = arith.mulf %152, %189 : vector<8x64xf32>
    %191 = arith.truncf %190 : vector<8x64xf32> to vector<8x64xbf16>
    %c0_117 = arith.constant 0 : index
    %c0_118 = arith.constant 0 : index
    %192 = vector.load %arg17[%c0_117, %c0_118] : memref<64x32xbf16, #tpu.memory_space<vmem>>, vector<64x32xbf16>
    %cst_119 = arith.constant dense<0.000000e+00> : vector<8x32xf32>
    %193 = tpu.matmul %191, %192, %cst_119 {dimension_numbers = #tpu.dot_dimension_numbers<[1], [0], [0], [1], [0, 0, 1, 1], [], []>} : vector<8x64xbf16>, vector<64x32xbf16>, vector<8x32xf32> -> vector<8x32xf32>
    %c0_120 = arith.constant 0 : index
    %c0_121 = arith.constant 0 : index
    %194 = vector.load %arg18[%c0_120, %c0_121] : memref<1x32xf32, #tpu.memory_space<vmem>>, vector<1x32xf32>
    %195 = vector.broadcast %194 : vector<1x32xf32> to vector<8x32xf32>
    %196 = arith.addf %193, %195 : vector<8x32xf32>
    %197 = arith.addf %120, %196 : vector<8x32xf32>
    %c0_122 = arith.constant 0 : index
    %c0_123 = arith.constant 0 : index
    %c0_124 = arith.constant 0 : index
    %198 = vector.load %arg19[%c0_122, %c0_123, %c0_124] : memref<1x8x32xf32, #tpu.memory_space<vmem>>, vector<1x8x32xf32>
    %199 = vector.shape_cast %198 : vector<1x8x32xf32> to vector<8x32xf32>
    %200 = vector.shape_cast %197 : vector<8x32xf32> to vector<1x8x32xf32>
    tpu.vector_store %arg19[%c0_122, %c0_123, %c0_124], %200 {strides = array<i32>} : memref<1x8x32xf32, #tpu.memory_space<vmem>>, vector<1x8x32xf32>,
    return
  }
  func.func @transform_0(%arg0: i32, %arg1: i32) -> (i32, i32, i32) {
    %c0_i32 = arith.constant 0 : i32
    %c0_i32_0 = arith.constant 0 : i32
    return %arg0, %arg1, %c0_i32 : i32, i32, i32
  }
  func.func @transform_1(%arg0: i32, %arg1: i32) -> (i32, i32) {
    %c0_i32 = arith.constant 0 : i32
    %c0_i32_0 = arith.constant 0 : i32
    %c0_i32_1 = arith.constant 0 : i32
    return %c0_i32, %c0_i32_0 : i32, i32
  }
  func.func @transform_2(%arg0: i32, %arg1: i32) -> (i32, i32) {
    %c0_i32 = arith.constant 0 : i32
    %c0_i32_0 = arith.constant 0 : i32
    %c0_i32_1 = arith.constant 0 : i32
    return %c0_i32, %c0_i32_0 : i32, i32
  }
  func.func @transform_3(%arg0: i32, %arg1: i32) -> (i32, i32) {
    %c0_i32 = arith.constant 0 : i32
    %c0_i32_0 = arith.constant 0 : i32
    %c0_i32_1 = arith.constant 0 : i32
    return %c0_i32, %c0_i32_0 : i32, i32
  }
  func.func @transform_4(%arg0: i32, %arg1: i32) -> (i32, i32) {
    %c0_i32 = arith.constant 0 : i32
    %c0_i32_0 = arith.constant 0 : i32
    %c0_i32_1 = arith.constant 0 : i32
    return %c0_i32, %c0_i32_0 : i32, i32
  }
  func.func @transform_5(%arg0: i32, %arg1: i32) -> (i32, i32) {
    %c0_i32 = arith.constant 0 : i32
    %c0_i32_0 = arith.constant 0 : i32
    %c0_i32_1 = arith.constant 0 : i32
    return %c0_i32, %c0_i32_0 : i32, i32
  }
  func.func @transform_6(%arg0: i32, %arg1: i32) -> (i32, i32) {
    %c0_i32 = arith.constant 0 : i32
    %c0_i32_0 = arith.constant 0 : i32
    %c0_i32_1 = arith.constant 0 : i32
    return %c0_i32, %c0_i32_0 : i32, i32
  }
  func.func @transform_7(%arg0: i32, %arg1: i32) -> (i32, i32) {
    %c0_i32 = arith.constant 0 : i32
    %c0_i32_0 = arith.constant 0 : i32
    %c0_i32_1 = arith.constant 0 : i32
    return %c0_i32, %c0_i32_0 : i32, i32
  }
  func.func @transform_8(%arg0: i32, %arg1: i32) -> (i32, i32) {
    %c0_i32 = arith.constant 0 : i32
    %c0_i32_0 = arith.constant 0 : i32
    %c0_i32_1 = arith.constant 0 : i32
    return %c0_i32, %c0_i32_0 : i32, i32
  }
  func.func @transform_9(%arg0: i32, %arg1: i32) -> (i32, i32) {
    %c0_i32 = arith.constant 0 : i32
    %c0_i32_0 = arith.constant 0 : i32
    %c0_i32_1 = arith.constant 0 : i32
    return %c0_i32, %c0_i32_0 : i32, i32
  }
  func.func @transform_10(%arg0: i32, %arg1: i32) -> (i32, i32) {
    %c0_i32 = arith.constant 0 : i32
    %c0_i32_0 = arith.constant 0 : i32
    %c0_i32_1 = arith.constant 0 : i32
    return %c0_i32, %c0_i32_0 : i32, i32
  }
  func.func @transform_11(%arg0: i32, %arg1: i32) -> (i32, i32) {
    %c0_i32 = arith.constant 0 : i32
    %c0_i32_0 = arith.constant 0 : i32
    %c0_i32_1 = arith.constant 0 : i32
    return %c0_i32, %c0_i32_0 : i32, i32
  }
  func.func @transform_12(%arg0: i32, %arg1: i32) -> (i32, i32) {
    %c0_i32 = arith.constant 0 : i32
    %c0_i32_0 = arith.constant 0 : i32
    %c0_i32_1 = arith.constant 0 : i32
    return %c0_i32, %c0_i32_0 : i32, i32
  }
  func.func @transform_13(%arg0: i32, %arg1: i32) -> (i32, i32) {
    %c0_i32 = arith.constant 0 : i32
    %c0_i32_0 = arith.constant 0 : i32
    %c0_i32_1 = arith.constant 0 : i32
    return %c0_i32, %c0_i32_0 : i32, i32
  }
  func.func @transform_14(%arg0: i32, %arg1: i32) -> (i32, i32) {
    %c0_i32 = arith.constant 0 : i32
    %c0_i32_0 = arith.constant 0 : i32
    %c0_i32_1 = arith.constant 0 : i32
    return %c0_i32, %c0_i32_0 : i32, i32
  }
  func.func @transform_15(%arg0: i32, %arg1: i32) -> (i32, i32) {
    %c0_i32 = arith.constant 0 : i32
    %c0_i32_0 = arith.constant 0 : i32
    %c0_i32_1 = arith.constant 0 : i32
    return %c0_i32, %c0_i32_0 : i32, i32
  }
  func.func @transform_16(%arg0: i32, %arg1: i32) -> (i32, i32) {
    %c0_i32 = arith.constant 0 : i32
    %c0_i32_0 = arith.constant 0 : i32
    %c0_i32_1 = arith.constant 0 : i32
    return %c0_i32, %c0_i32_0 : i32, i32
  }
  func.func @transform_17(%arg0: i32, %arg1: i32) -> (i32, i32, i32) {
    %c0_i32 = arith.constant 0 : i32
    %c0_i32_0 = arith.constant 0 : i32
    return %arg0, %arg1, %c0_i32 : i32, i32, i32
  }
}

module attributes {stable_mosaic.version = 11 : i64} {
  func.func @decoder_block_kernel(%arg0: i32, %arg1: i32, %arg2: memref<1x8x32xf32, #tpu.memory_space<vmem>>, %arg3: memref<1x32xf32, #tpu.memory_space<vmem>>, %arg4: memref<1x32xf32, #tpu.memory_space<vmem>>, %arg5: memref<32x32xbf16, #tpu.memory_space<vmem>>, %arg6: memref<32x32xbf16, #tpu.memory_space<vmem>>, %arg7: memref<32x32xbf16, #tpu.memory_space<vmem>>, %arg8: memref<1x32xf32, #tpu.memory_space<vmem>>, %arg9: memref<1x32xf32, #tpu.memory_space<vmem>>, %arg10: memref<1x32xf32, #tpu.memory_space<vmem>>, %arg11: memref<32x32xbf16, #tpu.memory_space<vmem>>, %arg12: memref<1x32xf32, #tpu.memory_space<vmem>>, %arg13: memref<1x32xf32, #tpu.memory_space<vmem>>, %arg14: memref<1x32xf32, #tpu.memory_space<vmem>>, %arg15: memref<32x64xbf16, #tpu.memory_space<vmem>>, %arg16: memref<1x64xf32, #tpu.memory_space<vmem>>, %arg17: memref<64x32xbf16, #tpu.memory_space<vmem>>, %arg18: memref<1x32xf32, #tpu.memory_space<vmem>>, %arg19: memref<1x8x32xf32, #tpu.memory_space<vmem>>, %arg20: memref<1x4x8x8xbf16, #tpu.memory_space<vmem>>, %arg21: memref<1x4x8x8xbf16, #tpu.memory_space<vmem>>, %arg22: memref<4x8x1xf32, #tpu.memory_space<vmem>>, %arg23: memref<4x8x1xf32, #tpu.memory_space<vmem>>, %arg24: memref<4x8x8xf32, #tpu.memory_space<vmem>>) attributes {dimension_semantics = [#tpu.dimension_semantics<parallel>, #tpu.dimension_semantics<arbitrary>], iteration_bounds = array<i64: 2, 1>, scalar_prefetch = 0 : i64, scratch_operands = 5 : i64, tpu.core_type = #tpu.core_type<tc>, window_params = [{transform_indices = @transform_0, window_bounds = array<i64: 1, 8, 32>}, {pipeline_mode = #tpu.pipeline_mode<synchronous>, transform_indices = @transform_1, window_bounds = array<i64: 1, 32>}, {pipeline_mode = #tpu.pipeline_mode<synchronous>, transform_indices = @transform_2, window_bounds = array<i64: 1, 32>}, {pipeline_mode = #tpu.pipeline_mode<synchronous>, transform_indices = @transform_3, window_bounds = array<i64: 32, 32>}, {pipeline_mode = #tpu.pipeline_mode<synchronous>, transform_indices = @transform_4, window_bounds = array<i64: 32, 32>}, {pipeline_mode = #tpu.pipeline_mode<synchronous>, transform_indices = @transform_5, window_bounds = array<i64: 32, 32>}, {pipeline_mode = #tpu.pipeline_mode<synchronous>, transform_indices = @transform_6, window_bounds = array<i64: 1, 32>}, {pipeline_mode = #tpu.pipeline_mode<synchronous>, transform_indices = @transform_7, window_bounds = array<i64: 1, 32>}, {pipeline_mode = #tpu.pipeline_mode<synchronous>, transform_indices = @transform_8, window_bounds = array<i64: 1, 32>}, {pipeline_mode = #tpu.pipeline_mode<synchronous>, transform_indices = @transform_9, window_bounds = array<i64: 32, 32>}, {pipeline_mode = #tpu.pipeline_mode<synchronous>, transform_indices = @transform_10, window_bounds = array<i64: 1, 32>}, {pipeline_mode = #tpu.pipeline_mode<synchronous>, transform_indices = @transform_11, window_bounds = array<i64: 1, 32>}, {pipeline_mode = #tpu.pipeline_mode<synchronous>, transform_indices = @transform_12, window_bounds = array<i64: 1, 32>}, {pipeline_mode = #tpu.pipeline_mode<synchronous>, transform_indices = @transform_13, window_bounds = array<i64: 32, 64>}, {pipeline_mode = #tpu.pipeline_mode<synchronous>, transform_indices = @transform_14, window_bounds = array<i64: 1, 64>}, {pipeline_mode = #tpu.pipeline_mode<synchronous>, transform_indices = @transform_15, window_bounds = array<i64: 64, 32>}, {pipeline_mode = #tpu.pipeline_mode<synchronous>, transform_indices = @transform_16, window_bounds = array<i64: 1, 32>}, {transform_indices = @transform_17, window_bounds = array<i64: 1, 8, 32>}]} {
    %c0 = arith.constant 0 : index
    %c0_0 = arith.constant 0 : index
    %c0_1 = arith.constant 0 : index
    %0 = vector.load %arg2[%c0, %c0_0, %c0_1] : memref<1x8x32xf32, #tpu.memory_space<vmem>>, vector<1x8x32xf32>
    %1 = vector.shape_cast %0 : vector<1x8x32xf32> to vector<8x32xf32>
    %c0_2 = arith.constant 0 : index
    %c0_3 = arith.constant 0 : index
    %2 = vector.load %arg3[%c0_2, %c0_3] : memref<1x32xf32, #tpu.memory_space<vmem>>, vector<1x32xf32>
    %c0_4 = arith.constant 0 : index
    %c0_5 = arith.constant 0 : index
    %3 = vector.load %arg4[%c0_4, %c0_5] : memref<1x32xf32, #tpu.memory_space<vmem>>, vector<1x32xf32>
    %cst = arith.constant dense<0.000000e+00> : vector<8xf32>
    %4 = vector.multi_reduction <add>, %1, %cst [1] : vector<8x32xf32> to vector<8xf32>
    %5 = vector.shape_cast %4 : vector<8xf32> to vector<8x1xf32>
    %cst_6 = arith.constant 3.200000e+01 : f32
    %6 = vector.broadcast %cst_6 : f32 to vector<8x1xf32>
    %7 = arith.divf %5, %6 : vector<8x1xf32>
    %8 = vector.broadcast %7 : vector<8x1xf32> to vector<8x32xf32>
    %9 = arith.subf %1, %8 : vector<8x32xf32>
    %10 = arith.mulf %9, %9 : vector<8x32xf32>
    %cst_7 = arith.constant dense<0.000000e+00> : vector<8xf32>
    %11 = vector.multi_reduction <add>, %10, %cst_7 [1] : vector<8x32xf32> to vector<8xf32>
    %12 = vector.shape_cast %11 : vector<8xf32> to vector<8x1xf32>
    %cst_8 = arith.constant 3.200000e+01 : f32
    %13 = vector.broadcast %cst_8 : f32 to vector<8x1xf32>
    %14 = arith.divf %12, %13 : vector<8x1xf32>
    %15 = vector.broadcast %7 : vector<8x1xf32> to vector<8x32xf32>
    %16 = arith.subf %1, %15 : vector<8x32xf32>
    %cst_9 = arith.constant 9.99999974E-6 : f32
    %17 = vector.broadcast %cst_9 : f32 to vector<8x1xf32>
    %18 = arith.addf %14, %17 : vector<8x1xf32>
    %19 = math.rsqrt %18 : vector<8x1xf32>
    %20 = vector.broadcast %19 : vector<8x1xf32> to vector<8x32xf32>
    %21 = arith.mulf %16, %20 : vector<8x32xf32>
    %22 = vector.broadcast %2 : vector<1x32xf32> to vector<8x32xf32>
    %23 = arith.mulf %21, %22 : vector<8x32xf32>
    %24 = vector.broadcast %3 : vector<1x32xf32> to vector<8x32xf32>
    %25 = arith.addf %23, %24 : vector<8x32xf32>
    %26 = arith.truncf %25 : vector<8x32xf32> to vector<8x32xbf16>
    %c0_10 = arith.constant 0 : index
    %c0_11 = arith.constant 0 : index
    %27 = vector.load %arg5[%c0_10, %c0_11] : memref<32x32xbf16, #tpu.memory_space<vmem>>, vector<32x32xbf16>
    %cst_12 = arith.constant dense<0.000000e+00> : vector<8x32xf32>
    %28 = tpu.matmul %26, %27, %cst_12 {dimension_numbers = #tpu.dot_dimension_numbers<[1], [0], [0], [1], [0, 0, 1, 1], [], []>} : vector<8x32xbf16>, vector<32x32xbf16>, vector<8x32xf32> -> vector<8x32xf32>
    %c0_13 = arith.constant 0 : index
    %c0_14 = arith.constant 0 : index
    %29 = vector.load %arg8[%c0_13, %c0_14] : memref<1x32xf32, #tpu.memory_space<vmem>>, vector<1x32xf32>
    %30 = vector.broadcast %29 : vector<1x32xf32> to vector<8x32xf32>
    %31 = arith.addf %28, %30 : vector<8x32xf32>
    %cst_15 = arith.constant 0.353553385 : f32
    %32 = vector.broadcast %cst_15 : f32 to vector<8x32xf32>
    %33 = arith.mulf %31, %32 : vector<8x32xf32>
    %34 = arith.truncf %33 : vector<8x32xf32> to vector<8x32xbf16>
    %35 = vector.shape_cast %34 : vector<8x32xbf16> to vector<8x4x8xbf16>
    %36 = tpu.transpose %35, [1, 0, 2] : vector<8x4x8xbf16> -> vector<4x8x8xbf16>
    %c0_16 = arith.constant 0 : index
    %c0_17 = arith.constant 0 : index
    %37 = vector.load %arg6[%c0_16, %c0_17] : memref<32x32xbf16, #tpu.memory_space<vmem>>, vector<32x32xbf16>
    %cst_18 = arith.constant dense<0.000000e+00> : vector<8x32xf32>
    %38 = tpu.matmul %26, %37, %cst_18 {dimension_numbers = #tpu.dot_dimension_numbers<[1], [0], [0], [1], [0, 0, 1, 1], [], []>} : vector<8x32xbf16>, vector<32x32xbf16>, vector<8x32xf32> -> vector<8x32xf32>
    %c0_19 = arith.constant 0 : index
    %c0_20 = arith.constant 0 : index
    %39 = vector.load %arg9[%c0_19, %c0_20] : memref<1x32xf32, #tpu.memory_space<vmem>>, vector<1x32xf32>
    %40 = vector.broadcast %39 : vector<1x32xf32> to vector<8x32xf32>
    %41 = arith.addf %38, %40 : vector<8x32xf32>
    %42 = arith.truncf %41 : vector<8x32xf32> to vector<8x32xbf16>
    %43 = tpu.transpose %42, [1, 0] : vector<8x32xbf16> -> vector<32x8xbf16>
    %44 = vector.shape_cast %43 : vector<32x8xbf16> to vector<4x8x8xbf16>
    %c0_21 = arith.constant 0 : index
    %c0_22 = arith.constant 0 : index
    %45 = vector.load %arg7[%c0_21, %c0_22] : memref<32x32xbf16, #tpu.memory_space<vmem>>, vector<32x32xbf16>
    %cst_23 = arith.constant dense<0.000000e+00> : vector<8x32xf32>
    %46 = tpu.matmul %26, %45, %cst_23 {dimension_numbers = #tpu.dot_dimension_numbers<[1], [0], [0], [1], [0, 0, 1, 1], [], []>} : vector<8x32xbf16>, vector<32x32xbf16>, vector<8x32xf32> -> vector<8x32xf32>
    %c0_24 = arith.constant 0 : index
    %c0_25 = arith.constant 0 : index
    %47 = vector.load %arg10[%c0_24, %c0_25] : memref<1x32xf32, #tpu.memory_space<vmem>>, vector<1x32xf32>
    %48 = vector.broadcast %47 : vector<1x32xf32> to vector<8x32xf32>
    %49 = arith.addf %46, %48 : vector<8x32xf32>
    %50 = arith.truncf %49 : vector<8x32xf32> to vector<8x32xbf16>
    %51 = vector.shape_cast %50 : vector<8x32xbf16> to vector<8x4x8xbf16>
    %52 = tpu.transpose %51, [1, 0, 2] : vector<8x4x8xbf16> -> vector<4x8x8xbf16>
    %53 = arith.index_cast %arg1 : i32 to index
    %c0_26 = arith.constant 0 : index
    %c0_27 = arith.constant 0 : index
    %c0_28 = arith.constant 0 : index
    %54 = vector.load %arg20[%53, %c0_26, %c0_27, %c0_28] : memref<1x4x8x8xbf16, #tpu.memory_space<vmem>>, vector<1x4x8x8xbf16>
    %55 = vector.shape_cast %54 : vector<1x4x8x8xbf16> to vector<4x8x8xbf16>
    %56 = vector.shape_cast %44 : vector<4x8x8xbf16> to vector<1x4x8x8xbf16>
    tpu.vector_store %arg20[%53, %c0_26, %c0_27, %c0_28], %56 {strides = array<i32>} : memref<1x4x8x8xbf16, #tpu.memory_space<vmem>>, vector<1x4x8x8xbf16>,
    %57 = arith.index_cast %arg1 : i32 to index
    %c0_29 = arith.constant 0 : index
    %c0_30 = arith.constant 0 : index
    %c0_31 = arith.constant 0 : index
    %58 = vector.load %arg21[%57, %c0_29, %c0_30, %c0_31] : memref<1x4x8x8xbf16, #tpu.memory_space<vmem>>, vector<1x4x8x8xbf16>
    %59 = vector.shape_cast %58 : vector<1x4x8x8xbf16> to vector<4x8x8xbf16>
    %60 = vector.shape_cast %52 : vector<4x8x8xbf16> to vector<1x4x8x8xbf16>
    tpu.vector_store %arg21[%57, %c0_29, %c0_30, %c0_31], %60 {strides = array<i32>} : memref<1x4x8x8xbf16, #tpu.memory_space<vmem>>, vector<1x4x8x8xbf16>,
    %cst_32 = arith.constant -1.000000e+30 : f32
    %61 = vector.broadcast %cst_32 : f32 to vector<4x8x1xf32>
    %c0_33 = arith.constant 0 : index
    %c0_34 = arith.constant 0 : index
    %c0_35 = arith.constant 0 : index
    %62 = vector.load %arg22[%c0_33, %c0_34, %c0_35] : memref<4x8x1xf32, #tpu.memory_space<vmem>>, vector<4x8x1xf32>
    tpu.vector_store %arg22[%c0_33, %c0_34, %c0_35], %61 {strides = array<i32>} : memref<4x8x1xf32, #tpu.memory_space<vmem>>, vector<4x8x1xf32>,
    %cst_36 = arith.constant 0.000000e+00 : f32
    %63 = vector.broadcast %cst_36 : f32 to vector<4x8x1xf32>
    %c0_37 = arith.constant 0 : index
    %c0_38 = arith.constant 0 : index
    %c0_39 = arith.constant 0 : index
    %64 = vector.load %arg23[%c0_37, %c0_38, %c0_39] : memref<4x8x1xf32, #tpu.memory_space<vmem>>, vector<4x8x1xf32>
    tpu.vector_store %arg23[%c0_37, %c0_38, %c0_39], %63 {strides = array<i32>} : memref<4x8x1xf32, #tpu.memory_space<vmem>>, vector<4x8x1xf32>,
    %cst_40 = arith.constant 0.000000e+00 : f32
    %65 = vector.broadcast %cst_40 : f32 to vector<4x8x8xf32>
    %c0_41 = arith.constant 0 : index
    %c0_42 = arith.constant 0 : index
    %c0_43 = arith.constant 0 : index
    %66 = vector.load %arg24[%c0_41, %c0_42, %c0_43] : memref<4x8x8xf32, #tpu.memory_space<vmem>>, vector<4x8x8xf32>
    tpu.vector_store %arg24[%c0_41, %c0_42, %c0_43], %65 {strides = array<i32>} : memref<4x8x8xf32, #tpu.memory_space<vmem>>, vector<4x8x8xf32>,
    %c0_i32 = arith.constant 0 : i32
    %67 = arith.subi %arg1, %c0_i32 : i32
    %c1_i32 = arith.constant 1 : i32
    %c1_i32_44 = arith.constant 1 : i32
    %68 = arith.subi %c1_i32, %c1_i32_44 : i32
    %69 = arith.addi %67, %68 : i32
    %c1_i32_45 = arith.constant 1 : i32
    %70 = arith.divsi %69, %c1_i32_45 : i32
    %c1_i32_46 = arith.constant 1 : i32
    %c0_i32_47 = arith.constant 0 : i32
    %c0_i32_48 = arith.constant 0 : i32
    %71 = arith.subi %70, %c0_i32_48 : i32
    %72 = arith.addi %c0_i32_48, %71 : i32
    %c1_i32_49 = arith.constant 1 : i32
    scf.for %arg25 = %c0_i32_48 to %72 step %c1_i32_49  : i32 {
      %201 = arith.muli %arg25, %c1_i32_46 : i32
      %202 = arith.addi %c0_i32_47, %201 : i32
      %203 = arith.index_cast %202 : i32 to index
      %c0_125 = arith.constant 0 : index
      %c0_126 = arith.constant 0 : index
      %c0_127 = arith.constant 0 : index
      %204 = vector.load %arg20[%203, %c0_125, %c0_126, %c0_127] : memref<1x4x8x8xbf16, #tpu.memory_space<vmem>>, vector<1x4x8x8xbf16>
      %205 = vector.shape_cast %204 : vector<1x4x8x8xbf16> to vector<4x8x8xbf16>
      "tpu.trace_start"() <{level = 10 : i32, message = "hqd,hdk->hqk"}> : () -> ()
      %cst_128 = arith.constant dense<0.000000e+00> : vector<4x8x8xf32>
      %206 = tpu.matmul %36, %205, %cst_128 {dimension_numbers = #tpu.dot_dimension_numbers<[2], [1], [1], [2], [0, 0, 0, 1, 1, 2], [0], [0]>} : vector<4x8x8xbf16>, vector<4x8x8xbf16>, vector<4x8x8xf32> -> vector<4x8x8xf32>
      "tpu.trace_stop"() : () -> ()
      %207 = arith.index_cast %202 : i32 to index
      %c0_129 = arith.constant 0 : index
      %c0_130 = arith.constant 0 : index
      %c0_131 = arith.constant 0 : index
      %208 = vector.load %arg21[%207, %c0_129, %c0_130, %c0_131] : memref<1x4x8x8xbf16, #tpu.memory_space<vmem>>, vector<1x4x8x8xbf16>
      %209 = vector.shape_cast %208 : vector<1x4x8x8xbf16> to vector<4x8x8xbf16>
      %c0_132 = arith.constant 0 : index
      %c0_133 = arith.constant 0 : index
      %c0_134 = arith.constant 0 : index
      %210 = vector.load %arg22[%c0_132, %c0_133, %c0_134] : memref<4x8x1xf32, #tpu.memory_space<vmem>>, vector<4x8x1xf32>
      %cst_135 = arith.constant dense<0xFF800000> : vector<4x8xf32>
      %211 = vector.multi_reduction <maximumf>, %206, %cst_135 [2] : vector<4x8x8xf32> to vector<4x8xf32>
      %212 = vector.shape_cast %211 : vector<4x8xf32> to vector<4x8x1xf32>
      %213 = arith.maximumf %210, %212 : vector<4x8x1xf32>
      %c0_136 = arith.constant 0 : index
      %c0_137 = arith.constant 0 : index
      %c0_138 = arith.constant 0 : index
      %214 = vector.load %arg22[%c0_136, %c0_137, %c0_138] : memref<4x8x1xf32, #tpu.memory_space<vmem>>, vector<4x8x1xf32>
      %215 = arith.subf %214, %213 : vector<4x8x1xf32>
      %216 = math.exp %215 : vector<4x8x1xf32>
      %217 = vector.broadcast %213 : vector<4x8x1xf32> to vector<4x8x8xf32>
      %218 = arith.subf %206, %217 : vector<4x8x8xf32>
      %219 = math.exp %218 : vector<4x8x8xf32>
      %c0_139 = arith.constant 0 : index
      %c0_140 = arith.constant 0 : index
      %c0_141 = arith.constant 0 : index
      %220 = vector.load %arg23[%c0_139, %c0_140, %c0_141] : memref<4x8x1xf32, #tpu.memory_space<vmem>>, vector<4x8x1xf32>
      %221 = arith.mulf %216, %220 : vector<4x8x1xf32>
      %cst_142 = arith.constant dense<0.000000e+00> : vector<4x8xf32>
      %222 = vector.multi_reduction <add>, %219, %cst_142 [2] : vector<4x8x8xf32> to vector<4x8xf32>
      %223 = vector.shape_cast %222 : vector<4x8xf32> to vector<4x8x1xf32>
      %224 = arith.addf %221, %223 : vector<4x8x1xf32>
      %c0_143 = arith.constant 0 : index
      %c0_144 = arith.constant 0 : index
      %c0_145 = arith.constant 0 : index
      %225 = vector.load %arg23[%c0_143, %c0_144, %c0_145] : memref<4x8x1xf32, #tpu.memory_space<vmem>>, vector<4x8x1xf32>
      tpu.vector_store %arg23[%c0_143, %c0_144, %c0_145], %224 {strides = array<i32>} : memref<4x8x1xf32, #tpu.memory_space<vmem>>, vector<4x8x1xf32>,
      %c0_146 = arith.constant 0 : index
      %c0_147 = arith.constant 0 : index
      %c0_148 = arith.constant 0 : index
      %226 = vector.load %arg24[%c0_146, %c0_147, %c0_148] : memref<4x8x8xf32, #tpu.memory_space<vmem>>, vector<4x8x8xf32>
      %227 = vector.broadcast %216 : vector<4x8x1xf32> to vector<4x8x8xf32>
      %228 = arith.mulf %227, %226 : vector<4x8x8xf32>
      %229 = arith.truncf %219 : vector<4x8x8xf32> to vector<4x8x8xbf16>
      "tpu.trace_start"() <{level = 10 : i32, message = "hqk,hkd->hqd"}> : () -> ()
      %cst_149 = arith.constant dense<0.000000e+00> : vector<4x8x8xf32>
      %230 = tpu.matmul %229, %209, %cst_149 {dimension_numbers = #tpu.dot_dimension_numbers<[2], [1], [1], [2], [0, 0, 0, 1, 1, 2], [0], [0]>} : vector<4x8x8xbf16>, vector<4x8x8xbf16>, vector<4x8x8xf32> -> vector<4x8x8xf32>
      "tpu.trace_stop"() : () -> ()
      %231 = arith.addf %228, %230 : vector<4x8x8xf32>
      %c0_150 = arith.constant 0 : index
      %c0_151 = arith.constant 0 : index
      %c0_152 = arith.constant 0 : index
      %232 = vector.load %arg24[%c0_150, %c0_151, %c0_152] : memref<4x8x8xf32, #tpu.memory_space<vmem>>, vector<4x8x8xf32>
      tpu.vector_store %arg24[%c0_150, %c0_151, %c0_152], %231 {strides = array<i32>} : memref<4x8x8xf32, #tpu.memory_space<vmem>>, vector<4x8x8xf32>,
      %c0_153 = arith.constant 0 : index
      %c0_154 = arith.constant 0 : index
      %c0_155 = arith.constant 0 : index
      %233 = vector.load %arg22[%c0_153, %c0_154, %c0_155] : memref<4x8x1xf32, #tpu.memory_space<vmem>>, vector<4x8x1xf32>
      tpu.vector_store %arg22[%c0_153, %c0_154, %c0_155], %213 {strides = array<i32>} : memref<4x8x1xf32, #tpu.memory_space<vmem>>, vector<4x8x1xf32>,
    }
    %73 = tpu.iota {dimensions = array<i32: 0>} : vector<8x8xi32>
    %74 = tpu.iota {dimensions = array<i32: 1>} : vector<8x8xi32>
    %75 = arith.cmpi sgt, %74, %73 : vector<8x8xi32>
    %cst_50 = arith.constant -1.000000e+30 : f32
    %cst_51 = arith.constant 0.000000e+00 : f32
    %76 = vector.broadcast %cst_50 : f32 to vector<8x8xf32>
    %77 = vector.broadcast %cst_51 : f32 to vector<8x8xf32>
    %78 = arith.select %75, %76, %77 : vector<8x8xi1>, vector<8x8xf32>
    "tpu.trace_start"() <{level = 10 : i32, message = "hqd,hdk->hqk"}> : () -> ()
    %cst_52 = arith.constant dense<0.000000e+00> : vector<4x8x8xf32>
    %79 = tpu.matmul %36, %44, %cst_52 {dimension_numbers = #tpu.dot_dimension_numbers<[2], [1], [1], [2], [0, 0, 0, 1, 1, 2], [0], [0]>} : vector<4x8x8xbf16>, vector<4x8x8xbf16>, vector<4x8x8xf32> -> vector<4x8x8xf32>
    "tpu.trace_stop"() : () -> ()
    %80 = vector.shape_cast %78 : vector<8x8xf32> to vector<1x8x8xf32>
    %81 = vector.broadcast %80 : vector<1x8x8xf32> to vector<4x8x8xf32>
    %82 = arith.addf %79, %81 : vector<4x8x8xf32>
    %c0_53 = arith.constant 0 : index
    %c0_54 = arith.constant 0 : index
    %c0_55 = arith.constant 0 : index
    %83 = vector.load %arg22[%c0_53, %c0_54, %c0_55] : memref<4x8x1xf32, #tpu.memory_space<vmem>>, vector<4x8x1xf32>
    %cst_56 = arith.constant dense<0xFF800000> : vector<4x8xf32>
    %84 = vector.multi_reduction <maximumf>, %82, %cst_56 [2] : vector<4x8x8xf32> to vector<4x8xf32>
    %85 = vector.shape_cast %84 : vector<4x8xf32> to vector<4x8x1xf32>
    %86 = arith.maximumf %83, %85 : vector<4x8x1xf32>
    %c0_57 = arith.constant 0 : index
    %c0_58 = arith.constant 0 : index
    %c0_59 = arith.constant 0 : index
    %87 = vector.load %arg22[%c0_57, %c0_58, %c0_59] : memref<4x8x1xf32, #tpu.memory_space<vmem>>, vector<4x8x1xf32>
    %88 = arith.subf %87, %86 : vector<4x8x1xf32>
    %89 = math.exp %88 : vector<4x8x1xf32>
    %90 = vector.broadcast %86 : vector<4x8x1xf32> to vector<4x8x8xf32>
    %91 = arith.subf %82, %90 : vector<4x8x8xf32>
    %92 = math.exp %91 : vector<4x8x8xf32>
    %c0_60 = arith.constant 0 : index
    %c0_61 = arith.constant 0 : index
    %c0_62 = arith.constant 0 : index
    %93 = vector.load %arg23[%c0_60, %c0_61, %c0_62] : memref<4x8x1xf32, #tpu.memory_space<vmem>>, vector<4x8x1xf32>
    %94 = arith.mulf %89, %93 : vector<4x8x1xf32>
    %cst_63 = arith.constant dense<0.000000e+00> : vector<4x8xf32>
    %95 = vector.multi_reduction <add>, %92, %cst_63 [2] : vector<4x8x8xf32> to vector<4x8xf32>
    %96 = vector.shape_cast %95 : vector<4x8xf32> to vector<4x8x1xf32>
    %97 = arith.addf %94, %96 : vector<4x8x1xf32>
    %c0_64 = arith.constant 0 : index
    %c0_65 = arith.constant 0 : index
    %c0_66 = arith.constant 0 : index
    %98 = vector.load %arg23[%c0_64, %c0_65, %c0_66] : memref<4x8x1xf32, #tpu.memory_space<vmem>>, vector<4x8x1xf32>
    tpu.vector_store %arg23[%c0_64, %c0_65, %c0_66], %97 {strides = array<i32>} : memref<4x8x1xf32, #tpu.memory_space<vmem>>, vector<4x8x1xf32>,
    %c0_67 = arith.constant 0 : index
    %c0_68 = arith.constant 0 : index
    %c0_69 = arith.constant 0 : index
    %99 = vector.load %arg24[%c0_67, %c0_68, %c0_69] : memref<4x8x8xf32, #tpu.memory_space<vmem>>, vector<4x8x8xf32>
    %100 = vector.broadcast %89 : vector<4x8x1xf32> to vector<4x8x8xf32>
    %101 = arith.mulf %100, %99 : vector<4x8x8xf32>
    %102 = arith.truncf %92 : vector<4x8x8xf32> to vector<4x8x8xbf16>
    "tpu.trace_start"() <{level = 10 : i32, message = "hqk,hkd->hqd"}> : () -> ()
    %cst_70 = arith.constant dense<0.000000e+00> : vector<4x8x8xf32>
    %103 = tpu.matmul %102, %52, %cst_70 {dimension_numbers = #tpu.dot_dimension_numbers<[2], [1], [1], [2], [0, 0, 0, 1, 1, 2], [0], [0]>} : vector<4x8x8xbf16>, vector<4x8x8xbf16>, vector<4x8x8xf32> -> vector<4x8x8xf32>
    "tpu.trace_stop"() : () -> ()
    %104 = arith.addf %101, %103 : vector<4x8x8xf32>
    %c0_71 = arith.constant 0 : index
    %c0_72 = arith.constant 0 : index
    %c0_73 = arith.constant 0 : index
    %105 = vector.load %arg24[%c0_71, %c0_72, %c0_73] : memref<4x8x8xf32, #tpu.memory_space<vmem>>, vector<4x8x8xf32>
    tpu.vector_store %arg24[%c0_71, %c0_72, %c0_73], %104 {strides = array<i32>} : memref<4x8x8xf32, #tpu.memory_space<vmem>>, vector<4x8x8xf32>,
    %c0_74 = arith.constant 0 : index
    %c0_75 = arith.constant 0 : index
    %c0_76 = arith.constant 0 : index
    %106 = vector.load %arg22[%c0_74, %c0_75, %c0_76] : memref<4x8x1xf32, #tpu.memory_space<vmem>>, vector<4x8x1xf32>
    tpu.vector_store %arg22[%c0_74, %c0_75, %c0_76], %86 {strides = array<i32>} : memref<4x8x1xf32, #tpu.memory_space<vmem>>, vector<4x8x1xf32>,
    %c0_77 = arith.constant 0 : index
    %c0_78 = arith.constant 0 : index
    %c0_79 = arith.constant 0 : index
    %107 = vector.load %arg24[%c0_77, %c0_78, %c0_79] : memref<4x8x8xf32, #tpu.memory_space<vmem>>, vector<4x8x8xf32>
    %c0_80 = arith.constant 0 : index
    %c0_81 = arith.constant 0 : index
    %c0_82 = arith.constant 0 : index
    %108 = vector.load %arg23[%c0_80, %c0_81, %c0_82] : memref<4x8x1xf32, #tpu.memory_space<vmem>>, vector<4x8x1xf32>
    %109 = tpu.reciprocal %108 {approx = true} : vector<4x8x1xf32> -> vector<4x8x1xf32>
    %110 = vector.broadcast %109 : vector<4x8x1xf32> to vector<4x8x8xf32>
    %111 = arith.mulf %107, %110 : vector<4x8x8xf32>
    %112 = tpu.transpose %111, [1, 0, 2] : vector<4x8x8xf32> -> vector<8x4x8xf32>
    %113 = vector.shape_cast %112 : vector<8x4x8xf32> to vector<8x32xf32>
    %114 = arith.truncf %113 : vector<8x32xf32> to vector<8x32xbf16>
    %c0_83 = arith.constant 0 : index
    %c0_84 = arith.constant 0 : index
    %115 = vector.load %arg11[%c0_83, %c0_84] : memref<32x32xbf16, #tpu.memory_space<vmem>>, vector<32x32xbf16>
    %cst_85 = arith.constant dense<0.000000e+00> : vector<8x32xf32>
    %116 = tpu.matmul %114, %115, %cst_85 {dimension_numbers = #tpu.dot_dimension_numbers<[1], [0], [0], [1], [0, 0, 1, 1], [], []>} : vector<8x32xbf16>, vector<32x32xbf16>, vector<8x32xf32> -> vector<8x32xf32>
    %c0_86 = arith.constant 0 : index
    %c0_87 = arith.constant 0 : index
    %117 = vector.load %arg12[%c0_86, %c0_87] : memref<1x32xf32, #tpu.memory_space<vmem>>, vector<1x32xf32>
    %118 = vector.broadcast %117 : vector<1x32xf32> to vector<8x32xf32>
    %119 = arith.addf %116, %118 : vector<8x32xf32>
    %120 = arith.addf %1, %119 : vector<8x32xf32>
    %c0_88 = arith.constant 0 : index
    %c0_89 = arith.constant 0 : index
    %121 = vector.load %arg13[%c0_88, %c0_89] : memref<1x32xf32, #tpu.memory_space<vmem>>, vector<1x32xf32>
    %c0_90 = arith.constant 0 : index
    %c0_91 = arith.constant 0 : index
    %122 = vector.load %arg14[%c0_90, %c0_91] : memref<1x32xf32, #tpu.memory_space<vmem>>, vector<1x32xf32>
    %cst_92 = arith.constant dense<0.000000e+00> : vector<8xf32>
    %123 = vector.multi_reduction <add>, %120, %cst_92 [1] : vector<8x32xf32> to vector<8xf32>
    %124 = vector.shape_cast %123 : vector<8xf32> to vector<8x1xf32>
    %cst_93 = arith.constant 3.200000e+01 : f32
    %125 = vector.broadcast %cst_93 : f32 to vector<8x1xf32>
    %126 = arith.divf %124, %125 : vector<8x1xf32>
    %127 = vector.broadcast %126 : vector<8x1xf32> to vector<8x32xf32>
    %128 = arith.subf %120, %127 : vector<8x32xf32>
    %129 = arith.mulf %128, %128 : vector<8x32xf32>
    %cst_94 = arith.constant dense<0.000000e+00> : vector<8xf32>
    %130 = vector.multi_reduction <add>, %129, %cst_94 [1] : vector<8x32xf32> to vector<8xf32>
    %131 = vector.shape_cast %130 : vector<8xf32> to vector<8x1xf32>
    %cst_95 = arith.constant 3.200000e+01 : f32
    %132 = vector.broadcast %cst_95 : f32 to vector<8x1xf32>
    %133 = arith.divf %131, %132 : vector<8x1xf32>
    %134 = vector.broadcast %126 : vector<8x1xf32> to vector<8x32xf32>
    %135 = arith.subf %120, %134 : vector<8x32xf32>
    %cst_96 = arith.constant 9.99999974E-6 : f32
    %136 = vector.broadcast %cst_96 : f32 to vector<8x1xf32>
    %137 = arith.addf %133, %136 : vector<8x1xf32>
    %138 = math.rsqrt %137 : vector<8x1xf32>
    %139 = vector.broadcast %138 : vector<8x1xf32> to vector<8x32xf32>
    %140 = arith.mulf %135, %139 : vector<8x32xf32>
    %141 = vector.broadcast %121 : vector<1x32xf32> to vector<8x32xf32>
    %142 = arith.mulf %140, %141 : vector<8x32xf32>
    %143 = vector.broadcast %122 : vector<1x32xf32> to vector<8x32xf32>
    %144 = arith.addf %142, %143 : vector<8x32xf32>
    %145 = arith.truncf %144 : vector<8x32xf32> to vector<8x32xbf16>
    %c0_97 = arith.constant 0 : index
    %c0_98 = arith.constant 0 : index
    %146 = vector.load %arg15[%c0_97, %c0_98] : memref<32x64xbf16, #tpu.memory_space<vmem>>, vector<32x64xbf16>
    %cst_99 = arith.constant dense<0.000000e+00> : vector<8x64xf32>
    %147 = tpu.matmul %145, %146, %cst_99 {dimension_numbers = #tpu.dot_dimension_numbers<[1], [0], [0], [1], [0, 0, 1, 1], [], []>} : vector<8x32xbf16>, vector<32x64xbf16>, vector<8x64xf32> -> vector<8x64xf32>
    %c0_100 = arith.constant 0 : index
    %c0_101 = arith.constant 0 : index
    %148 = vector.load %arg16[%c0_100, %c0_101] : memref<1x64xf32, #tpu.memory_space<vmem>>, vector<1x64xf32>
    %149 = vector.broadcast %148 : vector<1x64xf32> to vector<8x64xf32>
    %150 = arith.addf %147, %149 : vector<8x64xf32>
    %cst_102 = arith.constant 5.000000e-01 : f32
    %151 = vector.broadcast %cst_102 : f32 to vector<8x64xf32>
    %152 = arith.mulf %151, %150 : vector<8x64xf32>
    %cst_103 = arith.constant 0.707106769 : f32
    %153 = vector.broadcast %cst_103 : f32 to vector<8x64xf32>
    %154 = arith.mulf %150, %153 : vector<8x64xf32>
    %155 = math.absf %154 : vector<8x64xf32>
    %cst_104 = arith.constant 0.327591091 : f32
    %156 = vector.broadcast %cst_104 : f32 to vector<8x64xf32>
    %157 = arith.mulf %156, %155 : vector<8x64xf32>
    %cst_105 = arith.constant 1.000000e+00 : f32
    %158 = vector.broadcast %cst_105 : f32 to vector<8x64xf32>
    %159 = arith.addf %158, %157 : vector<8x64xf32>
    %cst_106 = arith.constant 1.000000e+00 : f32
    %160 = vector.broadcast %cst_106 : f32 to vector<8x64xf32>
    %161 = arith.divf %160, %159 : vector<8x64xf32>
    %cst_107 = arith.constant 1.06140542 : f32
    %162 = vector.broadcast %cst_107 : f32 to vector<8x64xf32>
    %163 = arith.mulf %162, %161 : vector<8x64xf32>
    %cst_108 = arith.constant -1.45315206 : f32
    %164 = vector.broadcast %cst_108 : f32 to vector<8x64xf32>
    %165 = arith.addf %163, %164 : vector<8x64xf32>
    %166 = arith.mulf %165, %161 : vector<8x64xf32>
    %cst_109 = arith.constant 1.42141378 : f32
    %167 = vector.broadcast %cst_109 : f32 to vector<8x64xf32>
    %168 = arith.addf %166, %167 : vector<8x64xf32>
    %169 = arith.mulf %168, %161 : vector<8x64xf32>
    %cst_110 = arith.constant -0.284496725 : f32
    %170 = vector.broadcast %cst_110 : f32 to vector<8x64xf32>
    %171 = arith.addf %169, %170 : vector<8x64xf32>
    %172 = arith.mulf %171, %161 : vector<8x64xf32>
    %cst_111 = arith.constant 0.254829586 : f32
    %173 = vector.broadcast %cst_111 : f32 to vector<8x64xf32>
    %174 = arith.addf %172, %173 : vector<8x64xf32>
    %175 = arith.mulf %174, %161 : vector<8x64xf32>
    %cst_112 = arith.constant 0.000000e+00 : f32
    %176 = vector.broadcast %cst_112 : f32 to vector<8x64xf32>
    %177 = arith.subf %176, %155 : vector<8x64xf32>
    %178 = arith.mulf %177, %155 : vector<8x64xf32>
    %179 = math.exp %178 : vector<8x64xf32>
    %180 = arith.mulf %175, %179 : vector<8x64xf32>
    %cst_113 = arith.constant 1.000000e+00 : f32
    %181 = vector.broadcast %cst_113 : f32 to vector<8x64xf32>
    %182 = arith.subf %181, %180 : vector<8x64xf32>
    %cst_114 = arith.constant 0.000000e+00 : f32
    %183 = vector.broadcast %cst_114 : f32 to vector<8x64xf32>
    %184 = arith.cmpf olt, %154, %183 : vector<8x64xf32>
    %cst_115 = arith.constant 0.000000e+00 : f32
    %185 = vector.broadcast %cst_115 : f32 to vector<8x64xf32>
    %186 = arith.subf %185, %182 : vector<8x64xf32>
    %187 = arith.select %184, %186, %182 : vector<8x64xi1>, vector<8x64xf32>
    %cst_116 = arith.constant 1.000000e+00 : f32
    %188 = vector.broadcast %cst_116 : f32 to vector<8x64xf32>
    %189 = arith.addf %188, %187 : vector<8x64xf32>
    %190 = arith.mulf %152, %189 : vector<8x64xf32>
    %191 = arith.truncf %190 : vector<8x64xf32> to vector<8x64xbf16>
    %c0_117 = arith.constant 0 : index
    %c0_118 = arith.constant 0 : index
    %192 = vector.load %arg17[%c0_117, %c0_118] : memref<64x32xbf16, #tpu.memory_space<vmem>>, vector<64x32xbf16>
    %cst_119 = arith.constant dense<0.000000e+00> : vector<8x32xf32>
    %193 = tpu.matmul %191, %192, %cst_119 {dimension_numbers = #tpu.dot_dimension_numbers<[1], [0], [0], [1], [0, 0, 1, 1], [], []>} : vector<8x64xbf16>, vector<64x32xbf16>, vector<8x32xf32> -> vector<8x32xf32>
    %c0_120 = arith.constant 0 : index
    %c0_121 = arith.constant 0 : index
    %194 = vector.load %arg18[%c0_120, %c0_121] : memref<1x32xf32, #tpu.memory_space<vmem>>, vector<1x32xf32>
    %195 = vector.broadcast %194 : vector<1x32xf32> to vector<8x32xf32>
    %196 = arith.addf %193, %195 : vector<8x32xf32>
    %197 = arith.addf %120, %196 : vector<8x32xf32>
    %c0_122 = arith.constant 0 : index
    %c0_123 = arith.constant 0 : index
    %c0_124 = arith.constant 0 : index
    %198 = vector.load %arg19[%c0_122, %c0_123, %c0_124] : memref<1x8x32xf32, #tpu.memory_space<vmem>>, vector<1x8x32xf32>
    %199 = vector.shape_cast %198 : vector<1x8x32xf32> to vector<8x32xf32>
    %200 = vector.shape_cast %197 : vector<8x32xf32> to vector<1x8x32xf32>
    tpu.vector_store %arg19[%c0_122, %c0_123, %c0_124], %200 {strides = array<i32>} : memref<1x8x32xf32, #tpu.memory_space<vmem>>, vector<1x8x32xf32>,
    return
  }
  func.func @transform_0(%arg0: i32, %arg1: i32) -> (i32, i32, i32) {
    %c0_i32 = arith.constant 0 : i32
    %c0_i32_0 = arith.constant 0 : i32
    return %arg0, %arg1, %c0_i32 : i32, i32, i32
  }
  func.func @transform_1(%arg0: i32, %arg1: i32) -> (i32, i32) {
    %c0_i32 = arith.constant 0 : i32
    %c0_i32_0 = arith.constant 0 : i32
    %c0_i32_1 = arith.constant 0 : i32
    return %c0_i32, %c0_i32_0 : i32, i32
  }
  func.func @transform_2(%arg0: i32, %arg1: i32) -> (i32, i32) {
    %c0_i32 = arith.constant 0 : i32
    %c0_i32_0 = arith.constant 0 : i32
    %c0_i32_1 = arith.constant 0 : i32
    return %c0_i32, %c0_i32_0 : i32, i32
  }
  func.func @transform_3(%arg0: i32, %arg1: i32) -> (i32, i32) {
    %c0_i32 = arith.constant 0 : i32
    %c0_i32_0 = arith.constant 0 : i32
    %c0_i32_1 = arith.constant 0 : i32
    return %c0_i32, %c0_i32_0 : i32, i32
  }
  func.func @transform_4(%arg0: i32, %arg1: i32) -> (i32, i32) {
    %c0_i32 = arith.constant 0 : i32
    %c0_i32_0 = arith.constant 0 : i32
    %c0_i32_1 = arith.constant 0 : i32
    return %c0_i32, %c0_i32_0 : i32, i32
  }
  func.func @transform_5(%arg0: i32, %arg1: i32) -> (i32, i32) {
    %c0_i32 = arith.constant 0 : i32
    %c0_i32_0 = arith.constant 0 : i32
    %c0_i32_1 = arith.constant 0 : i32
    return %c0_i32, %c0_i32_0 : i32, i32
  }
  func.func @transform_6(%arg0: i32, %arg1: i32) -> (i32, i32) {
    %c0_i32 = arith.constant 0 : i32
    %c0_i32_0 = arith.constant 0 : i32
    %c0_i32_1 = arith.constant 0 : i32
    return %c0_i32, %c0_i32_0 : i32, i32
  }
  func.func @transform_7(%arg0: i32, %arg1: i32) -> (i32, i32) {
    %c0_i32 = arith.constant 0 : i32
    %c0_i32_0 = arith.constant 0 : i32
    %c0_i32_1 = arith.constant 0 : i32
    return %c0_i32, %c0_i32_0 : i32, i32
  }
  func.func @transform_8(%arg0: i32, %arg1: i32) -> (i32, i32) {
    %c0_i32 = arith.constant 0 : i32
    %c0_i32_0 = arith.constant 0 : i32
    %c0_i32_1 = arith.constant 0 : i32
    return %c0_i32, %c0_i32_0 : i32, i32
  }
  func.func @transform_9(%arg0: i32, %arg1: i32) -> (i32, i32) {
    %c0_i32 = arith.constant 0 : i32
    %c0_i32_0 = arith.constant 0 : i32
    %c0_i32_1 = arith.constant 0 : i32
    return %c0_i32, %c0_i32_0 : i32, i32
  }
  func.func @transform_10(%arg0: i32, %arg1: i32) -> (i32, i32) {
    %c0_i32 = arith.constant 0 : i32
    %c0_i32_0 = arith.constant 0 : i32
    %c0_i32_1 = arith.constant 0 : i32
    return %c0_i32, %c0_i32_0 : i32, i32
  }
  func.func @transform_11(%arg0: i32, %arg1: i32) -> (i32, i32) {
    %c0_i32 = arith.constant 0 : i32
    %c0_i32_0 = arith.constant 0 : i32
    %c0_i32_1 = arith.constant 0 : i32
    return %c0_i32, %c0_i32_0 : i32, i32
  }
  func.func @transform_12(%arg0: i32, %arg1: i32) -> (i32, i32) {
    %c0_i32 = arith.constant 0 : i32
    %c0_i32_0 = arith.constant 0 : i32
    %c0_i32_1 = arith.constant 0 : i32
    return %c0_i32, %c0_i32_0 : i32, i32
  }
  func.func @transform_13(%arg0: i32, %arg1: i32) -> (i32, i32) {
    %c0_i32 = arith.constant 0 : i32
    %c0_i32_0 = arith.constant 0 : i32
    %c0_i32_1 = arith.constant 0 : i32
    return %c0_i32, %c0_i32_0 : i32, i32
  }
  func.func @transform_14(%arg0: i32, %arg1: i32) -> (i32, i32) {
    %c0_i32 = arith.constant 0 : i32
    %c0_i32_0 = arith.constant 0 : i32
    %c0_i32_1 = arith.constant 0 : i32
    return %c0_i32, %c0_i32_0 : i32, i32
  }
  func.func @transform_15(%arg0: i32, %arg1: i32) -> (i32, i32) {
    %c0_i32 = arith.constant 0 : i32
    %c0_i32_0 = arith.constant 0 : i32
    %c0_i32_1 = arith.constant 0 : i32
    return %c0_i32, %c0_i32_0 : i32, i32
  }
  func.func @transform_16(%arg0: i32, %arg1: i32) -> (i32, i32) {
    %c0_i32 = arith.constant 0 : i32
    %c0_i32_0 = arith.constant 0 : i32
    %c0_i32_1 = arith.constant 0 : i32
    return %c0_i32, %c0_i32_0 : i32, i32
  }
  func.func @transform_17(%arg0: i32, %arg1: i32) -> (i32, i32, i32) {
    %c0_i32 = arith.constant 0 : i32
    %c0_i32_0 = arith.constant 0 : i32
    return %arg0, %arg1, %c0_i32 : i32, i32, i32
  }
}

</mosaic_0001>

<bundles_post_ra>
// kernel: tpu_custom_call.1
= control target key start
LH: loop header
LB: loop body
LE: loop exit
PB: predicated region body
PF: predicated region fallthrough
CT: control target
= control target key end

     0   :  { %s4473_s0 = inlined_call_operand.vmem [shape: f32[2,8,32], index: 0, kind: input, shape index: {}]   ;;  %s4474_s1 = inlined_call_operand.vmem [shape: f32[1,32], index: 1, kind: input, shape index: {}]   ;;  %s4475_s2 = inlined_call_operand.hbm [shape: f32[1,32], index: 2, kind: input, shape index: {}]   ;;  %s4476_s3 = inlined_call_operand.vmem [shape: bf16[32,32], index: 3, kind: input, shape index: {}]   ;;  %s4477_s4 = inlined_call_operand.vmem [shape: bf16[32,32], index: 4, kind: input, shape index: {}]   ;;  %s4478_s5 = inlined_call_operand.hbm [shape: bf16[32,32], index: 5, kind: input, shape index: {}]   ;;  %s4479_s6 = inlined_call_operand.hbm [shape: f32[1,32], index: 6, kind: input, shape index: {}]   ;;  %s4480_s7 = inlined_call_operand.hbm [shape: f32[1,32], index: 7, kind: input, shape index: {}]   ;;  %s4481_s8 = inlined_call_operand.hbm [shape: f32[1,32], index: 8, kind: input, shape index: {}]   ;;  %s4482_s9 = inlined_call_operand.vmem [shape: bf16[32,32], index: 9, kind: input, shape index: {}]   ;;  %s4483_s10 = inlined_call_operand.hbm [shape: f32[1,32], index: 10, kind: input, shape index: {}]   ;;  %s4484_s11 = inlined_call_operand.hbm [shape: f32[1,32], index: 11, kind: input, shape index: {}]   ;;  %s4485_s12 = inlined_call_operand.hbm [shape: f32[1,32], index: 12, kind: input, shape index: {}]   ;;  %s4486_s13 = inlined_call_operand.vmem [shape: bf16[32,64], index: 13, kind: input, shape index: {}]   ;;  %s4487_s14 = inlined_call_operand.vmem [shape: f32[1,64], index: 14, kind: input, shape index: {}]   ;;  %s4488_s15 = inlined_call_operand.vmem [shape: bf16[64,32], index: 15, kind: input, shape index: {}]   ;;  %s4489_s16 = inlined_call_operand.vmem [shape: f32[1,32], index: 16, kind: input, shape index: {}]   ;;  %s4490_s17 = inlined_call_operand.hbm [shape: f32[2,8,32], index: 17, kind: output, shape index: {}]  }
   0x1   :  { %4506 = sst [smem:[#allocation37_spill]] %s4473_s0 }
   0x2   :  { %4507 = sst [smem:[#allocation38_spill]] %s4474_s1 }
   0x3   :  { %4508 = sst [smem:[#allocation39_spill]] %s4487_s14 }
   0x4   :  { %4509 = sst [smem:[#allocation40_spill]] %s4489_s16 }
   0x5   :  { %4510 = sst [smem:[#allocation41_spill]] %s4490_s17 }
   0x6   :  { %22 = vsyncpa [#allocation8], 0 }
   0x7   :  { %23 = vsyncpa [#allocation11], 0 }
   0x8   :  { %24 = vsyncpa [#allocation14], 0 }
   0x9   :  { %25 = vsyncpa [#allocation17], 0 }
   0xa   :  { %26 = vsyncpa [#allocation20], 0 }
   0xb   :  { %27 = vsyncpa [#allocation9], 0 }
   0xc   :  { %29 = vsyncpa [#allocation9 + $0x1], 0  ;;  %s3835_s24 = smov 0   ;;  %s3837_s25 = smov 0  }
   0xd   :  { %s3839_s26 = smov 0   ;;  %s3841_s27 = smov 0  }
   0xe   :  { %s3843_s28 = smov 0   ;;  %s3845_s29 = smov 0  }
   0xf LB: > { %4511 = sst [smem:[#allocation28_spill]] %s3700_s24  ;;  %s2979_s0 = sadd.s32 4294967295, %s3720_s29   ;;  %s3720_s29 = sphi %s3845_s29, %s35_s29   ;;  %s3716_s28 = sphi %s3843_s28, %s4544_s28   ;;  %s3712_s27 = sphi %s3841_s27, %s4543_s27   ;;  %s3708_s26 = sphi %s3839_s26, %s4542_s26   ;;  %s3704_s25 = sphi %s3837_s25, %s4541_s25   ;;  %s3700_s24 = sphi %s3835_s24, %s4540_s24  }
  0x10   : > { %4512 = sst [smem:[#allocation29_spill]] %s3704_s25  ;;  %s2980_s30 = sadd.s32 4294967294, %s3720_s29  }
  0x11   : > { %4513 = sst [smem:[#allocation30_spill]] %s3708_s26  ;;  %s47_s18 = sadd.s32 1, %s3716_s28 }
  0x12   : > { %4514 = sst [smem:[#allocation31_spill]] %s3716_s28  ;;  %s420_s19 = sadd.s32 1, %s3708_s26 }
  0x13   : > { %4515 = sst [smem:[#allocation32_spill]] %s3720_s29  ;;  %p49_p0 = scmp.ge.s32.totalorder %s47_s18, 2 }
  0x14   : > { %p430_p1 = scmp.ne.s32.totalorder %s3708_s26, %s3704_s25  ;;  %p431_p2 = scmp.eq.s32.totalorder %s2979_s0, 1 }
  0x15   : > { %p436_p3 = scmp.ne.s32.totalorder %s3704_s25, %s3700_s24  ;;  %s4546_s18 = smov (%p49_p0, %s47_s18), 0 }
  0x16   : > { %4516 = sst [smem:[#allocation33_spill]] %s4546_s18  ;;  %p3875_p4 = por %p431_p2, %p430_p1 }
  0x17   : > { %p437_p5 = scmp.eq.s32.totalorder %s2980_s30, 1  ;;  %s415_s20 = ssub.s32 %s3716_s28, %s4546_s18 }
  0x18   : > { %s4517_s1 = scalar_select %p3875_p4, 1, 0 }
  0x19   : > { %p2981_p6 = scmp.ge.s32.totalorder %s3720_s29, 1  ;;  %p418_p7 = scmp.eq.s32.totalorder %s415_s20, 0 }
  0x1a   : > { %4518 = sst [smem:[#allocation34_spill]] %s4517_s1  ;;  %p3882_p8 = por %p437_p5, %p436_p3 }
  0x1b   : > { %p444_p9 = scmp.lt.s32.totalorder %s3720_s29, 3  ;;  %p3894_p11 = scmp.eq.s32.totalorder %s2979_s0, 0 }
  0x1c   : > { %s4519_s21 = scalar_select %p3882_p8, 1, 0 }
  0x1d   : > { %s3888_s22 = scalar_select %p418_p7, %s3708_s26, %s420_s19  }
  0x1e   : > { %4520 = sst [smem:[#allocation35_spill]] %s4519_s21  ;;  %p3890_p10 = pnand %p2981_p6, %p444_p9 }
  0x1f   : > { %4521 = sst [smem:[#allocation36_spill]] %s3888_s22  ;;  %s3722_s30 = smov [#allocation10]  }
  0x20   : > { %s4522_s23 = scalar_select %p3890_p10, 1, 0 }
  0x21   : > { %s4523_s24 = scalar_select %p3894_p11, 1, 0 }
  0x22   : > { %p3233_p12 = pneg %p3890_p10  ;;  %s476_s20 = sshll.u32 %s3722_s30, 4  ;;  %s477_s20 = int_to_ptr.vmem [resolvable:$true] %s476_s20 }
  0x23   : > { %s3723_s19 = smov [#allocation13]   ;;  %s3398_s26 = scalar_lea.hbm %s4478_s5, 256 }
  0x24   : > { %p3902_p13 = pnand %p3894_p11, %p3233_p12  ;;  %s501_s28 = sshll.u32 %s3723_s19, 4  ;;  %s3906_s28 = int_to_ptr.vmem [resolvable:$true] %s501_s28 }
  0x25   : > { %p3399_p0 = scmp.ne.s32.totalorder %s4478_s5, %s3398_s26  ;;  %p3405_p5 = scmp.lt.u32.totalorder %s3398_s26, %s4478_s5 }
  0x26   : > { %p3916_p1 = pneg %p3902_p13 }
  0x28   : > { %p3401_p2 = pnand %p3916_p1, %p3399_p0 }
  0x2a   : > { %p3402_p3 = pneg %p3401_p2 }
  0x2c   : > { %p3407_p6 = pnand %p3405_p5, %p3402_p3 }
  0x2e   : > { %3410 = shalt.err (!%p3407_p6)
}
  0x2f   : > { %s3411_s22 = scalar_lea.vmem %s477_s20, 256  ;;  %p3419_p8 = scmp.lt.s32.totalorder %s477_s20, %s477_s20 }
  0x30   : > { %p3412_p7 = scmp.ne.s32.totalorder %s477_s20, %s3411_s22  ;;  %p3420_p4 = scmp.lt.s32.totalorder %s3411_s22, %s3411_s22 }
  0x32   : > { %p3414_p9 = pnand %p3412_p7, %p3916_p1  ;;  %p3421_p11 = por %p3420_p4, %p3419_p8 }
  0x34   : > { %p3415_p12 = pneg %p3414_p9 }
  0x36   : > { %p3422_p10 = pnand %p3421_p11, %p3415_p12 }
  0x38   : > { %3425 = shalt.err (!%p3422_p10)
}
  0x39   : > { %s3724_s29 = smov 64   ;;  %s3725_s21 = smov 4  }
  0x3a   : > { %3239 = dma.hbm_to_vmem [thread:$0]  (!%p3902_p13), %s4478_s5, 256, %s477_s20, [#allocation11], %s3724_s29, %s3724_s29, %s3725_s21  }
  0x3b   : > { %s3426_s1 = scalar_lea.hbm %s4480_s7, 16 }
  0x3c   : > { %p3427_p0 = scmp.ne.s32.totalorder %s4480_s7, %s3426_s1  ;;  %p3433_p10 = scmp.lt.u32.totalorder %s3426_s1, %s4480_s7 }
  0x3e   : > { %p3429_p4 = pnand %p3427_p0, %p3916_p1 }
  0x40   : > { %p3430_p8 = pneg %p3429_p4 }
  0x42   : > { %p3435_p11 = pnand %p3433_p10, %p3430_p8 }
  0x44   : > { %3438 = shalt.err (!%p3435_p11)
}
  0x45   : > { %s3439_s20 = scalar_lea.vmem %s3906_s28, 16  ;;  %s3446_s16 = scalar_lea.vmem %s3906_s28, 32 }
  0x46   : > { %p3440_p2 = scmp.ne.s32.totalorder %s3906_s28, %s3439_s20  ;;  %p3447_p6 = scmp.lt.s32.totalorder %s3906_s28, %s3906_s28 }
  0x47   : > { %p3448_p7 = scmp.lt.s32.totalorder %s3446_s16, %s3439_s20 }
  0x48   : > { %p3442_p3 = pnand %p3440_p2, %p3916_p1 }
  0x49   : > { %p3449_p9 = por %p3448_p7, %p3447_p6 }
  0x4a   : > { %p3443_p5 = pneg %p3442_p3 }
  0x4c   : > { %p3450_p12 = pnand %p3449_p9, %p3443_p5 }
  0x4e   : > { %3453 = shalt.err (!%p3450_p12)
}
  0x4f   : > { %3245 = dma.hbm_to_vmem [thread:$0]  (!%p3902_p13), %s4480_s7, 16, %s3906_s28, [#allocation14]  }
  0x50   : > { %s3726_s1 = smov [#allocation16]   ;;  %s3454_s26 = scalar_lea.hbm %s4483_s10, 16 }
  0x51   : > { %s526_s29 = sshll.u32 %s3726_s1, 4  ;;  %p3455_p0 = scmp.ne.s32.totalorder %s4483_s10, %s3454_s26  ;;  %s527_s29 = int_to_ptr.vmem [resolvable:$true] %s526_s29 }
  0x52   : > { %p3461_p10 = scmp.lt.u32.totalorder %s3454_s26, %s4483_s10 }
  0x53   : > { %p3457_p4 = pnand %p3455_p0, %p3916_p1 }
  0x55   : > { %p3458_p8 = pneg %p3457_p4 }
  0x57   : > { %p3463_p11 = pnand %p3461_p10, %p3458_p8 }
  0x59   : > { %3466 = shalt.err (!%p3463_p11)
}
  0x5a   : > { %s3467_s28 = scalar_lea.vmem %s527_s29, 16  ;;  %s3474_s16 = scalar_lea.vmem %s527_s29, 32 }
  0x5b   : > { %p3468_p2 = scmp.ne.s32.totalorder %s527_s29, %s3467_s28  ;;  %p3475_p6 = scmp.lt.s32.totalorder %s527_s29, %s527_s29 }
  0x5c   : > { %p3476_p7 = scmp.lt.s32.totalorder %s3474_s16, %s3467_s28 }
  0x5d   : > { %p3470_p3 = pnand %p3468_p2, %p3916_p1 }
  0x5e   : > { %p3477_p9 = por %p3476_p7, %p3475_p6 }
  0x5f   : > { %p3471_p5 = pneg %p3470_p3 }
  0x61   : > { %p3478_p12 = pnand %p3477_p9, %p3471_p5 }
  0x63   : > { %3481 = shalt.err (!%p3478_p12)
}
  0x64   : > { %3251 = dma.hbm_to_vmem [thread:$0]  (!%p3902_p13), %s4483_s10, 16, %s527_s29, [#allocation17]  }
  0x65   : > { %s3727_s1 = smov [#allocation7]   ;;  %s3728_s17 = smov [#allocation12]  }
  0x66   : > { %s460_s21 = sshll.u32 %s3727_s1, 4  ;;  %s490_s26 = sshll.u32 %s3728_s17, 4  ;;  %s461_s21 = int_to_ptr.vmem [resolvable:$true] %s460_s21  ;;  %s3974_s26 = int_to_ptr.vmem [resolvable:$true] %s490_s26 }
  0x67   : > { %s3482_s22 = scalar_lea.hbm %s4475_s2, 16 }
  0x68   : > { %p3483_p0 = scmp.ne.s32.totalorder %s4475_s2, %s3482_s22  ;;  %p3489_p10 = scmp.lt.u32.totalorder %s3482_s22, %s4475_s2 }
  0x6a   : > { %p3485_p4 = pnand %p3483_p0, %p3916_p1 }
  0x6c   : > { %p3486_p8 = pneg %p3485_p4 }
  0x6e   : > { %p3491_p11 = pnand %p3489_p10, %p3486_p8 }
  0x70   : > { %3494 = shalt.err (!%p3491_p11)
}
  0x71   : > { %s3495_s14 = scalar_lea.vmem %s461_s21, 16  ;;  %s3502_s25 = scalar_lea.vmem %s461_s21, 32 }
  0x72   : > { %p3496_p2 = scmp.ne.s32.totalorder %s461_s21, %s3495_s14  ;;  %p3503_p6 = scmp.lt.s32.totalorder %s461_s21, %s461_s21 }
  0x73   : > { %p3504_p7 = scmp.lt.s32.totalorder %s3502_s25, %s3495_s14 }
  0x74   : > { %p3498_p3 = pnand %p3496_p2, %p3916_p1 }
  0x75   : > { %p3505_p9 = por %p3504_p7, %p3503_p6 }
  0x76   : > { %p3499_p5 = pneg %p3498_p3 }
  0x78   : > { %p3506_p12 = pnand %p3505_p9, %p3499_p5 }
  0x7a   : > { %3509 = shalt.err (!%p3506_p12)
}
  0x7b   : > { %3236 = dma.hbm_to_vmem [thread:$0]  (!%p3902_p13), %s4475_s2, 16, %s461_s21, [#allocation8]  }
  0x7c   : > { %s3510_s22 = scalar_lea.hbm %s4479_s6, 16 }
  0x7d   : > { %p3511_p0 = scmp.ne.s32.totalorder %s4479_s6, %s3510_s22  ;;  %p3517_p10 = scmp.lt.u32.totalorder %s3510_s22, %s4479_s6 }
  0x7f   : > { %p3513_p4 = pnand %p3511_p0, %p3916_p1 }
  0x81   : > { %p3514_p8 = pneg %p3513_p4 }
  0x83   : > { %p3519_p11 = pnand %p3517_p10, %p3514_p8 }
  0x85   : > { %3522 = shalt.err (!%p3519_p11)
}
  0x86   : > { %s3523_s21 = scalar_lea.vmem %s3974_s26, 16  ;;  %s3530_s14 = scalar_lea.vmem %s3974_s26, 32 }
  0x87   : > { %p3524_p2 = scmp.ne.s32.totalorder %s3974_s26, %s3523_s21  ;;  %p3531_p6 = scmp.lt.s32.totalorder %s3974_s26, %s3974_s26 }
  0x88   : > { %p3532_p7 = scmp.lt.s32.totalorder %s3530_s14, %s3523_s21 }
  0x89   : > { %p3526_p3 = pnand %p3524_p2, %p3916_p1 }
  0x8a   : > { %p3533_p9 = por %p3532_p7, %p3531_p6 }
  0x8b   : > { %p3527_p5 = pneg %p3526_p3 }
  0x8d   : > { %p3534_p12 = pnand %p3533_p9, %p3527_p5 }
  0x8f   : > { %3537 = shalt.err (!%p3534_p12)
}
  0x90   : > { %3242 = dma.hbm_to_vmem [thread:$0]  (!%p3902_p13), %s4479_s6, 16, %s3974_s26, [#allocation11]  }
  0x91   : > { %s3729_s17 = smov [#allocation15]   ;;  %s3730_s19 = smov [#allocation18]  }
  0x92   : > { %s512_s0 = sshll.u32 %s3729_s17, 4  ;;  %s537_s22 = sshll.u32 %s3730_s19, 4  ;;  %s513_s0 = int_to_ptr.vmem [resolvable:$true] %s512_s0  ;;  %s4018_s22 = int_to_ptr.vmem [resolvable:$true] %s537_s22 }
  0x93   : > { %s3538_s16 = scalar_lea.hbm %s4481_s8, 16 }
  0x94   : > { %p3539_p0 = scmp.ne.s32.totalorder %s4481_s8, %s3538_s16  ;;  %p3545_p10 = scmp.lt.u32.totalorder %s3538_s16, %s4481_s8 }
  0x96   : > { %p3541_p4 = pnand %p3539_p0, %p3916_p1 }
  0x98   : > { %p3542_p8 = pneg %p3541_p4 }
  0x9a   : > { %p3547_p11 = pnand %p3545_p10, %p3542_p8 }
  0x9c   : > { %3550 = shalt.err (!%p3547_p11)
}
  0x9d   : > { %s3551_s25 = scalar_lea.vmem %s513_s0, 16  ;;  %s3558_s1 = scalar_lea.vmem %s513_s0, 32 }
  0x9e   : > { %p3552_p2 = scmp.ne.s32.totalorder %s513_s0, %s3551_s25  ;;  %p3559_p6 = scmp.lt.s32.totalorder %s513_s0, %s513_s0 }
  0x9f   : > { %p3560_p7 = scmp.lt.s32.totalorder %s3558_s1, %s3551_s25 }
  0xa0   : > { %p3554_p3 = pnand %p3552_p2, %p3916_p1 }
  0xa1   : > { %p3561_p9 = por %p3560_p7, %p3559_p6 }
  0xa2   : > { %p3555_p5 = pneg %p3554_p3 }
  0xa4   : > { %p3562_p12 = pnand %p3561_p9, %p3555_p5 }
  0xa6   : > { %3565 = shalt.err (!%p3562_p12)
}
  0xa7   : > { %3248 = dma.hbm_to_vmem [thread:$0]  (!%p3902_p13), %s4481_s8, 16, %s513_s0, [#allocation14]  }
  0xa8   : > { %s3566_s16 = scalar_lea.hbm %s4484_s11, 16 }
  0xa9   : > { %p3567_p0 = scmp.ne.s32.totalorder %s4484_s11, %s3566_s16  ;;  %p3573_p10 = scmp.lt.u32.totalorder %s3566_s16, %s4484_s11 }
  0xab   : > { %p3569_p4 = pnand %p3567_p0, %p3916_p1 }
  0xad   : > { %p3570_p8 = pneg %p3569_p4 }
  0xaf   : > { %p3575_p11 = pnand %p3573_p10, %p3570_p8 }
  0xb1   : > { %3578 = shalt.err (!%p3575_p11)
}
  0xb2   : > { %s3579_s0 = scalar_lea.vmem %s4018_s22, 16  ;;  %s3586_s25 = scalar_lea.vmem %s4018_s22, 32 }
  0xb3   : > { %p3580_p2 = scmp.ne.s32.totalorder %s4018_s22, %s3579_s0  ;;  %p3587_p6 = scmp.lt.s32.totalorder %s4018_s22, %s4018_s22 }
  0xb4   : > { %p3588_p7 = scmp.lt.s32.totalorder %s3586_s25, %s3579_s0 }
  0xb5   : > { %p3582_p3 = pnand %p3580_p2, %p3916_p1 }
  0xb6   : > { %p3589_p9 = por %p3588_p7, %p3587_p6 }
  0xb7   : > { %p3583_p5 = pneg %p3582_p3 }
  0xb9   : > { %p3590_p12 = pnand %p3589_p9, %p3583_p5 }
  0xbb   : > { %3593 = shalt.err (!%p3590_p12)
}
  0xbc   : > { %3254 = dma.hbm_to_vmem [thread:$0]  (!%p3902_p13), %s4484_s11, 16, %s4018_s22, [#allocation17]  }
  0xbd   : > { %s3731_s19 = smov [#allocation19]   ;;  %s3594_s29 = scalar_lea.hbm %s4485_s12, 16 }
  0xbe   : > { %s548_s20 = sshll.u32 %s3731_s19, 4  ;;  %p3595_p0 = scmp.ne.s32.totalorder %s4485_s12, %s3594_s29  ;;  %s549_s20 = int_to_ptr.vmem [resolvable:$true] %s548_s20 }
  0xbf   : > { %p3601_p10 = scmp.lt.u32.totalorder %s3594_s29, %s4485_s12 }
  0xc0   : > { %p3597_p4 = pnand %p3595_p0, %p3916_p1 }
  0xc2   : > { %p3598_p8 = pneg %p3597_p4 }
  0xc4   : > { %p3603_p11 = pnand %p3601_p10, %p3598_p8 }
  0xc6   : > { %3606 = shalt.err (!%p3603_p11)
}
  0xc7   : > { %s3607_s22 = scalar_lea.vmem %s549_s20, 16  ;;  %s3614_s25 = scalar_lea.vmem %s549_s20, 32 }
  0xc8   : > { %p3608_p2 = scmp.ne.s32.totalorder %s549_s20, %s3607_s22  ;;  %p3615_p6 = scmp.lt.s32.totalorder %s549_s20, %s549_s20 }
  0xc9   : > { %p3616_p7 = scmp.lt.s32.totalorder %s3614_s25, %s3607_s22 }
  0xca   : > { %p3610_p3 = pnand %p3608_p2, %p3916_p1 }
  0xcb   : > { %p3617_p9 = por %p3616_p7, %p3615_p6 }
  0xcc   : > { %p3611_p5 = pneg %p3610_p3 }
  0xce   : > { %p3618_p12 = pnand %p3617_p9, %p3611_p5 }
  0xd0   : > { %3621 = shalt.err (!%p3618_p12)
}
  0xd1   : > { %3257 = dma.hbm_to_vmem [thread:$0]  (!%p3902_p13), %s4485_s12, 16, %s549_s20, [#allocation20]  }
  0xd2   : > { %p4526_p0 = scmp.ne.s32.totalorder %s4522_s23, 0 }
  0xd3   : > { %p4527_p4 = scmp.ne.s32.totalorder (!%p4526_p0), %s4523_s24, 0 }
  0xd4   : > { %583 = sbr.rel (%p4526_p0) target bundleno = 2890 (0xb4a), region = 88 }
  0xdb   : > { %3675 = dma.done.wait (%p4527_p4), [#allocation8], 16  }
  0xdc   : > { %3677 = vsyncadd (%p4527_p4), [#allocation8], 4294967280 }
  0xdd   : > { %3679 = dma.done.wait (%p4527_p4), [#allocation11], 272  }
  0xde   : > { %3681 = vsyncadd (%p4527_p4), [#allocation11], 4294967024 }
  0xdf   : > { %3683 = dma.done.wait (%p4527_p4), [#allocation14], 32  }
  0xe0   : > { %3685 = vsyncadd (%p4527_p4), [#allocation14], 4294967264 }
  0xe1   : > { %3687 = dma.done.wait (%p4527_p4), [#allocation17], 32  }
  0xe2   : > { %3689 = vsyncadd (%p4527_p4), [#allocation17], 4294967264 }
  0xe3   : > { %3691 = dma.done.wait (%p4527_p4), [#allocation20], 16  }
  0xe4   : > { %3693 = vsyncadd (%p4527_p4), [#allocation20], 4294967280  ;;  %p665_p13 = scmp.lt.s32.totalorder %s3712_s27, 1  ;;  %s4528_s20 = sld [smem:[#allocation37_spill]]  ;;  %vm676_vm0 = vcmask 261120   ;;  %v3351_v7 = vld [vmem:[%s4476_s3] sm:$0xff]   ;;  %v784_v46 = vlaneseq }
  0xe5   : > { %v3352_v8 = vld [vmem:[%s4477_s4] sm:$0xff]   ;;  %v3732_v9 = vmov 0.0   ;;  %v3353_v10 = vld [vmem:[%s4476_s3 + $0x8] sm:$0xff]   ;;  %vm3733_vm1 = vmmov 0   ;;  %s4529_s17 = sld [smem:[#allocation38_spill]]  ;;  %v3734_v24 = vmov 0  }
  0xe6   : > { %s666_s18 = scalar_select %p665_p13, %s3712_s27, 1  ;;  %3099 = vmatprep.subr.bf16.mxu0 %v3732_v9  ;;  %3107 = vmatprep.subr.bf16.mxu1 %v3732_v9  ;;  %v3354_v11 = vld [vmem:[%s4477_s4 + $0x8] sm:$0xff]   ;;  %v3003_v18 = vld [vmem:[#allocation7] ss:$0 sm:$0xff]  ;;  %v3004_v25 = vld [vmem:[#allocation12] ss:$0 sm:$0xff] }
  0xe7   : > { %3100 = vmatpush3.bf16.msra.mxu0 %v3351_v7  ;;  %3108 = vmatpush3.bf16.msra.mxu1 %v3352_v8  ;;  %v3355_v21 = vld [vmem:[#allocation10] sm:$0xff]   ;;  %v3356_v23 = vld [vmem:[#allocation10 + $0x8] sm:$0xff]   ;;  %s3737_s30 = smov 112   ;;  %vm1295_vm2 = vcmask 64512   ;;  %v3008_v41 = vld [vmem:[#allocation13] ss:$0 sm:$0xff] }
  0xe8   : > { %s3001_s23 = sshll.u32 %s666_s18, 3  ;;  %3101 = vmatprep.subr.bf16.mxu0 %v3732_v9  ;;  %3109 = vmatprep.subr.bf16.mxu1 %v3732_v9  ;;  %s3735_s18 = smov 104   ;;  %1296 = vst.msk [vmem:[#allocation6] sm:$0xff] %vm1295_vm2, %v3732_v9  ;;  %1297 = vst.msk [vmem:[#allocation6 + $0x8] sm:$0xff] %vm1295_vm2, %v3732_v9  ;;  %v3738_v44 = vmov 1983009808  }
  0xe9   : > { %3103 = vmatprep.mubr.msk.bf16.mxu0 %vm3733_vm1, %v3732_v9  ;;  %3111 = vmatprep.mubr.msk.bf16.mxu1 %vm3733_vm1, %v3732_v9  ;;  %1298 = vst.msk [vmem:[#allocation6 + $0x10] sm:$0xff] %vm1295_vm2, %v3732_v9  ;;  %1299 = vst.msk [vmem:[#allocation6 + $0x18] sm:$0xff] %vm1295_vm2, %v3732_v9  ;;  %v782_v45 = vunpack.c.l.s4 %v3738_v44  ;;  %v3739_v47 = vmov 1934713408   ;;  %v4164_v50 = vshrl.u32 %v784_v46, 7  ;;  %vm1833_vm3 = vcmask 1043456  }
  0xea   : > { %s4107_s28 = scalar_lea.vmem %s4528_s20, %s3001_s23  ;;  %3350 = vset.pattern.permute.xlu0 %v3734_v24  ;;  %s3736_s23 = smov 120   ;;  %v799_v48 = vunpack.c.l.s4 %v3739_v47  ;;  %vm1286_vm4 = vcmask 7168   ;;  %vm2520_vm6 = vcmask 130048   ;;  %vm2522_vm7 = vcmask 195584  }
  0xeb   : > { %v673_v0 = vld [vmem:[%s4107_s28] sm:$0xff]  ;;  %3102 = vmatpush3.bf16.msra.mxu0 %v3353_v10  ;;  %3110 = vmatpush3.bf16.msra.mxu1 %v3354_v11  ;;  %v783_v49 = vunpack.c.0.s8 %v782_v45  ;;  %1291 = vst.msk [vmem:[#allocation5] sm:$0xff] %vm1286_vm4, %v3732_v9  ;;  %1292 = vst.msk [vmem:[#allocation5 + $0x8] sm:$0xff] %vm1286_vm4, %v3732_v9  ;;  %s3741_s29 = smov 16   ;;  %s3742_s21 = smov 8   ;;  %vm2755_vm9 = vcmask 523264  }
  0xec   : > { %v677_v1 = vsel %vm676_vm0, %v673_v0, 0.0  ;;  %3115 = vmatprep.subr.bf16.mxu0 %v3732_v9  ;;  %3123 = vmatprep.subr.bf16.mxu1 %v3732_v9  ;;  %v3002_v16 = vld [vmem:[%s4529_s17] ss:$0 sm:$0xff]  ;;  %v800_v51 = vunpack.c.0.s8 %v799_v48  ;;  %1293 = vst.msk [vmem:[#allocation5 + $0x10] sm:$0xff] %vm1286_vm4, %v3732_v9  ;;  %1294 = vst.msk [vmem:[#allocation5 + $0x18] sm:$0xff] %vm1286_vm4, %v3732_v9  ;;  %s3743_s14 = smov 24  }
  0xed   : > { %678 = vadd.xlane.f32.xlu0 %v677_v1  ;;  %v4167_v52 = vsub.s32 %v783_v49, %v4164_v50  ;;  %s4532_s22 = sld [smem:[#allocation40_spill]]  ;;  %s4533_s25 = sld [smem:[#allocation34_spill]] }
  0xee   : > { %v4171_v56 = vsub.s32 %v800_v51, %v4164_v50  ;;  %s3058_s1 = sshll.u32 %s3712_s27, 7  ;;  %s4534_s19 = sld [smem:[#allocation41_spill]] }
  0xef   : > { %s3744_s16 = smov [#allocation21]  }
  0xf3   : > { %p4535_p8 = scmp.ne.s32.totalorder %s4533_s25, 0 }
  0xf4   : > { %s4425_s20 = scalar_lea.hbm %s4534_s19, %s3058_s1 }
 0x17a   : > { %v679_v2 = vpop.xlane.xlu0 %678 }
 0x17b   : > { %v681_v3 = vmul.f32 0.03125, %v679_v2 }
 0x17d   : > { %v682_v4 = vsub.f32 %v673_v0, %v681_v3 }
 0x17f   : > { %v683_v5 = vmul.f32 %v682_v4, %v682_v4 }
 0x181   : > { %v684_v6 = vsel %vm676_vm0, %v683_v5, 0.0 }
 0x182   : > { %685 = vadd.xlane.f32.xlu0 %v684_v6 }
 0x20f   : > { %v686_v12 = vpop.xlane.xlu0 %685 }
 0x210   : > { %v687_v13 = vmul.f32 0.03125, %v686_v12 }
 0x212   : > { %v688_v14 = vadd.f32 1e-05, %v687_v13 }
 0x214   : > { %3365 = vrsqrt.f32 %v688_v14 }
 0x21e   : > { %v3366_v15 = vpop.eup %3365 }
 0x21f   : > { %v690_v17 = vmul.f32 %v3366_v15, %v682_v4 }
 0x221   : > { %v697_v19 = vmul.f32 %v3002_v16, %v690_v17 }
 0x223   : > { %v704_v20 = vadd.f32 %v3003_v18, %v697_v19 }
 0x225   : > { %v705_v22 = vpack.c.bf16 %v704_v20, %v704_v20 }
 0x227   : > { %3104 = vmatmul.mubr.msk.bf16.vlgmr.msra.gmra.mrb[0].mxu0 %vm676_vm0, %v705_v22  ;;  %3112 = vmatmul.mubr.msk.bf16.vlgmr.msra.gmra.mrb[0].mxu1 %vm676_vm0, %v705_v22 }
 0x228   : > { %3116 = vmatpush3.bf16.msra.mxu0 %v3355_v21  ;;  %3119 = vmatprep.mubr.msk.bf16.mxu0 %vm3733_vm1, %v3732_v9 }
 0x229   : > { %3117 = vmatprep.subr.bf16.mxu0 %v3732_v9  ;;  %3125 = vmatprep.mubr.msk.bf16.mxu1 %vm3733_vm1, %v3732_v9 }
 0x22c   : > { %3118 = vmatpush3.bf16.msra.mxu0 %v3356_v23 }
 0x22d   : > { %3129 = vmatprep.subr.bf16.mxu0 %v3732_v9 }
 0x22f   : > { %3120 = vmatmul.mubr.msk.bf16.vlgmr.msra.gmra.mrb[4].mxu0 %vm676_vm0, %v705_v22 }
 0x230   : > { %3131 = vmatprep.mubr.msk.bf16.mxu0 %vm3733_vm1, %v3732_v9 }
 0x2fa   : > { %v766_v26 = vpop.f32.mrb[0].mxu0  ;;  %v999_v27 = vpop.f32.mrb[0].mxu1 }
 0x2fb   : > { %v767_v28 = vadd.f32 %v3004_v25, %v766_v26  ;;  %v3105_v29 = vpop.f32.mrb[1].mxu0  ;;  %v3113_v30 = vpop.f32.mrb[1].mxu1  ;;  %v1000_v42 = vadd.f32 %v3008_v41, %v999_v27 }
 0x2fc   : > { %v769_v31 = vpop.f32.mrb[2].mxu0  ;;  %v1002_v32 = vpop.f32.mrb[2].mxu1 }
 0x2fd   : > { %v772_v33 = vmul.f32 0.35355338, %v767_v28  ;;  %v3106_v34 = vpop.f32.mrb[3].mxu0  ;;  %v3114_v35 = vpop.f32.mrb[3].mxu1  ;;  %v1005_v43 = vpack.c.bf16 %v1000_v42, %v1000_v42 }
 0x2ff   : > { %v773_v36 = vpack.c.bf16 %v772_v33, %v772_v33 }
 0x301   : > { %779 = vrot.lane.b32.xlu0 %v773_v36, %s3735_s18  ;;  %775 = vrot.lane.b32.xlu1 %v773_v36, %s3736_s23  ;;  %v787_v63 = vrot.slane %v773_v36, %v4167_v52 }
 0x302   : > { %v4151_v37 = vpop.f32.mrb[4].mxu0 }
 0x303   : > { %v3121_v38 = vpop.f32.mrb[5].mxu0 }
 0x304   : > { %v1092_v39 = vpop.f32.mrb[6].mxu0 }
 0x305   : > { %777 = vrot.lane.b32.xlu1 %v773_v36, %s3737_s30  ;;  %v3122_v40 = vpop.f32.mrb[7].mxu0 }
 0x328   : > { %1006 = vxpose.xlu1.c.b16.start.end [1/1] (short) (narrow) %v1005_v43, 32 }
 0x32c   : > { %3349 = vset.pattern.permute.xlu1 %v3734_v24 }
 0x373   : > { %v780_v53 = vpop.permute.xlu0 %779  ;;  %v776_v54 = vpop.permute.xlu1 %775 }
 0x374   : > { %v829_v55 = vrot.slane %v780_v53, %v4167_v52  ;;  %v821_v57 = vrot.slane %v776_v54, %v4167_v52 }
 0x376   : > { %v830_v58 = vcombine.low %v821_v57, %v829_v55  ;;  %v831_v59 = vcombine.high %v821_v57, %v829_v55 }
 0x377   : > { %v778_v60 = vpop.permute.xlu1 %777 }
 0x378   : > { %v838_v61 = vrot.slane %v830_v58, %v4171_v56  ;;  %v795_v62 = vrot.slane %v778_v60, %v4167_v52  ;;  %v845_v0 = vrot.slane %v831_v59, %v4171_v56 }
 0x37a   : > { %v796_v1 = vcombine.low %v787_v63, %v795_v62  ;;  %v797_v2 = vcombine.high %v787_v63, %v795_v62  ;;  %v846_v3 = vcombine.high %v838_v61, %v3734_v24  ;;  %v847_v6 = vcombine.high %v845_v0, %v3734_v24 }
 0x37b   : > { %v853_v7 = vshrl.u32 %v838_v61, 16  ;;  %v869_v14 = vshrl.u32 %v845_v0, 16 }
 0x37c   : > { %v804_v4 = vrot.slane %v796_v1, %v4171_v56  ;;  %v811_v5 = vrot.slane %v797_v2, %v4171_v56  ;;  %v861_v13 = vshrl.u32 %v846_v3, 16  ;;  %v877_v21 = vshrl.u32 %v847_v6, 16 }
 0x37d   : > { %v1827_v1 = vand.u32 127, %v784_v46 }
 0x37e   : > { %v812_v8 = vcombine.high %v804_v4, %v3734_v24  ;;  %v813_v10 = vcombine.high %v811_v5, %v3734_v24  ;;  %v850_v11 = vpack.i.b16 %v838_v61, %v804_v4  ;;  %v852_v12 = vshrl.u32 %v804_v4, 16 }
 0x37f   : > { %v866_v15 = vpack.i.b16 %v845_v0, %v811_v5  ;;  %v868_v16 = vshrl.u32 %v811_v5, 16  ;;  %v3740_v0 = vmov -1e+30   ;;  %vm1828_vm5 = vcmp.gt.s32.totalorder %v1827_v1, %v4164_v50 }
 0x380   : > { %v854_v17 = vpack.i.b16 %v853_v7, %v852_v12  ;;  %v858_v18 = vpack.i.b16 %v846_v3, %v812_v8  ;;  %v860_v19 = vshrl.u32 %v812_v8, 16  ;;  %v874_v20 = vpack.i.b16 %v847_v6, %v813_v10  ;;  %1287 = vst.msk [vmem:[#allocation4] sm:$0xff] %vm1286_vm4, %v3740_v0  ;;  %1288 = vst.msk [vmem:[#allocation4 + $0x8] sm:$0xff] %vm1286_vm4, %v3740_v0 }
 0x381   : > { %v870_v22 = vpack.i.b16 %v869_v14, %v868_v16  ;;  %v876_v23 = vshrl.u32 %v813_v10, 16  ;;  %v880_v26 = vcombine.low %v850_v11, %v866_v15  ;;  %1289 = vst.msk [vmem:[#allocation4 + $0x10] sm:$0xff] %vm1286_vm4, %v3740_v0  ;;  %1290 = vst.msk [vmem:[#allocation4 + $0x18] sm:$0xff] %vm1286_vm4, %v3740_v0  ;;  %v1829_v2 = vsel %vm1828_vm5, -1e+30, %v3732_v9 }
 0x382   : > { %v862_v25 = vpack.i.b16 %v861_v13, %v860_v19  ;;  %v888_v27 = vcombine.low %v858_v18, %v874_v20 }
 0x383   : > { %v878_v28 = vpack.i.b16 %v877_v21, %v876_v23  ;;  %v905_v29 = vcombine.low %v854_v17, %v870_v22  ;;  %v887_v32 = vrot.slane %v880_v26, %v4167_v52 }
 0x384   : > { %v895_v30 = vrot.slane %v888_v27, %v4167_v52  ;;  %v3016_v27 = vld [vmem:[#allocation15] ss:$0 sm:$0xff] }
 0x385   : > { %v913_v31 = vcombine.low %v862_v25, %v878_v28  ;;  %v912_v33 = vrot.slane %v905_v29, %v4167_v52  ;;  %v1090_v28 = vadd.f32 %v3016_v27, %v4151_v37 }
 0x386   : > { %v896_v35 = vcombine.low %v887_v32, %v895_v30 }
 0x387   : > { %v920_v34 = vrot.slane %v913_v31, %v4167_v52  ;;  %v1095_v29 = vpack.c.bf16 %v1090_v28, %v1090_v28  ;;  %v4247_v30 = vld [vmem:[#allocation4] sm:$0xff]  ;;  %v4249_v31 = vld [vmem:[#allocation4 + $0x8] sm:$0xff] }
 0x388   : > { %v903_v39 = vrot.slane %v896_v35, %v4171_v56 }
 0x389   : > { %v921_v36 = vcombine.low %v912_v33, %v920_v34 }
 0x38a   : > { %v933_v47 = vshrl.u32 %v903_v39, 16  ;;  %v904_v59 = vcombine.high %v903_v39, %v3734_v24 }
 0x38b   : > { %v928_v38 = vrot.slane %v921_v36, %v4171_v56 }
 0x38c   : > { %v939_v61 = vshrl.u32 %v904_v59, 16 }
 0x38d   : > { %v934_v43 = vshrl.u32 %v928_v38, 16  ;;  %v932_v48 = vpack.i.b16 %v928_v38, %v903_v39  ;;  %v929_v51 = vcombine.high %v928_v38, %v3734_v24  ;;  %v4267_v38 = vld [vmem:[#allocation4 + $0x10] sm:$0xff]  ;;  %v4269_v39 = vld [vmem:[#allocation4 + $0x18] sm:$0xff] }
 0x38e   : > { %v1014_v40 = vpop.trf.xlu1 }
 0x38f   : > { %v3012_v41 = vcombine.low %v1014_v40, %v1014_v40  ;;  %v3013_v42 = vcombine.high %v1014_v40, %v1014_v40  ;;  %v935_v53 = vpack.i.b16 %v934_v43, %v933_v47  ;;  %v940_v60 = vshrl.u32 %v929_v51, 16 }
 0x390   : > { %v938_v62 = vpack.i.b16 %v929_v51, %v904_v59 }
 0x391   : > { %v1835_v44 = vsel %vm1833_vm3, %v3012_v41, 0  ;;  %v1881_v45 = vsel %vm1833_vm3, %v3013_v42, 0  ;;  %v941_v63 = vpack.i.b16 %v940_v60, %v939_v61 }
 0x392   : > { %3124 = vmatpush3.bf16.msra.mxu1 %v1835_v44  ;;  %3130 = vmatpush3.bf16.msra.mxu0 %v1881_v45  ;;  %v1015_v49 = vpop.trf.xlu1 }
 0x393   : > { %v3014_v54 = vcombine.low %v1015_v49, %v1015_v49  ;;  %v3015_v55 = vcombine.high %v1015_v49, %v1015_v49  ;;  %3135 = vmatprep.subr.bf16.mxu1 %v3732_v9  ;;  %3141 = vmatprep.subr.bf16.mxu0 %v3732_v9  ;;  %v1109_v49 = vrot.slane %v1095_v29, %v4167_v52 }
 0x395   : > { %3126 = vmatmul.mubr.msk.bf16.vlgmr.msra.gmra.mrb[4].mxu1 %vm1295_vm2, %v932_v48  ;;  %3132 = vmatmul.mubr.msk.bf16.vlgmr.msra.gmra.mrb[8].mxu0 %vm1295_vm2, %v935_v53  ;;  %v1927_v57 = vsel %vm1833_vm3, %v3014_v54, 0  ;;  %v1973_v58 = vsel %vm1833_vm3, %v3015_v55, 0 }
 0x396   : > { %3136 = vmatpush3.bf16.msra.mxu1 %v1927_v57  ;;  %3142 = vmatpush3.bf16.msra.mxu0 %v1973_v58 }
 0x397   : > { %3137 = vmatprep.mubr.msk.bf16.mxu1 %vm3733_vm1, %v3732_v9  ;;  %3143 = vmatprep.mubr.msk.bf16.mxu0 %vm3733_vm1, %v3732_v9 }
 0x398   : > { %3147 = vmatprep.subr.bf16.mxu1 %v3732_v9  ;;  %3153 = vmatprep.subr.bf16.mxu0 %v3732_v9 }
 0x39d   : > { %3138 = vmatmul.mubr.msk.bf16.vlgmr.msra.gmra.mrb[8].mxu1 %vm1295_vm2, %v938_v62  ;;  %3144 = vmatmul.mubr.msk.bf16.vlgmr.msra.gmra.mrb[12].mxu0 %vm1295_vm2, %v941_v63 }
 0x39e   : > { %3149 = vmatprep.mubr.msk.bf16.mxu1 %vm3733_vm1, %v3732_v9  ;;  %3155 = vmatprep.mubr.msk.bf16.mxu0 %vm3733_vm1, %v3732_v9 }
 0x468   : > { %v1871_v3 = vpop.f32.mrb[4].mxu1  ;;  %v1917_v4 = vpop.f32.mrb[8].mxu0 }
 0x469   : > { %v4227_v5 = vadd.f32 %v1871_v3, %v1829_v2  ;;  %v4229_v6 = vadd.f32 %v1917_v4, %v1829_v2  ;;  %v3127_v7 = vpop.f32.mrb[5].mxu1  ;;  %v3133_v8 = vpop.f32.mrb[9].mxu0 }
 0x46a   : > { %v1874_v10 = vpop.f32.mrb[6].mxu1  ;;  %v1920_v11 = vpop.f32.mrb[10].mxu0 }
 0x46b   : > { %v3128_v12 = vpop.f32.mrb[7].mxu1  ;;  %v3134_v13 = vpop.f32.mrb[11].mxu0  ;;  %v2019_v14 = vsel %vm1295_vm2, %v4227_v5, -inf  ;;  %v2022_v46 = vsel %vm1295_vm2, %v4229_v6, -inf }
 0x46c   : > { %2020 = vmax.xlane.f32.xlu0 %v2019_v14  ;;  %2023 = vmax.xlane.f32.xlu1 %v2022_v46 }
 0x470   : > { %v1963_v50 = vpop.f32.mrb[8].mxu1  ;;  %v2009_v15 = vpop.f32.mrb[12].mxu0 }
 0x471   : > { %v4235_v16 = vadd.f32 %v1963_v50, %v1829_v2  ;;  %v4237_v17 = vadd.f32 %v2009_v15, %v1829_v2  ;;  %v3139_v18 = vpop.f32.mrb[9].mxu1  ;;  %v3145_v19 = vpop.f32.mrb[13].mxu0 }
 0x472   : > { %v1966_v20 = vpop.f32.mrb[10].mxu1  ;;  %v2012_v21 = vpop.f32.mrb[14].mxu0 }
 0x473   : > { %v3140_v22 = vpop.f32.mrb[11].mxu1  ;;  %v3146_v23 = vpop.f32.mrb[15].mxu0  ;;  %v2025_v25 = vsel %vm1295_vm2, %v4235_v16, -inf  ;;  %v2028_v26 = vsel %vm1295_vm2, %v4237_v17, -inf }
 0x474   : > { %2026 = vmax.xlane.f32.xlu1 %v2025_v25  ;;  %2029 = vmax.xlane.f32.xlu0 %v2028_v26 }
 0x485   : > { %1097 = vrot.lane.b32.xlu1 %v1095_v29, %s3736_s23 }
 0x489   : > { %1101 = vrot.lane.b32.xlu1 %v1095_v29, %s3735_s18 }
 0x48a   : > { %1099 = vrot.lane.b32.xlu0 %v1095_v29, %s3737_s30 }
 0x4f9   : > { %v2021_v32 = vpop.xlane.xlu0 %2020  ;;  %v2024_v33 = vpop.xlane.xlu1 %2023 }
 0x4fa   : > { %v4252_v34 = vmax.f32 %v4247_v30, %v2021_v32  ;;  %v4255_v35 = vmax.f32 %v4249_v31, %v2024_v33 }
 0x4fc   : > { %v2035_v37 = vsub.f32 %v4247_v30, %v4252_v34  ;;  %2331 = vst.msk [vmem:[#allocation4] sm:$0xff] %vm1286_vm4, %v4252_v34  ;;  %v2036_v36 = vsub.f32 %v4249_v31, %v4255_v35  ;;  %2332 = vst.msk [vmem:[#allocation4 + $0x8] sm:$0xff] %vm1286_vm4, %v4255_v35  ;;  %2049 = vperm.xlu1 %3349, %v4252_v34   ;;  %2054 = vperm.xlu0 %3350, %v4255_v35   ;;  %v2081_v31 = vld [vmem:[#allocation5 + $0x10] sm:$0xff] }
 0x501   : > { %v2027_v40 = vpop.xlane.xlu1 %2026  ;;  %v2030_v41 = vpop.xlane.xlu0 %2029 }
 0x502   : > { %v4272_v42 = vmax.f32 %v4267_v38, %v2027_v40  ;;  %v4275_v43 = vmax.f32 %v4269_v39, %v2030_v41 }
 0x504   : > { %v2037_v44 = vsub.f32 %v4267_v38, %v4272_v42  ;;  %2333 = vst.msk [vmem:[#allocation4 + $0x10] sm:$0xff] %vm1286_vm4, %v4272_v42  ;;  %v2038_v45 = vsub.f32 %v4269_v39, %v4275_v43  ;;  %2334 = vst.msk [vmem:[#allocation4 + $0x18] sm:$0xff] %vm1286_vm4, %v4275_v43  ;;  %2059 = vperm.xlu1 %3349, %v4272_v42   ;;  %v2041_v42 = vmul.f32 1.442695, %v2036_v36 }
 0x505   : > { %v1098_v47 = vpop.permute.xlu1 %1097  ;;  %v1100_v48 = vpop.permute.xlu0 %1099 }
 0x506   : > { %v1117_v51 = vrot.slane %v1100_v48, %v4167_v52  ;;  %v1143_v59 = vrot.slane %v1098_v47, %v4167_v52 }
 0x508   : > { %v1118_v53 = vcombine.low %v1109_v49, %v1117_v51  ;;  %v1119_v54 = vcombine.high %v1109_v49, %v1117_v51  ;;  %2064 = vperm.xlu1 %3349, %v4275_v43  }
 0x509   : > { %v1102_v55 = vpop.permute.xlu1 %1101 }
 0x50a   : > { %v1126_v57 = vrot.slane %v1118_v53, %v4171_v56  ;;  %v1151_v58 = vrot.slane %v1102_v55, %v4167_v52  ;;  %v1133_v60 = vrot.slane %v1119_v54, %v4171_v56 }
 0x50c   : > { %v1152_v61 = vcombine.low %v1143_v59, %v1151_v58  ;;  %v1153_v62 = vcombine.high %v1143_v59, %v1151_v58  ;;  %v1134_v63 = vcombine.high %v1126_v57, %v3734_v24  ;;  %v1135_v2 = vcombine.high %v1133_v60, %v3734_v24 }
 0x50d   : > { %v1174_v3 = vshrl.u32 %v1126_v57, 16  ;;  %v1190_v12 = vshrl.u32 %v1133_v60, 16 }
 0x50e   : > { %v1160_v0 = vrot.slane %v1152_v61, %v4171_v56  ;;  %v1167_v1 = vrot.slane %v1153_v62, %v4171_v56  ;;  %v1182_v11 = vshrl.u32 %v1134_v63, 16  ;;  %v1198_v19 = vshrl.u32 %v1135_v2, 16 }
 0x510   : > { %v1168_v4 = vcombine.high %v1160_v0, %v3734_v24  ;;  %v1169_v7 = vcombine.high %v1167_v1, %v3734_v24  ;;  %v1172_v8 = vpack.i.b16 %v1160_v0, %v1126_v57  ;;  %v1175_v10 = vshrl.u32 %v1160_v0, 16 }
 0x511   : > { %v1188_v13 = vpack.i.b16 %v1167_v1, %v1133_v60  ;;  %v1191_v14 = vshrl.u32 %v1167_v1, 16 }
 0x512   : > { %v1176_v46 = vpack.i.b16 %v1175_v10, %v1174_v3  ;;  %v1180_v50 = vpack.i.b16 %v1168_v4, %v1134_v63  ;;  %v1183_v15 = vshrl.u32 %v1168_v4, 16  ;;  %v1196_v18 = vpack.i.b16 %v1169_v7, %v1135_v2 }
 0x513   : > { %v1192_v20 = vpack.i.b16 %v1191_v14, %v1190_v12  ;;  %v1199_v21 = vshrl.u32 %v1169_v7, 16  ;;  %v1202_v22 = vcombine.low %v1172_v8, %v1188_v13 }
 0x514   : > { %v1184_v23 = vpack.i.b16 %v1183_v15, %v1182_v11  ;;  %v1210_v25 = vcombine.low %v1180_v50, %v1196_v18 }
 0x515   : > { %v1200_v26 = vpack.i.b16 %v1199_v21, %v1198_v19  ;;  %v1227_v27 = vcombine.low %v1176_v46, %v1192_v20  ;;  %v1209_v28 = vrot.slane %v1202_v22, %v4167_v52  ;;  %v2039_v19 = vmul.f32 1.442695, %v2035_v37 }
 0x516   : > { %v1217_v29 = vrot.slane %v1210_v25, %v4167_v52  ;;  %v2043_v21 = vmul.f32 1.442695, %v2037_v44  ;;  %v2045_v22 = vmul.f32 1.442695, %v2038_v45  ;;  %v2079_v45 = vld [vmem:[#allocation5] sm:$0xff] }
 0x517   : > { %v1235_v32 = vcombine.low %v1184_v23, %v1200_v26  ;;  %v1234_v40 = vrot.slane %v1227_v27, %v4167_v52  ;;  %v2080_v26 = vld [vmem:[#allocation5 + $0x8] sm:$0xff] }
 0x518   : > { %v1218_v33 = vcombine.low %v1209_v28, %v1217_v29 }
 0x519   : > { %v1242_v41 = vrot.slane %v1235_v32, %v4167_v52 }
 0x51a   : > { %v1225_v47 = vrot.slane %v1218_v33, %v4171_v56 }
 0x51b   : > { %v1243_v48 = vcombine.low %v1234_v40, %v1242_v41  ;;  %v2082_v41 = vld [vmem:[#allocation5 + $0x18] sm:$0xff] }
 0x51c   : > { %v1226_v49 = vcombine.high %v1225_v47, %v3734_v24  ;;  %v1256_v54 = vshrl.u32 %v1225_v47, 16 }
 0x51d   : > { %v1250_v51 = vrot.slane %v1243_v48, %v4171_v56 }
 0x51e   : > { %v1264_v58 = vshrl.u32 %v1226_v49, 16 }
 0x51f   : > { %v1254_v53 = vpack.i.b16 %v1250_v51, %v1225_v47  ;;  %v1257_v55 = vshrl.u32 %v1250_v51, 16  ;;  %v1251_v57 = vcombine.high %v1250_v51, %v3734_v24 }
 0x521   : > { %v2143_v59 = vsel %vm1833_vm3, %v1254_v53, 0  ;;  %v1258_v60 = vpack.i.b16 %v1257_v55, %v1256_v54  ;;  %v1262_v61 = vpack.i.b16 %v1251_v57, %v1226_v49  ;;  %v1265_v62 = vshrl.u32 %v1251_v57, 16 }
 0x522   : > { %3148 = vmatpush3.bf16.msra.mxu1 %v2143_v59 }
 0x523   : > { %v2189_v63 = vsel %vm1833_vm3, %v1258_v60, 0  ;;  %3159 = vmatprep.subr.bf16.mxu1 %v3732_v9  ;;  %v1266_v0 = vpack.i.b16 %v1265_v62, %v1264_v58 }
 0x524   : > { %3154 = vmatpush3.bf16.msra.mxu0 %v2189_v63  ;;  %v2107_v63 = vld [vmem:[#allocation6] sm:$0xff] }
 0x525   : > { %3165 = vmatprep.subr.bf16.mxu0 %v3732_v9 }
 0x57b   : > { %v2050_v1 = vpop.permute.xlu1 %2049  ;;  %v2055_v2 = vpop.permute.xlu0 %2054 }
 0x57c   : > { %v2067_v3 = vsub.f32 %v4227_v5, %v2050_v1  ;;  %v2068_v24 = vsub.f32 %v4229_v6, %v2055_v2 }
 0x57e   : > { %v2071_v4 = vmul.f32 1.442695, %v2067_v3  ;;  %v2073_v7 = vmul.f32 1.442695, %v2068_v24 }
 0x580   : > { %3367 = vpow2.f32 %v2071_v4 }
 0x581   : > { %3369 = vpow2.f32 %v2073_v7 }
 0x583   : > { %v2060_v8 = vpop.permute.xlu1 %2059 }
 0x584   : > { %v2069_v10 = vsub.f32 %v4235_v16, %v2060_v8  ;;  %v2235_v16 = vsel %vm1833_vm3, %v1262_v61, 0 }
 0x586   : > { %v2075_v11 = vmul.f32 1.442695, %v2069_v10 }
 0x587   : > { %v2065_v12 = vpop.permute.xlu1 %2064 }
 0x588   : > { %3371 = vpow2.f32 %v2075_v11  ;;  %v2070_v13 = vsub.f32 %v4237_v17, %v2065_v12  ;;  %v2281_v17 = vsel %vm1833_vm3, %v1266_v0, 0  ;;  %v2108_v0 = vld [vmem:[#allocation6 + $0x8] sm:$0xff] }
 0x58a   : > { %v3368_v14 = vpop.eup %3367  ;;  %v2077_v46 = vmul.f32 1.442695, %v2070_v13 }
 0x58b   : > { %v3370_v50 = vpop.eup %3369  ;;  %v2087_v15 = vsel %vm1295_vm2, %v3368_v14, 0.0  ;;  %v2135_v5 = vpack.c.bf16 %v3368_v14, %v3368_v14 }
 0x58c   : > { %3373 = vpow2.f32 %v2077_v46  ;;  %2088 = vadd.xlane.f32.xlu0 %v2087_v15  ;;  %v2090_v6 = vsel %vm1295_vm2, %v3370_v50, 0.0  ;;  %v2136_v18 = vpack.c.bf16 %v3370_v50, %v3370_v50  ;;  %v2109_v50 = vld [vmem:[#allocation6 + $0x10] sm:$0xff] }
 0x58d   : > { %2091 = vadd.xlane.f32.xlu1 %v2090_v6  ;;  %3150 = vmatmul.mubr.msk.bf16.vlgmr.msra.gmra.mrb[12].mxu1 %vm1295_vm2, %v2135_v5  ;;  %3375 = vpow2.f32 %v2039_v19  ;;  %v2110_v6 = vld [vmem:[#allocation6 + $0x18] sm:$0xff] }
 0x58e   : > { %3156 = vmatmul.mubr.msk.bf16.vlgmr.msra.gmra.mrb[16].mxu0 %vm1295_vm2, %v2136_v18  ;;  %3160 = vmatpush3.bf16.msra.mxu1 %v2235_v16  ;;  %3377 = vpow2.f32 %v2043_v21 }
 0x58f   : > { %3166 = vmatpush3.bf16.msra.mxu0 %v2281_v17  ;;  %3161 = vmatprep.mubr.msk.bf16.mxu1 %vm3733_vm1, %v3732_v9  ;;  %3379 = vpow2.f32 %v2045_v22 }
 0x590   : > { %3167 = vmatprep.mubr.msk.bf16.mxu0 %vm3733_vm1, %v3732_v9  ;;  %3171 = vmatprep.subr.bf16.mxu1 %v3732_v9  ;;  %3381 = vpow2.f32 %v2041_v42 }
 0x591   : > { %3179 = vmatprep.subr.bf16.mxu0 %v3732_v9 }
 0x592   : > { %v3372_v20 = vpop.eup %3371 }
 0x593   : > { %v2093_v30 = vsel %vm1295_vm2, %v3372_v20, 0.0  ;;  %v2137_v34 = vpack.c.bf16 %v3372_v20, %v3372_v20 }
 0x594   : > { %2094 = vadd.xlane.f32.xlu0 %v2093_v30 }
 0x595   : > { %3162 = vmatmul.mubr.msk.bf16.vlgmr.msra.gmra.mrb[16].mxu1 %vm1295_vm2, %v2137_v34 }
 0x596   : > { %v3374_v37 = vpop.eup %3373  ;;  %3175 = vmatprep.mubr.msk.bf16.mxu1 %vm3733_vm1, %v3732_v9 }
 0x597   : > { %v2096_v23 = vsel %vm1295_vm2, %v3374_v37, 0.0  ;;  %v2138_v25 = vpack.c.bf16 %v3374_v37, %v3374_v37  ;;  %v3376_v38 = vpop.eup %3375 }
 0x598   : > { %2097 = vadd.xlane.f32.xlu0 %v2096_v23  ;;  %v3378_v44 = vpop.eup %3377  ;;  %v2083_v27 = vmul.f32 %v3376_v38, %v2079_v45 }
 0x599   : > { %3168 = vmatmul.mubr.msk.bf16.vlgmr.msra.gmra.mrb[20].mxu0 %vm1295_vm2, %v2138_v25  ;;  %v3380_v39 = vpop.eup %3379  ;;  %v2085_v35 = vmul.f32 %v3378_v44, %v2081_v31 }
 0x59a   : > { %3183 = vmatprep.mubr.msk.bf16.mxu0 %vm3733_vm1, %v3732_v9  ;;  %v3382_v43 = vpop.eup %3381  ;;  %v2086_v49 = vmul.f32 %v3380_v39, %v2082_v41 }
 0x59b   : > { %v2084_v28 = vmul.f32 %v3382_v43, %v2080_v26 }
 0x59e   : > { %2113 = vperm.xlu1 %3349, %v3376_v38  }
 0x5a2   : > { %2123 = vperm.xlu1 %3349, %v3378_v44  }
 0x5a6   : > { %2128 = vperm.xlu1 %3349, %v3380_v39  }
 0x5ae   : > { %2118 = vperm.xlu0 %3350, %v3382_v43  }
 0x619   : > { %v2089_v29 = vpop.xlane.xlu0 %2088 }
 0x61a   : > { %v2092_v32 = vpop.xlane.xlu1 %2091  ;;  %v2099_v33 = vadd.f32 %v2089_v29, %v2083_v27 }
 0x61b   : > { %v2100_v40 = vadd.f32 %v2092_v32, %v2084_v28 }
 0x61c   : > { %2103 = vst.msk [vmem:[#allocation5] sm:$0xff] %vm1286_vm4, %v2099_v33 }
 0x61d   : > { %2104 = vst.msk [vmem:[#allocation5 + $0x8] sm:$0xff] %vm1286_vm4, %v2100_v40 }
 0x61e   : > { %v2114_v62 = vpop.permute.xlu1 %2113 }
 0x61f   : > { %v2131_v2 = vmul.f32 %v2114_v62, %v2107_v63 }
 0x621   : > { %v2095_v36 = vpop.xlane.xlu0 %2094 }
 0x622   : > { %v2101_v47 = vadd.f32 %v2095_v36, %v2085_v35  ;;  %v2124_v3 = vpop.permute.xlu1 %2123 }
 0x623   : > { %v2339_v48 = vld [vmem:[#allocation5] sm:$0xff]  ;;  %v2133_v5 = vmul.f32 %v2124_v3, %v2109_v50 }
 0x624   : > { %2105 = vst.msk [vmem:[#allocation5 + $0x10] sm:$0xff] %vm1286_vm4, %v2101_v47  ;;  %v2340_v51 = vld [vmem:[#allocation5 + $0x8] sm:$0xff]  ;;  %3383 = vrcp.f32 %v2339_v48 }
 0x625   : > { %v2098_v53 = vpop.xlane.xlu0 %2097  ;;  %3385 = vrcp.f32 %v2340_v51 }
 0x626   : > { %v2102_v54 = vadd.f32 %v2098_v53, %v2086_v49  ;;  %v2129_v18 = vpop.permute.xlu1 %2128 }
 0x627   : > { %v2134_v21 = vmul.f32 %v2129_v18, %v2110_v6 }
 0x628   : > { %2106 = vst.msk [vmem:[#allocation5 + $0x18] sm:$0xff] %vm1286_vm4, %v2102_v54 }
 0x62b   : > { %v2341_v55 = vld [vmem:[#allocation5 + $0x10] sm:$0xff] }
 0x62c   : > { %3387 = vrcp.f32 %v2341_v55 }
 0x62d   : > { %v2119_v1 = vpop.permute.xlu0 %2118 }
 0x62e   : > { %v3384_v57 = vpop.eup %3383  ;;  %v2132_v24 = vmul.f32 %v2119_v1, %v2108_v0 }
 0x62f   : > { %v3386_v58 = vpop.eup %3385  ;;  %2349 = vperm.xlu0 %3350, %v3384_v57   ;;  %v2342_v59 = vld [vmem:[#allocation5 + $0x18] sm:$0xff]  ;;  %v3357_v57 = vld [vmem:[%s4482_s9] sm:$0xff]  }
 0x630   : > { %2354 = vperm.xlu1 %3349, %v3386_v58   ;;  %3389 = vrcp.f32 %v2342_v59  ;;  %3172 = vmatpush3.bf16.msra.mxu1 %v3357_v57 }
 0x631   : > { %3173 = vmatprep.subr.bf16.mxu1 %v3732_v9 }
 0x636   : > { %v3388_v60 = vpop.eup %3387 }
 0x637   : > { %2359 = vperm.xlu0 %3350, %v3388_v60  }
 0x63a   : > { %v3390_v61 = vpop.eup %3389 }
 0x63b   : > { %2364 = vperm.xlu1 %3349, %v3390_v61  }
 0x660   : > { %v2179_v4 = vpop.f32.mrb[12].mxu1 }
 0x661   : > { %v2323_v7 = vadd.f32 %v2179_v4, %v2131_v2  ;;  %v2225_v8 = vpop.f32.mrb[16].mxu0  ;;  %v3151_v10 = vpop.f32.mrb[13].mxu1  ;;  %v3358_v2 = vld [vmem:[%s4482_s9 + $0x8] sm:$0xff]  }
 0x662   : > { %v2324_v11 = vadd.f32 %v2225_v8, %v2132_v24  ;;  %v3157_v12 = vpop.f32.mrb[17].mxu0  ;;  %v2182_v13 = vpop.f32.mrb[14].mxu1  ;;  %3174 = vmatpush3.bf16.msra.mxu1 %v3358_v2 }
 0x663   : > { %2327 = vst.msk [vmem:[#allocation6] sm:$0xff] %vm1295_vm2, %v2323_v7  ;;  %v2228_v14 = vpop.f32.mrb[18].mxu0  ;;  %v3152_v46 = vpop.f32.mrb[15].mxu1  ;;  %3187 = vmatprep.subr.bf16.mxu1 %v3732_v9 }
 0x664   : > { %2328 = vst.msk [vmem:[#allocation6 + $0x8] sm:$0xff] %vm1295_vm2, %v2324_v11  ;;  %v3158_v15 = vpop.f32.mrb[19].mxu0 }
 0x668   : > { %v2271_v16 = vpop.f32.mrb[16].mxu1 }
 0x669   : > { %v2325_v17 = vadd.f32 %v2271_v16, %v2133_v5  ;;  %v3163_v19 = vpop.f32.mrb[17].mxu1 }
 0x66a   : > { %v2274_v20 = vpop.f32.mrb[18].mxu1  ;;  %v2335_v45 = vld [vmem:[#allocation6] sm:$0xff] }
 0x66b   : > { %2329 = vst.msk [vmem:[#allocation6 + $0x10] sm:$0xff] %vm1295_vm2, %v2325_v17  ;;  %v3164_v30 = vpop.f32.mrb[19].mxu1  ;;  %v2336_v27 = vld [vmem:[#allocation6 + $0x8] sm:$0xff] }
 0x66c   : > { %v2317_v34 = vpop.f32.mrb[20].mxu0  ;;  %v3041_v30 = vld [vmem:[#allocation16] ss:$0 sm:$0xff] }
 0x66d   : > { %v2326_v37 = vadd.f32 %v2317_v34, %v2134_v21  ;;  %v3169_v22 = vpop.f32.mrb[21].mxu0 }
 0x66e   : > { %v2320_v23 = vpop.f32.mrb[22].mxu0 }
 0x66f   : > { %2330 = vst.msk [vmem:[#allocation6 + $0x18] sm:$0xff] %vm1295_vm2, %v2326_v37  ;;  %v3170_v25 = vpop.f32.mrb[23].mxu0 }
 0x670   : > { %v3397_v25 = vld [vmem:[%s4107_s28] sm:$0xff] }
 0x672   : > { %v2337_v44 = vld [vmem:[#allocation6 + $0x10] sm:$0xff] }
 0x676   : > { %v2338_v29 = vld [vmem:[#allocation6 + $0x18] sm:$0xff] }
 0x6ae   : > { %v2350_v38 = vpop.permute.xlu0 %2349 }
 0x6af   : > { %v2355_v42 = vpop.permute.xlu1 %2354  ;;  %v2367_v26 = vmul.f32 %v2350_v38, %v2335_v45 }
 0x6b0   : > { %v2368_v32 = vmul.f32 %v2355_v42, %v2336_v27 }
 0x6b6   : > { %v2360_v39 = vpop.permute.xlu0 %2359 }
 0x6b7   : > { %v2369_v43 = vmul.f32 %v2360_v39, %v2337_v44 }
 0x6b9   : > { %v2371_v33 = vcombine.low %v2367_v26, %v2369_v43  ;;  %v2372_v40 = vcombine.high %v2367_v26, %v2369_v43 }
 0x6ba   : > { %v2365_v28 = vpop.permute.xlu1 %2364 }
 0x6bb   : > { %v2370_v31 = vmul.f32 %v2365_v28, %v2338_v29  ;;  %v2379_v41 = vrot.slane %v2371_v33, %v4167_v52  ;;  %v2386_v47 = vrot.slane %v2372_v40, %v4167_v52  ;;  %v3359_v28 = vld [vmem:[%s4486_s13] sm:$0xff]   ;;  %v3360_v29 = vld [vmem:[%s4486_s13 + $0x8] sm:$0xff]  }
 0x6bc   : > { %3180 = vmatpush3.bf16.msra.mxu0 %v3359_v28 }
 0x6bd   : > { %v2387_v35 = vcombine.low %v2368_v32, %v2370_v31  ;;  %v2388_v36 = vcombine.high %v2368_v32, %v2370_v31  ;;  %3181 = vmatprep.subr.bf16.mxu0 %v3732_v9 }
 0x6bf   : > { %v2395_v48 = vrot.slane %v2387_v35, %v4167_v52  ;;  %v2402_v49 = vrot.slane %v2388_v36, %v4167_v52  ;;  %v3045_v35 = vld [vmem:[#allocation18] ss:$0 sm:$0xff] }
 0x6c0   : > { %3182 = vmatpush3.bf16.msra.mxu0 %v3360_v29 }
 0x6c1   : > { %v2403_v51 = vcombine.low %v2379_v41, %v2395_v48  ;;  %v2404_v53 = vcombine.high %v2379_v41, %v2395_v48  ;;  %v2419_v54 = vcombine.low %v2386_v47, %v2402_v49  ;;  %v2420_v55 = vcombine.high %v2386_v47, %v2402_v49  ;;  %v3046_v41 = vld [vmem:[#allocation19] ss:$0 sm:$0xff] }
 0x6c3   : > { %v2411_v58 = vrot.slane %v2403_v51, %v4171_v56  ;;  %v2418_v59 = vrot.slane %v2404_v53, %v4171_v56  ;;  %v2427_v60 = vrot.slane %v2419_v54, %v4171_v56  ;;  %v2434_v61 = vrot.slane %v2420_v55, %v4171_v56  ;;  %v3361_v51 = vld [vmem:[%s4488_s15] sm:$0xff]   ;;  %v3362_v53 = vld [vmem:[%s4488_s15 + $0x8] sm:$0xff]   ;;  %v3363_v54 = vld [vmem:[%s4488_s15 + $0x10] sm:$0xff]  }
 0x6c4   : > { %v3364_v55 = vld [vmem:[%s4488_s15 + $0x18] sm:$0xff]  }
 0x6c5   : > { %v2439_v62 = vcombine.low %v2411_v58, %v2418_v59  ;;  %v3039_v63 = vcombine.high %v2411_v58, %v2418_v59  ;;  %v2455_v0 = vcombine.low %v2427_v60, %v2434_v61  ;;  %v3040_v1 = vcombine.high %v2427_v60, %v2434_v61 }
 0x6c7   : > { %v2446_v3 = vrot.slane %v2439_v62, %v4167_v52  ;;  %v2454_v24 = vrot.slane %v3039_v63, %v4167_v52  ;;  %v2462_v4 = vrot.slane %v2455_v0, %v4167_v52  ;;  %v2470_v7 = vrot.slane %v3040_v1, %v4167_v52 }
 0x6c9   : > { %v2472_v8 = vcombine.high %v2446_v3, %v2454_v24  ;;  %v2488_v10 = vcombine.high %v2462_v4, %v2470_v7  ;;  %v2471_v11 = vcombine.low %v2446_v3, %v2454_v24  ;;  %v2487_v12 = vcombine.low %v2462_v4, %v2470_v7 }
 0x6cb   : > { %v2486_v13 = vrot.slane %v2472_v8, %v4171_v56  ;;  %v2502_v14 = vrot.slane %v2488_v10, %v4171_v56  ;;  %v2479_v46 = vrot.slane %v2471_v11, %v4171_v56  ;;  %v2495_v50 = vrot.slane %v2487_v12, %v4171_v56 }
 0x6cd   : > { %v2505_v15 = vcombine.low %v2486_v13, %v2502_v14  ;;  %v2504_v5 = vcombine.high %v2479_v46, %v2495_v50  ;;  %v2503_v6 = vcombine.low %v2479_v46, %v2495_v50  ;;  %v2506_v52 = vcombine.high %v2486_v13, %v2502_v14 }
 0x6cf   : > { %2512 = vrot.lane.b32.xlu1 %v2505_v15, %s3741_s29  ;;  %2508 = vrot.lane.b32.xlu0 %v2504_v5, %s3742_s21  ;;  %s4530_s29 = sld [smem:[#allocation39_spill]]  ;;  %s4531_s21 = sld [smem:[#allocation29_spill]] }
 0x6d3   : > { %2516 = vrot.lane.b32.xlu0 %v2506_v52, %s3743_s14 }
 0x6d5   : > { %v3047_v57 = vld [vmem:[%s4530_s29] ss:$0 sm:$0xff]  ;;  %s662_s14 = sand.u32 1, %s4531_s21   ;;  %s3626_s29 = sshll.u32 %s3744_s16, 4  ;;  %s3627_s29 = int_to_ptr.vmem [resolvable:$false] %s3626_s29 }
 0x6d6   : > { %s3000_s26 = sshll.u32 %s662_s14, 3  ;;  %s2802_s27 = scalar_lea.sflag [#allocation9], %s662_s14 }
 0x6d7   : > { %s664_s17 = scalar_lea.vmem [#allocation21], %s3000_s26  ;;  %s3628_s21 = scalar_lea.vmem %s3627_s29, 256 }
 0x6d8   : > { %s2816_s18 = sshll.u32 %s664_s17, 4  ;;  %s4427_s18 = int_to_ptr.vmem [resolvable:$true] %s2816_s18 }
 0x6d9   : > { %s3622_s24 = scalar_lea.vmem %s4427_s18, 128  ;;  %p3629_p2 = scmp.lt.s32.totalorder %s4427_s18, %s3627_s29 }
 0x6da   : > { %p3623_p1 = scmp.ne.s32.totalorder %s4427_s18, %s3622_s24  ;;  %p3630_p3 = scmp.lt.s32.totalorder %s3628_s21, %s3622_s24 }
 0x6dc   : > { %p3624_p10 = pnand %p3623_p1, %p4535_p8  ;;  %p3631_p5 = por %p3630_p3, %p3629_p2 }
 0x6de   : > { %p3625_p11 = pneg %p3624_p10 }
 0x6e0   : > { %p3632_p6 = pnand %p3631_p5, %p3625_p11 }
 0x741   : > { %v2509_v18 = vpop.permute.xlu0 %2508  ;;  %v2513_v16 = vpop.permute.xlu1 %2512 }
 0x742   : > { %v2519_v17 = vsel %vm1295_vm2, %v2503_v6, %v2509_v18 }
 0x743   : > { %v2521_v20 = vsel %vm2520_vm6, %v2519_v17, %v2513_v16 }
 0x745   : > { %v2517_v19 = vpop.permute.xlu0 %2516 }
 0x746   : > { %v2523_v56 = vsel %vm2522_vm7, %v2521_v20, %v2517_v19 }
 0x747   : > { %v2524_v21 = vpack.c.bf16 %v2523_v56, %v2523_v56  ;;  %v3051_v56 = vld [vmem:[%s4532_s22] ss:$0 sm:$0xff] }
 0x749   : > { %3176 = vmatmul.mubr.msk.bf16.vlgmr.msra.gmra.mrb[20].mxu1 %vm676_vm0, %v2524_v21 }
 0x74a   : > { %3195 = vmatprep.mubr.msk.bf16.mxu1 %vm3733_vm1, %v3732_v9  ;;  %3188 = vmatpush3.bf16.msra.mxu1 %v3361_v51 }
 0x74b   : > { %3189 = vmatprep.subr.bf16.mxu1 %v3732_v9 }
 0x74e   : > { %3190 = vmatpush3.bf16.msra.mxu1 %v3362_v53 }
 0x74f   : > { %3191 = vmatprep.subr.bf16.mxu1 %v3732_v9 }
 0x752   : > { %3192 = vmatpush3.bf16.msra.mxu1 %v3363_v54 }
 0x753   : > { %3193 = vmatprep.subr.bf16.mxu1 %v3732_v9 }
 0x756   : > { %3194 = vmatpush3.bf16.msra.mxu1 %v3364_v55 }
 0x81c   : > { %v2585_v34 = vpop.f32.mrb[20].mxu1 }
 0x81d   : > { %v2586_v37 = vadd.f32 %v3041_v30, %v2585_v34  ;;  %v3177_v22 = vpop.f32.mrb[21].mxu1 }
 0x81e   : > { %v2588_v23 = vpop.f32.mrb[22].mxu1 }
 0x81f   : > { %v4384_v38 = vadd.f32 %v3397_v25, %v2586_v37  ;;  %v3178_v42 = vpop.f32.mrb[23].mxu1 }
 0x821   : > { %v2594_v44 = vsel %vm676_vm0, %v4384_v38, 0.0 }
 0x822   : > { %2595 = vadd.xlane.f32.xlu1 %v2594_v44 }
 0x8af   : > { %v2596_v39 = vpop.xlane.xlu1 %2595 }
 0x8b0   : > { %v2597_v43 = vmul.f32 0.03125, %v2596_v39 }
 0x8b2   : > { %v2598_v45 = vsub.f32 %v4384_v38, %v2597_v43 }
 0x8b4   : > { %v2599_v26 = vmul.f32 %v2598_v45, %v2598_v45 }
 0x8b6   : > { %v2600_v27 = vsel %vm676_vm0, %v2599_v26, 0.0 }
 0x8b7   : > { %2601 = vadd.xlane.f32.xlu0 %v2600_v27 }
 0x944   : > { %v2602_v32 = vpop.xlane.xlu0 %2601 }
 0x945   : > { %v2603_v33 = vmul.f32 0.03125, %v2602_v32 }
 0x947   : > { %v2604_v40 = vadd.f32 1e-05, %v2603_v33 }
 0x949   : > { %3391 = vrsqrt.f32 %v2604_v40 }
 0x953   : > { %v3392_v31 = vpop.eup %3391 }
 0x954   : > { %v2606_v36 = vmul.f32 %v3392_v31, %v2598_v45 }
 0x956   : > { %v2613_v47 = vmul.f32 %v3045_v35, %v2606_v36 }
 0x958   : > { %v2620_v48 = vadd.f32 %v3046_v41, %v2613_v47 }
 0x95a   : > { %v2621_v49 = vpack.c.bf16 %v2620_v48, %v2620_v48 }
 0x95c   : > { %3184 = vmatmul.mubr.msk.bf16.vlgmr.msra.gmra.mrb[24].mxu0 %vm676_vm0, %v2621_v49 }
 0xa2f   : > { %v2682_v58 = vpop.f32.mrb[24].mxu0 }
 0xa30   : > { %v2683_v59 = vadd.f32 %v3047_v57, %v2682_v58  ;;  %v3185_v60 = vpop.f32.mrb[25].mxu0 }
 0xa31   : > { %v2685_v61 = vpop.f32.mrb[26].mxu0 }
 0xa32   : > { %v2689_v62 = vmul.f32 0.70710677, %v2683_v59  ;;  %v3186_v63 = vpop.f32.mrb[27].mxu0  ;;  %v2688_v16 = vmul.f32 0.5, %v2683_v59 }
 0xa34   : > { %v2690_v0 = vand.u32 2147483647, %v2689_v62  ;;  %vm2710_vm8 = vcmp.lt.f32.partialorder %v2689_v62, 0.0 }
 0xa36   : > { %v2691_v1 = vmul.f32 0.3275911, %v2690_v0  ;;  %v2704_v9 = vsub.f32 0.0, %v2690_v0 }
 0xa38   : > { %v2692_v2 = vadd.f32 1.0, %v2691_v1  ;;  %v2705_v24 = vmul.f32 %v2704_v9, %v2690_v0 }
 0xa3a   : > { %3393 = vrcp.f32 %v2692_v2  ;;  %v2706_v8 = vmul.f32 1.442695, %v2705_v24 }
 0xa3c   : > { %3395 = vpow2.f32 %v2706_v8 }
 0xa44   : > { %v3394_v3 = vpop.eup %3393 }
 0xa45   : > { %v2695_v4 = vmul.f32 1.0614054, %v3394_v3 }
 0xa46   : > { %v3396_v15 = vpop.eup %3395 }
 0xa47   : > { %v2696_v7 = vadd.f32 -1.4531521, %v2695_v4 }
 0xa49   : > { %v2697_v10 = vmul.f32 %v3394_v3, %v2696_v7 }
 0xa4b   : > { %v2698_v11 = vadd.f32 1.4214138, %v2697_v10 }
 0xa4d   : > { %v2699_v12 = vmul.f32 %v3394_v3, %v2698_v11 }
 0xa4f   : > { %v2700_v13 = vadd.f32 -0.28449672, %v2699_v12 }
 0xa51   : > { %v2701_v14 = vmul.f32 %v3394_v3, %v2700_v13 }
 0xa53   : > { %v2702_v46 = vadd.f32 0.2548296, %v2701_v14 }
 0xa55   : > { %v2703_v50 = vmul.f32 %v3394_v3, %v2702_v46 }
 0xa57   : > { %v2708_v5 = vmul.f32 %v3396_v15, %v2703_v50 }
 0xa59   : > { %v2709_v6 = vsub.f32 1.0, %v2708_v5 }
 0xa5b   : > { %v2711_v52 = vsub.f32 0.0, %v2709_v6 }
 0xa5d   : > { %v2712_v18 = vsel %vm2710_vm8, %v2711_v52, %v2709_v6 }
 0xa5e   : > { %v2713_v17 = vadd.f32 1.0, %v2712_v18 }
 0xa60   : > { %v2714_v19 = vmul.f32 %v2713_v17, %v2688_v16 }
 0xa62   : > { %v2715_v20 = vpack.c.bf16 %v2714_v19, %v2714_v19 }
 0xa64   : > { %3196 = vmatmul.mubr.msk.bf16.vlgmr.msra.gmra.mrb[24].mxu1 %vm2755_vm9, %v2715_v20 }
 0xb37   : > { %v2793_v21 = vpop.f32.mrb[24].mxu1 }
 0xb38   : > { %v2794_v30 = vadd.f32 %v3051_v56, %v2793_v21  ;;  %v3197_v34 = vpop.f32.mrb[25].mxu1 }
 0xb39   : > { %v2796_v37 = vpop.f32.mrb[26].mxu1 }
 0xb3a   : > { %v2799_v22 = vadd.f32 %v2794_v30, %v4384_v38  ;;  %v3198_v23 = vpop.f32.mrb[27].mxu1 }
 0xb3c   : > { %2800 = vst.msk [vmem:[%s664_s17] sm:$0xff] %vm676_vm0, %v2799_v22 }
 0xb3d   : > { %3635 = shalt.err (!%p3632_p6)
}
 0xb3e   : > { %s3636_s14 = scalar_lea.hbm %s4425_s20, 128  ;;  %s3640_s28 = scalar_lea.hbm %s4534_s19, 256 }
 0xb3f   : > { %p3637_p7 = scmp.ne.s32.totalorder %s4425_s20, %s3636_s14  ;;  %p3641_p0 = scmp.lt.u32.totalorder %s4425_s20, %s4534_s19 }
 0xb40   : > { %p3642_p4 = scmp.lt.u32.totalorder %s3640_s28, %s3636_s14  ;;  %p3644_p1 = scmp.lt.u32.totalorder %s3636_s14, %s4425_s20 }
 0xb41   : > { %p3638_p9 = pnand %p3637_p7, %p4535_p8 }
 0xb42   : > { %p3643_p13 = por %p3642_p4, %p3641_p0 }
 0xb43   : > { %p3639_p12 = pneg %p3638_p9 }
 0xb44   : > { %p3645_p10 = por %p3644_p1, %p3643_p13 }
 0xb46   : > { %p3646_p11 = pnand %p3645_p10, %p3639_p12 }
 0xb48   : > { %3649 = shalt.err (!%p3646_p11)
}
 0xb49   : > { %3231 = dma.vmem_to_hbm [thread:$0]  (%p4535_p8), %s4427_s18, 128, %s4425_s20, %s2802_s27  }
 0xb4a PF: > { %s4536_s17 = sld [smem:[#allocation32_spill]]  ;;  %s4537_s23 = sld [smem:[#allocation28_spill]] }
 0xb4b   : > { %s4538_s30 = sld [smem:[#allocation35_spill]] }
 0xb50   : > { %p3278_p2 = scmp.ge.s32.totalorder %s4536_s17, 2  ;;  %s2828_s24 = sand.u32 1, %s4537_s23  }
 0xb51   : > { %p4539_p3 = scmp.ne.s32.totalorder %s4538_s30, 0  ;;  %s2829_s16 = scalar_lea.sflag [#allocation9], %s2828_s24 }
 0xb53   : > { %p3259_p5 = pnand %p3278_p2, %p4539_p3 }
 0xb55   : > { %3695 = dma.done.wait (!%p3259_p5), %s2829_s16, 128  }
 0xb56   : > { %3697 = vsyncadd (!%p3259_p5), %s2829_s16, 4294967168  ;;  %s35_s29 = sadd.s32 1, %s4536_s17   ;;  %s4540_s24 = sld [smem:[#allocation29_spill]] }
 0xb57   : > { %p32_p6 = scmp.ge.s32.totalorder %s35_s29, 4   ;;  %s4541_s25 = sld [smem:[#allocation30_spill]] }
 0xb58   : > { %s4542_s26 = sld [smem:[#allocation36_spill]]  ;;  %s4543_s27 = sld [smem:[#allocation31_spill]] }
 0xb59   : > { %s4544_s28 = sld [smem:[#allocation33_spill]]  ;;  %34 = sbr.rel (!%p32_p6) target bundleno = 15 (0xf), region = 178 }
 0xb60   :  { %2834 = vsyncpa [#allocation8], 1 }
 0xb61   :  { %2836 = vsyncpa [#allocation8 + $0x1], 1 }
 0xb62   :  { %2837 = vsyncpa [#allocation11], 1 }
 0xb63   :  { %2838 = vsyncpa [#allocation14], 1 }
 0xb64   :  { %2839 = vsyncpa [#allocation17], 1 }
 0xb65   :  { %2840 = vsyncpa [#allocation20], 1 }
 0xb66   :  { %2841 = vsyncpa [#allocation9], 1 }
 0xb67   :  { %2843 = vsyncpa [#allocation9 + $0x1], 1 }

// kernel: tpu_custom_call.1
= control target key start
LH: loop header
LB: loop body
LE: loop exit
PB: predicated region body
PF: predicated region fallthrough
CT: control target
= control target key end

     0   :  { %s4473_s0 = inlined_call_operand.vmem [shape: f32[2,8,32], index: 0, kind: input, shape index: {}]   ;;  %s4474_s1 = inlined_call_operand.vmem [shape: f32[1,32], index: 1, kind: input, shape index: {}]   ;;  %s4475_s2 = inlined_call_operand.hbm [shape: f32[1,32], index: 2, kind: input, shape index: {}]   ;;  %s4476_s3 = inlined_call_operand.vmem [shape: bf16[32,32], index: 3, kind: input, shape index: {}]   ;;  %s4477_s4 = inlined_call_operand.vmem [shape: bf16[32,32], index: 4, kind: input, shape index: {}]   ;;  %s4478_s5 = inlined_call_operand.hbm [shape: bf16[32,32], index: 5, kind: input, shape index: {}]   ;;  %s4479_s6 = inlined_call_operand.hbm [shape: f32[1,32], index: 6, kind: input, shape index: {}]   ;;  %s4480_s7 = inlined_call_operand.hbm [shape: f32[1,32], index: 7, kind: input, shape index: {}]   ;;  %s4481_s8 = inlined_call_operand.hbm [shape: f32[1,32], index: 8, kind: input, shape index: {}]   ;;  %s4482_s9 = inlined_call_operand.vmem [shape: bf16[32,32], index: 9, kind: input, shape index: {}]   ;;  %s4483_s10 = inlined_call_operand.hbm [shape: f32[1,32], index: 10, kind: input, shape index: {}]   ;;  %s4484_s11 = inlined_call_operand.hbm [shape: f32[1,32], index: 11, kind: input, shape index: {}]   ;;  %s4485_s12 = inlined_call_operand.hbm [shape: f32[1,32], index: 12, kind: input, shape index: {}]   ;;  %s4486_s13 = inlined_call_operand.vmem [shape: bf16[32,64], index: 13, kind: input, shape index: {}]   ;;  %s4487_s14 = inlined_call_operand.vmem [shape: f32[1,64], index: 14, kind: input, shape index: {}]   ;;  %s4488_s15 = inlined_call_operand.vmem [shape: bf16[64,32], index: 15, kind: input, shape index: {}]   ;;  %s4489_s16 = inlined_call_operand.vmem [shape: f32[1,32], index: 16, kind: input, shape index: {}]   ;;  %s4490_s17 = inlined_call_operand.hbm [shape: f32[2,8,32], index: 17, kind: output, shape index: {}]  }
   0x1   :  { %4506 = sst [smem:[#allocation37_spill]] %s4473_s0 }
   0x2   :  { %4507 = sst [smem:[#allocation38_spill]] %s4474_s1 }
   0x3   :  { %4508 = sst [smem:[#allocation39_spill]] %s4487_s14 }
   0x4   :  { %4509 = sst [smem:[#allocation40_spill]] %s4489_s16 }
   0x5   :  { %4510 = sst [smem:[#allocation41_spill]] %s4490_s17 }
   0x6   :  { %22 = vsyncpa [#allocation8], 0 }
   0x7   :  { %23 = vsyncpa [#allocation11], 0 }
   0x8   :  { %24 = vsyncpa [#allocation14], 0 }
   0x9   :  { %25 = vsyncpa [#allocation17], 0 }
   0xa   :  { %26 = vsyncpa [#allocation20], 0 }
   0xb   :  { %27 = vsyncpa [#allocation9], 0 }
   0xc   :  { %29 = vsyncpa [#allocation9 + $0x1], 0  ;;  %s3835_s24 = smov 0   ;;  %s3837_s25 = smov 0  }
   0xd   :  { %s3839_s26 = smov 0   ;;  %s3841_s27 = smov 0  }
   0xe   :  { %s3843_s28 = smov 0   ;;  %s3845_s29 = smov 0  }
   0xf LB: > { %4511 = sst [smem:[#allocation28_spill]] %s3700_s24  ;;  %s2979_s0 = sadd.s32 4294967295, %s3720_s29   ;;  %s3720_s29 = sphi %s3845_s29, %s35_s29   ;;  %s3716_s28 = sphi %s3843_s28, %s4544_s28   ;;  %s3712_s27 = sphi %s3841_s27, %s4543_s27   ;;  %s3708_s26 = sphi %s3839_s26, %s4542_s26   ;;  %s3704_s25 = sphi %s3837_s25, %s4541_s25   ;;  %s3700_s24 = sphi %s3835_s24, %s4540_s24  }
  0x10   : > { %4512 = sst [smem:[#allocation29_spill]] %s3704_s25  ;;  %s2980_s30 = sadd.s32 4294967294, %s3720_s29  }
  0x11   : > { %4513 = sst [smem:[#allocation30_spill]] %s3708_s26  ;;  %s47_s18 = sadd.s32 1, %s3716_s28 }
  0x12   : > { %4514 = sst [smem:[#allocation31_spill]] %s3716_s28  ;;  %s420_s19 = sadd.s32 1, %s3708_s26 }
  0x13   : > { %4515 = sst [smem:[#allocation32_spill]] %s3720_s29  ;;  %p49_p0 = scmp.ge.s32.totalorder %s47_s18, 2 }
  0x14   : > { %p430_p1 = scmp.ne.s32.totalorder %s3708_s26, %s3704_s25  ;;  %p431_p2 = scmp.eq.s32.totalorder %s2979_s0, 1 }
  0x15   : > { %p436_p3 = scmp.ne.s32.totalorder %s3704_s25, %s3700_s24  ;;  %s4546_s18 = smov (%p49_p0, %s47_s18), 0 }
  0x16   : > { %4516 = sst [smem:[#allocation33_spill]] %s4546_s18  ;;  %p3875_p4 = por %p431_p2, %p430_p1 }
  0x17   : > { %p437_p5 = scmp.eq.s32.totalorder %s2980_s30, 1  ;;  %s415_s20 = ssub.s32 %s3716_s28, %s4546_s18 }
  0x18   : > { %s4517_s1 = scalar_select %p3875_p4, 1, 0 }
  0x19   : > { %p2981_p6 = scmp.ge.s32.totalorder %s3720_s29, 1  ;;  %p418_p7 = scmp.eq.s32.totalorder %s415_s20, 0 }
  0x1a   : > { %4518 = sst [smem:[#allocation34_spill]] %s4517_s1  ;;  %p3882_p8 = por %p437_p5, %p436_p3 }
  0x1b   : > { %p444_p9 = scmp.lt.s32.totalorder %s3720_s29, 3  ;;  %p3894_p11 = scmp.eq.s32.totalorder %s2979_s0, 0 }
  0x1c   : > { %s4519_s21 = scalar_select %p3882_p8, 1, 0 }
  0x1d   : > { %s3888_s22 = scalar_select %p418_p7, %s3708_s26, %s420_s19  }
  0x1e   : > { %4520 = sst [smem:[#allocation35_spill]] %s4519_s21  ;;  %p3890_p10 = pnand %p2981_p6, %p444_p9 }
  0x1f   : > { %4521 = sst [smem:[#allocation36_spill]] %s3888_s22  ;;  %s3722_s30 = smov [#allocation10]  }
  0x20   : > { %s4522_s23 = scalar_select %p3890_p10, 1, 0 }
  0x21   : > { %s4523_s24 = scalar_select %p3894_p11, 1, 0 }
  0x22   : > { %p3233_p12 = pneg %p3890_p10  ;;  %s476_s20 = sshll.u32 %s3722_s30, 4  ;;  %s477_s20 = int_to_ptr.vmem [resolvable:$true] %s476_s20 }
  0x23   : > { %s3723_s19 = smov [#allocation13]   ;;  %s3398_s26 = scalar_lea.hbm %s4478_s5, 256 }
  0x24   : > { %p3902_p13 = pnand %p3894_p11, %p3233_p12  ;;  %s501_s28 = sshll.u32 %s3723_s19, 4  ;;  %s3906_s28 = int_to_ptr.vmem [resolvable:$true] %s501_s28 }
  0x25   : > { %p3399_p0 = scmp.ne.s32.totalorder %s4478_s5, %s3398_s26  ;;  %p3405_p5 = scmp.lt.u32.totalorder %s3398_s26, %s4478_s5 }
  0x26   : > { %p3916_p1 = pneg %p3902_p13 }
  0x28   : > { %p3401_p2 = pnand %p3916_p1, %p3399_p0 }
  0x2a   : > { %p3402_p3 = pneg %p3401_p2 }
  0x2c   : > { %p3407_p6 = pnand %p3405_p5, %p3402_p3 }
  0x2e   : > { %3410 = shalt.err (!%p3407_p6)
}
  0x2f   : > { %s3411_s22 = scalar_lea.vmem %s477_s20, 256  ;;  %p3419_p8 = scmp.lt.s32.totalorder %s477_s20, %s477_s20 }
  0x30   : > { %p3412_p7 = scmp.ne.s32.totalorder %s477_s20, %s3411_s22  ;;  %p3420_p4 = scmp.lt.s32.totalorder %s3411_s22, %s3411_s22 }
  0x32   : > { %p3414_p9 = pnand %p3412_p7, %p3916_p1  ;;  %p3421_p11 = por %p3420_p4, %p3419_p8 }
  0x34   : > { %p3415_p12 = pneg %p3414_p9 }
  0x36   : > { %p3422_p10 = pnand %p3421_p11, %p3415_p12 }
  0x38   : > { %3425 = shalt.err (!%p3422_p10)
}
  0x39   : > { %s3724_s29 = smov 64   ;;  %s3725_s21 = smov 4  }
  0x3a   : > { %3239 = dma.hbm_to_vmem [thread:$0]  (!%p3902_p13), %s4478_s5, 256, %s477_s20, [#allocation11], %s3724_s29, %s3724_s29, %s3725_s21  }
  0x3b   : > { %s3426_s1 = scalar_lea.hbm %s4480_s7, 16 }
  0x3c   : > { %p3427_p0 = scmp.ne.s32.totalorder %s4480_s7, %s3426_s1  ;;  %p3433_p10 = scmp.lt.u32.totalorder %s3426_s1, %s4480_s7 }
  0x3e   : > { %p3429_p4 = pnand %p3427_p0, %p3916_p1 }
  0x40   : > { %p3430_p8 = pneg %p3429_p4 }
  0x42   : > { %p3435_p11 = pnand %p3433_p10, %p3430_p8 }
  0x44   : > { %3438 = shalt.err (!%p3435_p11)
}
  0x45   : > { %s3439_s20 = scalar_lea.vmem %s3906_s28, 16  ;;  %s3446_s16 = scalar_lea.vmem %s3906_s28, 32 }
  0x46   : > { %p3440_p2 = scmp.ne.s32.totalorder %s3906_s28, %s3439_s20  ;;  %p3447_p6 = scmp.lt.s32.totalorder %s3906_s28, %s3906_s28 }
  0x47   : > { %p3448_p7 = scmp.lt.s32.totalorder %s3446_s16, %s3439_s20 }
  0x48   : > { %p3442_p3 = pnand %p3440_p2, %p3916_p1 }
  0x49   : > { %p3449_p9 = por %p3448_p7, %p3447_p6 }
  0x4a   : > { %p3443_p5 = pneg %p3442_p3 }
  0x4c   : > { %p3450_p12 = pnand %p3449_p9, %p3443_p5 }
  0x4e   : > { %3453 = shalt.err (!%p3450_p12)
}
  0x4f   : > { %3245 = dma.hbm_to_vmem [thread:$0]  (!%p3902_p13), %s4480_s7, 16, %s3906_s28, [#allocation14]  }
  0x50   : > { %s3726_s1 = smov [#allocation16]   ;;  %s3454_s26 = scalar_lea.hbm %s4483_s10, 16 }
  0x51   : > { %s526_s29 = sshll.u32 %s3726_s1, 4  ;;  %p3455_p0 = scmp.ne.s32.totalorder %s4483_s10, %s3454_s26  ;;  %s527_s29 = int_to_ptr.vmem [resolvable:$true] %s526_s29 }
  0x52   : > { %p3461_p10 = scmp.lt.u32.totalorder %s3454_s26, %s4483_s10 }
  0x53   : > { %p3457_p4 = pnand %p3455_p0, %p3916_p1 }
  0x55   : > { %p3458_p8 = pneg %p3457_p4 }
  0x57   : > { %p3463_p11 = pnand %p3461_p10, %p3458_p8 }
  0x59   : > { %3466 = shalt.err (!%p3463_p11)
}
  0x5a   : > { %s3467_s28 = scalar_lea.vmem %s527_s29, 16  ;;  %s3474_s16 = scalar_lea.vmem %s527_s29, 32 }
  0x5b   : > { %p3468_p2 = scmp.ne.s32.totalorder %s527_s29, %s3467_s28  ;;  %p3475_p6 = scmp.lt.s32.totalorder %s527_s29, %s527_s29 }
  0x5c   : > { %p3476_p7 = scmp.lt.s32.totalorder %s3474_s16, %s3467_s28 }
  0x5d   : > { %p3470_p3 = pnand %p3468_p2, %p3916_p1 }
  0x5e   : > { %p3477_p9 = por %p3476_p7, %p3475_p6 }
  0x5f   : > { %p3471_p5 = pneg %p3470_p3 }
  0x61   : > { %p3478_p12 = pnand %p3477_p9, %p3471_p5 }
  0x63   : > { %3481 = shalt.err (!%p3478_p12)
}
  0x64   : > { %3251 = dma.hbm_to_vmem [thread:$0]  (!%p3902_p13), %s4483_s10, 16, %s527_s29, [#allocation17]  }
  0x65   : > { %s3727_s1 = smov [#allocation7]   ;;  %s3728_s17 = smov [#allocation12]  }
  0x66   : > { %s460_s21 = sshll.u32 %s3727_s1, 4  ;;  %s490_s26 = sshll.u32 %s3728_s17, 4  ;;  %s461_s21 = int_to_ptr.vmem [resolvable:$true] %s460_s21  ;;  %s3974_s26 = int_to_ptr.vmem [resolvable:$true] %s490_s26 }
  0x67   : > { %s3482_s22 = scalar_lea.hbm %s4475_s2, 16 }
  0x68   : > { %p3483_p0 = scmp.ne.s32.totalorder %s4475_s2, %s3482_s22  ;;  %p3489_p10 = scmp.lt.u32.totalorder %s3482_s22, %s4475_s2 }
  0x6a   : > { %p3485_p4 = pnand %p3483_p0, %p3916_p1 }
  0x6c   : > { %p3486_p8 = pneg %p3485_p4 }
  0x6e   : > { %p3491_p11 = pnand %p3489_p10, %p3486_p8 }
  0x70   : > { %3494 = shalt.err (!%p3491_p11)
}
  0x71   : > { %s3495_s14 = scalar_lea.vmem %s461_s21, 16  ;;  %s3502_s25 = scalar_lea.vmem %s461_s21, 32 }
  0x72   : > { %p3496_p2 = scmp.ne.s32.totalorder %s461_s21, %s3495_s14  ;;  %p3503_p6 = scmp.lt.s32.totalorder %s461_s21, %s461_s21 }
  0x73   : > { %p3504_p7 = scmp.lt.s32.totalorder %s3502_s25, %s3495_s14 }
  0x74   : > { %p3498_p3 = pnand %p3496_p2, %p3916_p1 }
  0x75   : > { %p3505_p9 = por %p3504_p7, %p3503_p6 }
  0x76   : > { %p3499_p5 = pneg %p3498_p3 }
  0x78   : > { %p3506_p12 = pnand %p3505_p9, %p3499_p5 }
  0x7a   : > { %3509 = shalt.err (!%p3506_p12)
}
  0x7b   : > { %3236 = dma.hbm_to_vmem [thread:$0]  (!%p3902_p13), %s4475_s2, 16, %s461_s21, [#allocation8]  }
  0x7c   : > { %s3510_s22 = scalar_lea.hbm %s4479_s6, 16 }
  0x7d   : > { %p3511_p0 = scmp.ne.s32.totalorder %s4479_s6, %s3510_s22  ;;  %p3517_p10 = scmp.lt.u32.totalorder %s3510_s22, %s4479_s6 }
  0x7f   : > { %p3513_p4 = pnand %p3511_p0, %p3916_p1 }
  0x81   : > { %p3514_p8 = pneg %p3513_p4 }
  0x83   : > { %p3519_p11 = pnand %p3517_p10, %p3514_p8 }
  0x85   : > { %3522 = shalt.err (!%p3519_p11)
}
  0x86   : > { %s3523_s21 = scalar_lea.vmem %s3974_s26, 16  ;;  %s3530_s14 = scalar_lea.vmem %s3974_s26, 32 }
  0x87   : > { %p3524_p2 = scmp.ne.s32.totalorder %s3974_s26, %s3523_s21  ;;  %p3531_p6 = scmp.lt.s32.totalorder %s3974_s26, %s3974_s26 }
  0x88   : > { %p3532_p7 = scmp.lt.s32.totalorder %s3530_s14, %s3523_s21 }
  0x89   : > { %p3526_p3 = pnand %p3524_p2, %p3916_p1 }
  0x8a   : > { %p3533_p9 = por %p3532_p7, %p3531_p6 }
  0x8b   : > { %p3527_p5 = pneg %p3526_p3 }
  0x8d   : > { %p3534_p12 = pnand %p3533_p9, %p3527_p5 }
  0x8f   : > { %3537 = shalt.err (!%p3534_p12)
}
  0x90   : > { %3242 = dma.hbm_to_vmem [thread:$0]  (!%p3902_p13), %s4479_s6, 16, %s3974_s26, [#allocation11]  }
  0x91   : > { %s3729_s17 = smov [#allocation15]   ;;  %s3730_s19 = smov [#allocation18]  }
  0x92   : > { %s512_s0 = sshll.u32 %s3729_s17, 4  ;;  %s537_s22 = sshll.u32 %s3730_s19, 4  ;;  %s513_s0 = int_to_ptr.vmem [resolvable:$true] %s512_s0  ;;  %s4018_s22 = int_to_ptr.vmem [resolvable:$true] %s537_s22 }
  0x93   : > { %s3538_s16 = scalar_lea.hbm %s4481_s8, 16 }
  0x94   : > { %p3539_p0 = scmp.ne.s32.totalorder %s4481_s8, %s3538_s16  ;;  %p3545_p10 = scmp.lt.u32.totalorder %s3538_s16, %s4481_s8 }
  0x96   : > { %p3541_p4 = pnand %p3539_p0, %p3916_p1 }
  0x98   : > { %p3542_p8 = pneg %p3541_p4 }
  0x9a   : > { %p3547_p11 = pnand %p3545_p10, %p3542_p8 }
  0x9c   : > { %3550 = shalt.err (!%p3547_p11)
}
  0x9d   : > { %s3551_s25 = scalar_lea.vmem %s513_s0, 16  ;;  %s3558_s1 = scalar_lea.vmem %s513_s0, 32 }
  0x9e   : > { %p3552_p2 = scmp.ne.s32.totalorder %s513_s0, %s3551_s25  ;;  %p3559_p6 = scmp.lt.s32.totalorder %s513_s0, %s513_s0 }
  0x9f   : > { %p3560_p7 = scmp.lt.s32.totalorder %s3558_s1, %s3551_s25 }
  0xa0   : > { %p3554_p3 = pnand %p3552_p2, %p3916_p1 }
  0xa1   : > { %p3561_p9 = por %p3560_p7, %p3559_p6 }
  0xa2   : > { %p3555_p5 = pneg %p3554_p3 }
  0xa4   : > { %p3562_p12 = pnand %p3561_p9, %p3555_p5 }
  0xa6   : > { %3565 = shalt.err (!%p3562_p12)
}
  0xa7   : > { %3248 = dma.hbm_to_vmem [thread:$0]  (!%p3902_p13), %s4481_s8, 16, %s513_s0, [#allocation14]  }
  0xa8   : > { %s3566_s16 = scalar_lea.hbm %s4484_s11, 16 }
  0xa9   : > { %p3567_p0 = scmp.ne.s32.totalorder %s4484_s11, %s3566_s16  ;;  %p3573_p10 = scmp.lt.u32.totalorder %s3566_s16, %s4484_s11 }
  0xab   : > { %p3569_p4 = pnand %p3567_p0, %p3916_p1 }
  0xad   : > { %p3570_p8 = pneg %p3569_p4 }
  0xaf   : > { %p3575_p11 = pnand %p3573_p10, %p3570_p8 }
  0xb1   : > { %3578 = shalt.err (!%p3575_p11)
}
  0xb2   : > { %s3579_s0 = scalar_lea.vmem %s4018_s22, 16  ;;  %s3586_s25 = scalar_lea.vmem %s4018_s22, 32 }
  0xb3   : > { %p3580_p2 = scmp.ne.s32.totalorder %s4018_s22, %s3579_s0  ;;  %p3587_p6 = scmp.lt.s32.totalorder %s4018_s22, %s4018_s22 }
  0xb4   : > { %p3588_p7 = scmp.lt.s32.totalorder %s3586_s25, %s3579_s0 }
  0xb5   : > { %p3582_p3 = pnand %p3580_p2, %p3916_p1 }
  0xb6   : > { %p3589_p9 = por %p3588_p7, %p3587_p6 }
  0xb7   : > { %p3583_p5 = pneg %p3582_p3 }
  0xb9   : > { %p3590_p12 = pnand %p3589_p9, %p3583_p5 }
  0xbb   : > { %3593 = shalt.err (!%p3590_p12)
}
  0xbc   : > { %3254 = dma.hbm_to_vmem [thread:$0]  (!%p3902_p13), %s4484_s11, 16, %s4018_s22, [#allocation17]  }
  0xbd   : > { %s3731_s19 = smov [#allocation19]   ;;  %s3594_s29 = scalar_lea.hbm %s4485_s12, 16 }
  0xbe   : > { %s548_s20 = sshll.u32 %s3731_s19, 4  ;;  %p3595_p0 = scmp.ne.s32.totalorder %s4485_s12, %s3594_s29  ;;  %s549_s20 = int_to_ptr.vmem [resolvable:$true] %s548_s20 }
  0xbf   : > { %p3601_p10 = scmp.lt.u32.totalorder %s3594_s29, %s4485_s12 }
  0xc0   : > { %p3597_p4 = pnand %p3595_p0, %p3916_p1 }
  0xc2   : > { %p3598_p8 = pneg %p3597_p4 }
  0xc4   : > { %p3603_p11 = pnand %p3601_p10, %p3598_p8 }
  0xc6   : > { %3606 = shalt.err (!%p3603_p11)
}
  0xc7   : > { %s3607_s22 = scalar_lea.vmem %s549_s20, 16  ;;  %s3614_s25 = scalar_lea.vmem %s549_s20, 32 }
  0xc8   : > { %p3608_p2 = scmp.ne.s32.totalorder %s549_s20, %s3607_s22  ;;  %p3615_p6 = scmp.lt.s32.totalorder %s549_s20, %s549_s20 }
  0xc9   : > { %p3616_p7 = scmp.lt.s32.totalorder %s3614_s25, %s3607_s22 }
  0xca   : > { %p3610_p3 = pnand %p3608_p2, %p3916_p1 }
  0xcb   : > { %p3617_p9 = por %p3616_p7, %p3615_p6 }
  0xcc   : > { %p3611_p5 = pneg %p3610_p3 }
  0xce   : > { %p3618_p12 = pnand %p3617_p9, %p3611_p5 }
  0xd0   : > { %3621 = shalt.err (!%p3618_p12)
}
  0xd1   : > { %3257 = dma.hbm_to_vmem [thread:$0]  (!%p3902_p13), %s4485_s12, 16, %s549_s20, [#allocation20]  }
  0xd2   : > { %p4526_p0 = scmp.ne.s32.totalorder %s4522_s23, 0 }
  0xd3   : > { %p4527_p4 = scmp.ne.s32.totalorder (!%p4526_p0), %s4523_s24, 0 }
  0xd4   : > { %583 = sbr.rel (%p4526_p0) target bundleno = 2890 (0xb4a), region = 88 }
  0xdb   : > { %3675 = dma.done.wait (%p4527_p4), [#allocation8], 16  }
  0xdc   : > { %3677 = vsyncadd (%p4527_p4), [#allocation8], 4294967280 }
  0xdd   : > { %3679 = dma.done.wait (%p4527_p4), [#allocation11], 272  }
  0xde   : > { %3681 = vsyncadd (%p4527_p4), [#allocation11], 4294967024 }
  0xdf   : > { %3683 = dma.done.wait (%p4527_p4), [#allocation14], 32  }
  0xe0   : > { %3685 = vsyncadd (%p4527_p4), [#allocation14], 4294967264 }
  0xe1   : > { %3687 = dma.done.wait (%p4527_p4), [#allocation17], 32  }
  0xe2   : > { %3689 = vsyncadd (%p4527_p4), [#allocation17], 4294967264 }
  0xe3   : > { %3691 = dma.done.wait (%p4527_p4), [#allocation20], 16  }
  0xe4   : > { %3693 = vsyncadd (%p4527_p4), [#allocation20], 4294967280  ;;  %p665_p13 = scmp.lt.s32.totalorder %s3712_s27, 1  ;;  %s4528_s20 = sld [smem:[#allocation37_spill]]  ;;  %vm676_vm0 = vcmask 261120   ;;  %v3351_v7 = vld [vmem:[%s4476_s3] sm:$0xff]   ;;  %v784_v46 = vlaneseq }
  0xe5   : > { %v3352_v8 = vld [vmem:[%s4477_s4] sm:$0xff]   ;;  %v3732_v9 = vmov 0.0   ;;  %v3353_v10 = vld [vmem:[%s4476_s3 + $0x8] sm:$0xff]   ;;  %vm3733_vm1 = vmmov 0   ;;  %s4529_s17 = sld [smem:[#allocation38_spill]]  ;;  %v3734_v24 = vmov 0  }
  0xe6   : > { %s666_s18 = scalar_select %p665_p13, %s3712_s27, 1  ;;  %3099 = vmatprep.subr.bf16.mxu0 %v3732_v9  ;;  %3107 = vmatprep.subr.bf16.mxu1 %v3732_v9  ;;  %v3354_v11 = vld [vmem:[%s4477_s4 + $0x8] sm:$0xff]   ;;  %v3003_v18 = vld [vmem:[#allocation7] ss:$0 sm:$0xff]  ;;  %v3004_v25 = vld [vmem:[#allocation12] ss:$0 sm:$0xff] }
  0xe7   : > { %3100 = vmatpush3.bf16.msra.mxu0 %v3351_v7  ;;  %3108 = vmatpush3.bf16.msra.mxu1 %v3352_v8  ;;  %v3355_v21 = vld [vmem:[#allocation10] sm:$0xff]   ;;  %v3356_v23 = vld [vmem:[#allocation10 + $0x8] sm:$0xff]   ;;  %s3737_s30 = smov 112   ;;  %vm1295_vm2 = vcmask 64512   ;;  %v3008_v41 = vld [vmem:[#allocation13] ss:$0 sm:$0xff] }
  0xe8   : > { %s3001_s23 = sshll.u32 %s666_s18, 3  ;;  %3101 = vmatprep.subr.bf16.mxu0 %v3732_v9  ;;  %3109 = vmatprep.subr.bf16.mxu1 %v3732_v9  ;;  %s3735_s18 = smov 104   ;;  %1296 = vst.msk [vmem:[#allocation6] sm:$0xff] %vm1295_vm2, %v3732_v9  ;;  %1297 = vst.msk [vmem:[#allocation6 + $0x8] sm:$0xff] %vm1295_vm2, %v3732_v9  ;;  %v3738_v44 = vmov 1983009808  }
  0xe9   : > { %3103 = vmatprep.mubr.msk.bf16.mxu0 %vm3733_vm1, %v3732_v9  ;;  %3111 = vmatprep.mubr.msk.bf16.mxu1 %vm3733_vm1, %v3732_v9  ;;  %1298 = vst.msk [vmem:[#allocation6 + $0x10] sm:$0xff] %vm1295_vm2, %v3732_v9  ;;  %1299 = vst.msk [vmem:[#allocation6 + $0x18] sm:$0xff] %vm1295_vm2, %v3732_v9  ;;  %v782_v45 = vunpack.c.l.s4 %v3738_v44  ;;  %v3739_v47 = vmov 1934713408   ;;  %v4164_v50 = vshrl.u32 %v784_v46, 7  ;;  %vm1833_vm3 = vcmask 1043456  }
  0xea   : > { %s4107_s28 = scalar_lea.vmem %s4528_s20, %s3001_s23  ;;  %3350 = vset.pattern.permute.xlu0 %v3734_v24  ;;  %s3736_s23 = smov 120   ;;  %v799_v48 = vunpack.c.l.s4 %v3739_v47  ;;  %vm1286_vm4 = vcmask 7168   ;;  %vm2520_vm6 = vcmask 130048   ;;  %vm2522_vm7 = vcmask 195584  }
  0xeb   : > { %v673_v0 = vld [vmem:[%s4107_s28] sm:$0xff]  ;;  %3102 = vmatpush3.bf16.msra.mxu0 %v3353_v10  ;;  %3110 = vmatpush3.bf16.msra.mxu1 %v3354_v11  ;;  %v783_v49 = vunpack.c.0.s8 %v782_v45  ;;  %1291 = vst.msk [vmem:[#allocation5] sm:$0xff] %vm1286_vm4, %v3732_v9  ;;  %1292 = vst.msk [vmem:[#allocation5 + $0x8] sm:$0xff] %vm1286_vm4, %v3732_v9  ;;  %s3741_s29 = smov 16   ;;  %s3742_s21 = smov 8   ;;  %vm2755_vm9 = vcmask 523264  }
  0xec   : > { %v677_v1 = vsel %vm676_vm0, %v673_v0, 0.0  ;;  %3115 = vmatprep.subr.bf16.mxu0 %v3732_v9  ;;  %3123 = vmatprep.subr.bf16.mxu1 %v3732_v9  ;;  %v3002_v16 = vld [vmem:[%s4529_s17] ss:$0 sm:$0xff]  ;;  %v800_v51 = vunpack.c.0.s8 %v799_v48  ;;  %1293 = vst.msk [vmem:[#allocation5 + $0x10] sm:$0xff] %vm1286_vm4, %v3732_v9  ;;  %1294 = vst.msk [vmem:[#allocation5 + $0x18] sm:$0xff] %vm1286_vm4, %v3732_v9  ;;  %s3743_s14 = smov 24  }
  0xed   : > { %678 = vadd.xlane.f32.xlu0 %v677_v1  ;;  %v4167_v52 = vsub.s32 %v783_v49, %v4164_v50  ;;  %s4532_s22 = sld [smem:[#allocation40_spill]]  ;;  %s4533_s25 = sld [smem:[#allocation34_spill]] }
  0xee   : > { %v4171_v56 = vsub.s32 %v800_v51, %v4164_v50  ;;  %s3058_s1 = sshll.u32 %s3712_s27, 7  ;;  %s4534_s19 = sld [smem:[#allocation41_spill]] }
  0xef   : > { %s3744_s16 = smov [#allocation21]  }
  0xf3   : > { %p4535_p8 = scmp.ne.s32.totalorder %s4533_s25, 0 }
  0xf4   : > { %s4425_s20 = scalar_lea.hbm %s4534_s19, %s3058_s1 }
 0x17a   : > { %v679_v2 = vpop.xlane.xlu0 %678 }
 0x17b   : > { %v681_v3 = vmul.f32 0.03125, %v679_v2 }
 0x17d   : > { %v682_v4 = vsub.f32 %v673_v0, %v681_v3 }
 0x17f   : > { %v683_v5 = vmul.f32 %v682_v4, %v682_v4 }
 0x181   : > { %v684_v6 = vsel %vm676_vm0, %v683_v5, 0.0 }
 0x182   : > { %685 = vadd.xlane.f32.xlu0 %v684_v6 }
 0x20f   : > { %v686_v12 = vpop.xlane.xlu0 %685 }
 0x210   : > { %v687_v13 = vmul.f32 0.03125, %v686_v12 }
 0x212   : > { %v688_v14 = vadd.f32 1e-05, %v687_v13 }
 0x214   : > { %3365 = vrsqrt.f32 %v688_v14 }
 0x21e   : > { %v3366_v15 = vpop.eup %3365 }
 0x21f   : > { %v690_v17 = vmul.f32 %v3366_v15, %v682_v4 }
 0x221   : > { %v697_v19 = vmul.f32 %v3002_v16, %v690_v17 }
 0x223   : > { %v704_v20 = vadd.f32 %v3003_v18, %v697_v19 }
 0x225   : > { %v705_v22 = vpack.c.bf16 %v704_v20, %v704_v20 }
 0x227   : > { %3104 = vmatmul.mubr.msk.bf16.vlgmr.msra.gmra.mrb[0].mxu0 %vm676_vm0, %v705_v22  ;;  %3112 = vmatmul.mubr.msk.bf16.vlgmr.msra.gmra.mrb[0].mxu1 %vm676_vm0, %v705_v22 }
 0x228   : > { %3116 = vmatpush3.bf16.msra.mxu0 %v3355_v21  ;;  %3119 = vmatprep.mubr.msk.bf16.mxu0 %vm3733_vm1, %v3732_v9 }
 0x229   : > { %3117 = vmatprep.subr.bf16.mxu0 %v3732_v9  ;;  %3125 = vmatprep.mubr.msk.bf16.mxu1 %vm3733_vm1, %v3732_v9 }
 0x22c   : > { %3118 = vmatpush3.bf16.msra.mxu0 %v3356_v23 }
 0x22d   : > { %3129 = vmatprep.subr.bf16.mxu0 %v3732_v9 }
 0x22f   : > { %3120 = vmatmul.mubr.msk.bf16.vlgmr.msra.gmra.mrb[4].mxu0 %vm676_vm0, %v705_v22 }
 0x230   : > { %3131 = vmatprep.mubr.msk.bf16.mxu0 %vm3733_vm1, %v3732_v9 }
 0x2fa   : > { %v766_v26 = vpop.f32.mrb[0].mxu0  ;;  %v999_v27 = vpop.f32.mrb[0].mxu1 }
 0x2fb   : > { %v767_v28 = vadd.f32 %v3004_v25, %v766_v26  ;;  %v3105_v29 = vpop.f32.mrb[1].mxu0  ;;  %v3113_v30 = vpop.f32.mrb[1].mxu1  ;;  %v1000_v42 = vadd.f32 %v3008_v41, %v999_v27 }
 0x2fc   : > { %v769_v31 = vpop.f32.mrb[2].mxu0  ;;  %v1002_v32 = vpop.f32.mrb[2].mxu1 }
 0x2fd   : > { %v772_v33 = vmul.f32 0.35355338, %v767_v28  ;;  %v3106_v34 = vpop.f32.mrb[3].mxu0  ;;  %v3114_v35 = vpop.f32.mrb[3].mxu1  ;;  %v1005_v43 = vpack.c.bf16 %v1000_v42, %v1000_v42 }
 0x2ff   : > { %v773_v36 = vpack.c.bf16 %v772_v33, %v772_v33 }
 0x301   : > { %779 = vrot.lane.b32.xlu0 %v773_v36, %s3735_s18  ;;  %775 = vrot.lane.b32.xlu1 %v773_v36, %s3736_s23  ;;  %v787_v63 = vrot.slane %v773_v36, %v4167_v52 }
 0x302   : > { %v4151_v37 = vpop.f32.mrb[4].mxu0 }
 0x303   : > { %v3121_v38 = vpop.f32.mrb[5].mxu0 }
 0x304   : > { %v1092_v39 = vpop.f32.mrb[6].mxu0 }
 0x305   : > { %777 = vrot.lane.b32.xlu1 %v773_v36, %s3737_s30  ;;  %v3122_v40 = vpop.f32.mrb[7].mxu0 }
 0x328   : > { %1006 = vxpose.xlu1.c.b16.start.end [1/1] (short) (narrow) %v1005_v43, 32 }
 0x32c   : > { %3349 = vset.pattern.permute.xlu1 %v3734_v24 }
 0x373   : > { %v780_v53 = vpop.permute.xlu0 %779  ;;  %v776_v54 = vpop.permute.xlu1 %775 }
 0x374   : > { %v829_v55 = vrot.slane %v780_v53, %v4167_v52  ;;  %v821_v57 = vrot.slane %v776_v54, %v4167_v52 }
 0x376   : > { %v830_v58 = vcombine.low %v821_v57, %v829_v55  ;;  %v831_v59 = vcombine.high %v821_v57, %v829_v55 }
 0x377   : > { %v778_v60 = vpop.permute.xlu1 %777 }
 0x378   : > { %v838_v61 = vrot.slane %v830_v58, %v4171_v56  ;;  %v795_v62 = vrot.slane %v778_v60, %v4167_v52  ;;  %v845_v0 = vrot.slane %v831_v59, %v4171_v56 }
 0x37a   : > { %v796_v1 = vcombine.low %v787_v63, %v795_v62  ;;  %v797_v2 = vcombine.high %v787_v63, %v795_v62  ;;  %v846_v3 = vcombine.high %v838_v61, %v3734_v24  ;;  %v847_v6 = vcombine.high %v845_v0, %v3734_v24 }
 0x37b   : > { %v853_v7 = vshrl.u32 %v838_v61, 16  ;;  %v869_v14 = vshrl.u32 %v845_v0, 16 }
 0x37c   : > { %v804_v4 = vrot.slane %v796_v1, %v4171_v56  ;;  %v811_v5 = vrot.slane %v797_v2, %v4171_v56  ;;  %v861_v13 = vshrl.u32 %v846_v3, 16  ;;  %v877_v21 = vshrl.u32 %v847_v6, 16 }
 0x37d   : > { %v1827_v1 = vand.u32 127, %v784_v46 }
 0x37e   : > { %v812_v8 = vcombine.high %v804_v4, %v3734_v24  ;;  %v813_v10 = vcombine.high %v811_v5, %v3734_v24  ;;  %v850_v11 = vpack.i.b16 %v838_v61, %v804_v4  ;;  %v852_v12 = vshrl.u32 %v804_v4, 16 }
 0x37f   : > { %v866_v15 = vpack.i.b16 %v845_v0, %v811_v5  ;;  %v868_v16 = vshrl.u32 %v811_v5, 16  ;;  %v3740_v0 = vmov -1e+30   ;;  %vm1828_vm5 = vcmp.gt.s32.totalorder %v1827_v1, %v4164_v50 }
 0x380   : > { %v854_v17 = vpack.i.b16 %v853_v7, %v852_v12  ;;  %v858_v18 = vpack.i.b16 %v846_v3, %v812_v8  ;;  %v860_v19 = vshrl.u32 %v812_v8, 16  ;;  %v874_v20 = vpack.i.b16 %v847_v6, %v813_v10  ;;  %1287 = vst.msk [vmem:[#allocation4] sm:$0xff] %vm1286_vm4, %v3740_v0  ;;  %1288 = vst.msk [vmem:[#allocation4 + $0x8] sm:$0xff] %vm1286_vm4, %v3740_v0 }
 0x381   : > { %v870_v22 = vpack.i.b16 %v869_v14, %v868_v16  ;;  %v876_v23 = vshrl.u32 %v813_v10, 16  ;;  %v880_v26 = vcombine.low %v850_v11, %v866_v15  ;;  %1289 = vst.msk [vmem:[#allocation4 + $0x10] sm:$0xff] %vm1286_vm4, %v3740_v0  ;;  %1290 = vst.msk [vmem:[#allocation4 + $0x18] sm:$0xff] %vm1286_vm4, %v3740_v0  ;;  %v1829_v2 = vsel %vm1828_vm5, -1e+30, %v3732_v9 }
 0x382   : > { %v862_v25 = vpack.i.b16 %v861_v13, %v860_v19  ;;  %v888_v27 = vcombine.low %v858_v18, %v874_v20 }
 0x383   : > { %v878_v28 = vpack.i.b16 %v877_v21, %v876_v23  ;;  %v905_v29 = vcombine.low %v854_v17, %v870_v22  ;;  %v887_v32 = vrot.slane %v880_v26, %v4167_v52 }
 0x384   : > { %v895_v30 = vrot.slane %v888_v27, %v4167_v52  ;;  %v3016_v27 = vld [vmem:[#allocation15] ss:$0 sm:$0xff] }
 0x385   : > { %v913_v31 = vcombine.low %v862_v25, %v878_v28  ;;  %v912_v33 = vrot.slane %v905_v29, %v4167_v52  ;;  %v1090_v28 = vadd.f32 %v3016_v27, %v4151_v37 }
 0x386   : > { %v896_v35 = vcombine.low %v887_v32, %v895_v30 }
 0x387   : > { %v920_v34 = vrot.slane %v913_v31, %v4167_v52  ;;  %v1095_v29 = vpack.c.bf16 %v1090_v28, %v1090_v28  ;;  %v4247_v30 = vld [vmem:[#allocation4] sm:$0xff]  ;;  %v4249_v31 = vld [vmem:[#allocation4 + $0x8] sm:$0xff] }
 0x388   : > { %v903_v39 = vrot.slane %v896_v35, %v4171_v56 }
 0x389   : > { %v921_v36 = vcombine.low %v912_v33, %v920_v34 }
 0x38a   : > { %v933_v47 = vshrl.u32 %v903_v39, 16  ;;  %v904_v59 = vcombine.high %v903_v39, %v3734_v24 }
 0x38b   : > { %v928_v38 = vrot.slane %v921_v36, %v4171_v56 }
 0x38c   : > { %v939_v61 = vshrl.u32 %v904_v59, 16 }
 0x38d   : > { %v934_v43 = vshrl.u32 %v928_v38, 16  ;;  %v932_v48 = vpack.i.b16 %v928_v38, %v903_v39  ;;  %v929_v51 = vcombine.high %v928_v38, %v3734_v24  ;;  %v4267_v38 = vld [vmem:[#allocation4 + $0x10] sm:$0xff]  ;;  %v4269_v39 = vld [vmem:[#allocation4 + $0x18] sm:$0xff] }
 0x38e   : > { %v1014_v40 = vpop.trf.xlu1 }
 0x38f   : > { %v3012_v41 = vcombine.low %v1014_v40, %v1014_v40  ;;  %v3013_v42 = vcombine.high %v1014_v40, %v1014_v40  ;;  %v935_v53 = vpack.i.b16 %v934_v43, %v933_v47  ;;  %v940_v60 = vshrl.u32 %v929_v51, 16 }
 0x390   : > { %v938_v62 = vpack.i.b16 %v929_v51, %v904_v59 }
 0x391   : > { %v1835_v44 = vsel %vm1833_vm3, %v3012_v41, 0  ;;  %v1881_v45 = vsel %vm1833_vm3, %v3013_v42, 0  ;;  %v941_v63 = vpack.i.b16 %v940_v60, %v939_v61 }
 0x392   : > { %3124 = vmatpush3.bf16.msra.mxu1 %v1835_v44  ;;  %3130 = vmatpush3.bf16.msra.mxu0 %v1881_v45  ;;  %v1015_v49 = vpop.trf.xlu1 }
 0x393   : > { %v3014_v54 = vcombine.low %v1015_v49, %v1015_v49  ;;  %v3015_v55 = vcombine.high %v1015_v49, %v1015_v49  ;;  %3135 = vmatprep.subr.bf16.mxu1 %v3732_v9  ;;  %3141 = vmatprep.subr.bf16.mxu0 %v3732_v9  ;;  %v1109_v49 = vrot.slane %v1095_v29, %v4167_v52 }
 0x395   : > { %3126 = vmatmul.mubr.msk.bf16.vlgmr.msra.gmra.mrb[4].mxu1 %vm1295_vm2, %v932_v48  ;;  %3132 = vmatmul.mubr.msk.bf16.vlgmr.msra.gmra.mrb[8].mxu0 %vm1295_vm2, %v935_v53  ;;  %v1927_v57 = vsel %vm1833_vm3, %v3014_v54, 0  ;;  %v1973_v58 = vsel %vm1833_vm3, %v3015_v55, 0 }
 0x396   : > { %3136 = vmatpush3.bf16.msra.mxu1 %v1927_v57  ;;  %3142 = vmatpush3.bf16.msra.mxu0 %v1973_v58 }
 0x397   : > { %3137 = vmatprep.mubr.msk.bf16.mxu1 %vm3733_vm1, %v3732_v9  ;;  %3143 = vmatprep.mubr.msk.bf16.mxu0 %vm3733_vm1, %v3732_v9 }
 0x398   : > { %3147 = vmatprep.subr.bf16.mxu1 %v3732_v9  ;;  %3153 = vmatprep.subr.bf16.mxu0 %v3732_v9 }
 0x39d   : > { %3138 = vmatmul.mubr.msk.bf16.vlgmr.msra.gmra.mrb[8].mxu1 %vm1295_vm2, %v938_v62  ;;  %3144 = vmatmul.mubr.msk.bf16.vlgmr.msra.gmra.mrb[12].mxu0 %vm1295_vm2, %v941_v63 }
 0x39e   : > { %3149 = vmatprep.mubr.msk.bf16.mxu1 %vm3733_vm1, %v3732_v9  ;;  %3155 = vmatprep.mubr.msk.bf16.mxu0 %vm3733_vm1, %v3732_v9 }
 0x468   : > { %v1871_v3 = vpop.f32.mrb[4].mxu1  ;;  %v1917_v4 = vpop.f32.mrb[8].mxu0 }
 0x469   : > { %v4227_v5 = vadd.f32 %v1871_v3, %v1829_v2  ;;  %v4229_v6 = vadd.f32 %v1917_v4, %v1829_v2  ;;  %v3127_v7 = vpop.f32.mrb[5].mxu1  ;;  %v3133_v8 = vpop.f32.mrb[9].mxu0 }
 0x46a   : > { %v1874_v10 = vpop.f32.mrb[6].mxu1  ;;  %v1920_v11 = vpop.f32.mrb[10].mxu0 }
 0x46b   : > { %v3128_v12 = vpop.f32.mrb[7].mxu1  ;;  %v3134_v13 = vpop.f32.mrb[11].mxu0  ;;  %v2019_v14 = vsel %vm1295_vm2, %v4227_v5, -inf  ;;  %v2022_v46 = vsel %vm1295_vm2, %v4229_v6, -inf }
 0x46c   : > { %2020 = vmax.xlane.f32.xlu0 %v2019_v14  ;;  %2023 = vmax.xlane.f32.xlu1 %v2022_v46 }
 0x470   : > { %v1963_v50 = vpop.f32.mrb[8].mxu1  ;;  %v2009_v15 = vpop.f32.mrb[12].mxu0 }
 0x471   : > { %v4235_v16 = vadd.f32 %v1963_v50, %v1829_v2  ;;  %v4237_v17 = vadd.f32 %v2009_v15, %v1829_v2  ;;  %v3139_v18 = vpop.f32.mrb[9].mxu1  ;;  %v3145_v19 = vpop.f32.mrb[13].mxu0 }
 0x472   : > { %v1966_v20 = vpop.f32.mrb[10].mxu1  ;;  %v2012_v21 = vpop.f32.mrb[14].mxu0 }
 0x473   : > { %v3140_v22 = vpop.f32.mrb[11].mxu1  ;;  %v3146_v23 = vpop.f32.mrb[15].mxu0  ;;  %v2025_v25 = vsel %vm1295_vm2, %v4235_v16, -inf  ;;  %v2028_v26 = vsel %vm1295_vm2, %v4237_v17, -inf }
 0x474   : > { %2026 = vmax.xlane.f32.xlu1 %v2025_v25  ;;  %2029 = vmax.xlane.f32.xlu0 %v2028_v26 }
 0x485   : > { %1097 = vrot.lane.b32.xlu1 %v1095_v29, %s3736_s23 }
 0x489   : > { %1101 = vrot.lane.b32.xlu1 %v1095_v29, %s3735_s18 }
 0x48a   : > { %1099 = vrot.lane.b32.xlu0 %v1095_v29, %s3737_s30 }
 0x4f9   : > { %v2021_v32 = vpop.xlane.xlu0 %2020  ;;  %v2024_v33 = vpop.xlane.xlu1 %2023 }
 0x4fa   : > { %v4252_v34 = vmax.f32 %v4247_v30, %v2021_v32  ;;  %v4255_v35 = vmax.f32 %v4249_v31, %v2024_v33 }
 0x4fc   : > { %v2035_v37 = vsub.f32 %v4247_v30, %v4252_v34  ;;  %2331 = vst.msk [vmem:[#allocation4] sm:$0xff] %vm1286_vm4, %v4252_v34  ;;  %v2036_v36 = vsub.f32 %v4249_v31, %v4255_v35  ;;  %2332 = vst.msk [vmem:[#allocation4 + $0x8] sm:$0xff] %vm1286_vm4, %v4255_v35  ;;  %2049 = vperm.xlu1 %3349, %v4252_v34   ;;  %2054 = vperm.xlu0 %3350, %v4255_v35   ;;  %v2081_v31 = vld [vmem:[#allocation5 + $0x10] sm:$0xff] }
 0x501   : > { %v2027_v40 = vpop.xlane.xlu1 %2026  ;;  %v2030_v41 = vpop.xlane.xlu0 %2029 }
 0x502   : > { %v4272_v42 = vmax.f32 %v4267_v38, %v2027_v40  ;;  %v4275_v43 = vmax.f32 %v4269_v39, %v2030_v41 }
 0x504   : > { %v2037_v44 = vsub.f32 %v4267_v38, %v4272_v42  ;;  %2333 = vst.msk [vmem:[#allocation4 + $0x10] sm:$0xff] %vm1286_vm4, %v4272_v42  ;;  %v2038_v45 = vsub.f32 %v4269_v39, %v4275_v43  ;;  %2334 = vst.msk [vmem:[#allocation4 + $0x18] sm:$0xff] %vm1286_vm4, %v4275_v43  ;;  %2059 = vperm.xlu1 %3349, %v4272_v42   ;;  %v2041_v42 = vmul.f32 1.442695, %v2036_v36 }
 0x505   : > { %v1098_v47 = vpop.permute.xlu1 %1097  ;;  %v1100_v48 = vpop.permute.xlu0 %1099 }
 0x506   : > { %v1117_v51 = vrot.slane %v1100_v48, %v4167_v52  ;;  %v1143_v59 = vrot.slane %v1098_v47, %v4167_v52 }
 0x508   : > { %v1118_v53 = vcombine.low %v1109_v49, %v1117_v51  ;;  %v1119_v54 = vcombine.high %v1109_v49, %v1117_v51  ;;  %2064 = vperm.xlu1 %3349, %v4275_v43  }
 0x509   : > { %v1102_v55 = vpop.permute.xlu1 %1101 }
 0x50a   : > { %v1126_v57 = vrot.slane %v1118_v53, %v4171_v56  ;;  %v1151_v58 = vrot.slane %v1102_v55, %v4167_v52  ;;  %v1133_v60 = vrot.slane %v1119_v54, %v4171_v56 }
 0x50c   : > { %v1152_v61 = vcombine.low %v1143_v59, %v1151_v58  ;;  %v1153_v62 = vcombine.high %v1143_v59, %v1151_v58  ;;  %v1134_v63 = vcombine.high %v1126_v57, %v3734_v24  ;;  %v1135_v2 = vcombine.high %v1133_v60, %v3734_v24 }
 0x50d   : > { %v1174_v3 = vshrl.u32 %v1126_v57, 16  ;;  %v1190_v12 = vshrl.u32 %v1133_v60, 16 }
 0x50e   : > { %v1160_v0 = vrot.slane %v1152_v61, %v4171_v56  ;;  %v1167_v1 = vrot.slane %v1153_v62, %v4171_v56  ;;  %v1182_v11 = vshrl.u32 %v1134_v63, 16  ;;  %v1198_v19 = vshrl.u32 %v1135_v2, 16 }
 0x510   : > { %v1168_v4 = vcombine.high %v1160_v0, %v3734_v24  ;;  %v1169_v7 = vcombine.high %v1167_v1, %v3734_v24  ;;  %v1172_v8 = vpack.i.b16 %v1160_v0, %v1126_v57  ;;  %v1175_v10 = vshrl.u32 %v1160_v0, 16 }
 0x511   : > { %v1188_v13 = vpack.i.b16 %v1167_v1, %v1133_v60  ;;  %v1191_v14 = vshrl.u32 %v1167_v1, 16 }
 0x512   : > { %v1176_v46 = vpack.i.b16 %v1175_v10, %v1174_v3  ;;  %v1180_v50 = vpack.i.b16 %v1168_v4, %v1134_v63  ;;  %v1183_v15 = vshrl.u32 %v1168_v4, 16  ;;  %v1196_v18 = vpack.i.b16 %v1169_v7, %v1135_v2 }
 0x513   : > { %v1192_v20 = vpack.i.b16 %v1191_v14, %v1190_v12  ;;  %v1199_v21 = vshrl.u32 %v1169_v7, 16  ;;  %v1202_v22 = vcombine.low %v1172_v8, %v1188_v13 }
 0x514   : > { %v1184_v23 = vpack.i.b16 %v1183_v15, %v1182_v11  ;;  %v1210_v25 = vcombine.low %v1180_v50, %v1196_v18 }
 0x515   : > { %v1200_v26 = vpack.i.b16 %v1199_v21, %v1198_v19  ;;  %v1227_v27 = vcombine.low %v1176_v46, %v1192_v20  ;;  %v1209_v28 = vrot.slane %v1202_v22, %v4167_v52  ;;  %v2039_v19 = vmul.f32 1.442695, %v2035_v37 }
 0x516   : > { %v1217_v29 = vrot.slane %v1210_v25, %v4167_v52  ;;  %v2043_v21 = vmul.f32 1.442695, %v2037_v44  ;;  %v2045_v22 = vmul.f32 1.442695, %v2038_v45  ;;  %v2079_v45 = vld [vmem:[#allocation5] sm:$0xff] }
 0x517   : > { %v1235_v32 = vcombine.low %v1184_v23, %v1200_v26  ;;  %v1234_v40 = vrot.slane %v1227_v27, %v4167_v52  ;;  %v2080_v26 = vld [vmem:[#allocation5 + $0x8] sm:$0xff] }
 0x518   : > { %v1218_v33 = vcombine.low %v1209_v28, %v1217_v29 }
 0x519   : > { %v1242_v41 = vrot.slane %v1235_v32, %v4167_v52 }
 0x51a   : > { %v1225_v47 = vrot.slane %v1218_v33, %v4171_v56 }
 0x51b   : > { %v1243_v48 = vcombine.low %v1234_v40, %v1242_v41  ;;  %v2082_v41 = vld [vmem:[#allocation5 + $0x18] sm:$0xff] }
 0x51c   : > { %v1226_v49 = vcombine.high %v1225_v47, %v3734_v24  ;;  %v1256_v54 = vshrl.u32 %v1225_v47, 16 }
 0x51d   : > { %v1250_v51 = vrot.slane %v1243_v48, %v4171_v56 }
 0x51e   : > { %v1264_v58 = vshrl.u32 %v1226_v49, 16 }
 0x51f   : > { %v1254_v53 = vpack.i.b16 %v1250_v51, %v1225_v47  ;;  %v1257_v55 = vshrl.u32 %v1250_v51, 16  ;;  %v1251_v57 = vcombine.high %v1250_v51, %v3734_v24 }
 0x521   : > { %v2143_v59 = vsel %vm1833_vm3, %v1254_v53, 0  ;;  %v1258_v60 = vpack.i.b16 %v1257_v55, %v1256_v54  ;;  %v1262_v61 = vpack.i.b16 %v1251_v57, %v1226_v49  ;;  %v1265_v62 = vshrl.u32 %v1251_v57, 16 }
 0x522   : > { %3148 = vmatpush3.bf16.msra.mxu1 %v2143_v59 }
 0x523   : > { %v2189_v63 = vsel %vm1833_vm3, %v1258_v60, 0  ;;  %3159 = vmatprep.subr.bf16.mxu1 %v3732_v9  ;;  %v1266_v0 = vpack.i.b16 %v1265_v62, %v1264_v58 }
 0x524   : > { %3154 = vmatpush3.bf16.msra.mxu0 %v2189_v63  ;;  %v2107_v63 = vld [vmem:[#allocation6] sm:$0xff] }
 0x525   : > { %3165 = vmatprep.subr.bf16.mxu0 %v3732_v9 }
 0x57b   : > { %v2050_v1 = vpop.permute.xlu1 %2049  ;;  %v2055_v2 = vpop.permute.xlu0 %2054 }
 0x57c   : > { %v2067_v3 = vsub.f32 %v4227_v5, %v2050_v1  ;;  %v2068_v24 = vsub.f32 %v4229_v6, %v2055_v2 }
 0x57e   : > { %v2071_v4 = vmul.f32 1.442695, %v2067_v3  ;;  %v2073_v7 = vmul.f32 1.442695, %v2068_v24 }
 0x580   : > { %3367 = vpow2.f32 %v2071_v4 }
 0x581   : > { %3369 = vpow2.f32 %v2073_v7 }
 0x583   : > { %v2060_v8 = vpop.permute.xlu1 %2059 }
 0x584   : > { %v2069_v10 = vsub.f32 %v4235_v16, %v2060_v8  ;;  %v2235_v16 = vsel %vm1833_vm3, %v1262_v61, 0 }
 0x586   : > { %v2075_v11 = vmul.f32 1.442695, %v2069_v10 }
 0x587   : > { %v2065_v12 = vpop.permute.xlu1 %2064 }
 0x588   : > { %3371 = vpow2.f32 %v2075_v11  ;;  %v2070_v13 = vsub.f32 %v4237_v17, %v2065_v12  ;;  %v2281_v17 = vsel %vm1833_vm3, %v1266_v0, 0  ;;  %v2108_v0 = vld [vmem:[#allocation6 + $0x8] sm:$0xff] }
 0x58a   : > { %v3368_v14 = vpop.eup %3367  ;;  %v2077_v46 = vmul.f32 1.442695, %v2070_v13 }
 0x58b   : > { %v3370_v50 = vpop.eup %3369  ;;  %v2087_v15 = vsel %vm1295_vm2, %v3368_v14, 0.0  ;;  %v2135_v5 = vpack.c.bf16 %v3368_v14, %v3368_v14 }
 0x58c   : > { %3373 = vpow2.f32 %v2077_v46  ;;  %2088 = vadd.xlane.f32.xlu0 %v2087_v15  ;;  %v2090_v6 = vsel %vm1295_vm2, %v3370_v50, 0.0  ;;  %v2136_v18 = vpack.c.bf16 %v3370_v50, %v3370_v50  ;;  %v2109_v50 = vld [vmem:[#allocation6 + $0x10] sm:$0xff] }
 0x58d   : > { %2091 = vadd.xlane.f32.xlu1 %v2090_v6  ;;  %3150 = vmatmul.mubr.msk.bf16.vlgmr.msra.gmra.mrb[12].mxu1 %vm1295_vm2, %v2135_v5  ;;  %3375 = vpow2.f32 %v2039_v19  ;;  %v2110_v6 = vld [vmem:[#allocation6 + $0x18] sm:$0xff] }
 0x58e   : > { %3156 = vmatmul.mubr.msk.bf16.vlgmr.msra.gmra.mrb[16].mxu0 %vm1295_vm2, %v2136_v18  ;;  %3160 = vmatpush3.bf16.msra.mxu1 %v2235_v16  ;;  %3377 = vpow2.f32 %v2043_v21 }
 0x58f   : > { %3166 = vmatpush3.bf16.msra.mxu0 %v2281_v17  ;;  %3161 = vmatprep.mubr.msk.bf16.mxu1 %vm3733_vm1, %v3732_v9  ;;  %3379 = vpow2.f32 %v2045_v22 }
 0x590   : > { %3167 = vmatprep.mubr.msk.bf16.mxu0 %vm3733_vm1, %v3732_v9  ;;  %3171 = vmatprep.subr.bf16.mxu1 %v3732_v9  ;;  %3381 = vpow2.f32 %v2041_v42 }
 0x591   : > { %3179 = vmatprep.subr.bf16.mxu0 %v3732_v9 }
 0x592   : > { %v3372_v20 = vpop.eup %3371 }
 0x593   : > { %v2093_v30 = vsel %vm1295_vm2, %v3372_v20, 0.0  ;;  %v2137_v34 = vpack.c.bf16 %v3372_v20, %v3372_v20 }
 0x594   : > { %2094 = vadd.xlane.f32.xlu0 %v2093_v30 }
 0x595   : > { %3162 = vmatmul.mubr.msk.bf16.vlgmr.msra.gmra.mrb[16].mxu1 %vm1295_vm2, %v2137_v34 }
 0x596   : > { %v3374_v37 = vpop.eup %3373  ;;  %3175 = vmatprep.mubr.msk.bf16.mxu1 %vm3733_vm1, %v3732_v9 }
 0x597   : > { %v2096_v23 = vsel %vm1295_vm2, %v3374_v37, 0.0  ;;  %v2138_v25 = vpack.c.bf16 %v3374_v37, %v3374_v37  ;;  %v3376_v38 = vpop.eup %3375 }
 0x598   : > { %2097 = vadd.xlane.f32.xlu0 %v2096_v23  ;;  %v3378_v44 = vpop.eup %3377  ;;  %v2083_v27 = vmul.f32 %v3376_v38, %v2079_v45 }
 0x599   : > { %3168 = vmatmul.mubr.msk.bf16.vlgmr.msra.gmra.mrb[20].mxu0 %vm1295_vm2, %v2138_v25  ;;  %v3380_v39 = vpop.eup %3379  ;;  %v2085_v35 = vmul.f32 %v3378_v44, %v2081_v31 }
 0x59a   : > { %3183 = vmatprep.mubr.msk.bf16.mxu0 %vm3733_vm1, %v3732_v9  ;;  %v3382_v43 = vpop.eup %3381  ;;  %v2086_v49 = vmul.f32 %v3380_v39, %v2082_v41 }
 0x59b   : > { %v2084_v28 = vmul.f32 %v3382_v43, %v2080_v26 }
 0x59e   : > { %2113 = vperm.xlu1 %3349, %v3376_v38  }
 0x5a2   : > { %2123 = vperm.xlu1 %3349, %v3378_v44  }
 0x5a6   : > { %2128 = vperm.xlu1 %3349, %v3380_v39  }
 0x5ae   : > { %2118 = vperm.xlu0 %3350, %v3382_v43  }
 0x619   : > { %v2089_v29 = vpop.xlane.xlu0 %2088 }
 0x61a   : > { %v2092_v32 = vpop.xlane.xlu1 %2091  ;;  %v2099_v33 = vadd.f32 %v2089_v29, %v2083_v27 }
 0x61b   : > { %v2100_v40 = vadd.f32 %v2092_v32, %v2084_v28 }
 0x61c   : > { %2103 = vst.msk [vmem:[#allocation5] sm:$0xff] %vm1286_vm4, %v2099_v33 }
 0x61d   : > { %2104 = vst.msk [vmem:[#allocation5 + $0x8] sm:$0xff] %vm1286_vm4, %v2100_v40 }
 0x61e   : > { %v2114_v62 = vpop.permute.xlu1 %2113 }
 0x61f   : > { %v2131_v2 = vmul.f32 %v2114_v62, %v2107_v63 }
 0x621   : > { %v2095_v36 = vpop.xlane.xlu0 %2094 }
 0x622   : > { %v2101_v47 = vadd.f32 %v2095_v36, %v2085_v35  ;;  %v2124_v3 = vpop.permute.xlu1 %2123 }
 0x623   : > { %v2339_v48 = vld [vmem:[#allocation5] sm:$0xff]  ;;  %v2133_v5 = vmul.f32 %v2124_v3, %v2109_v50 }
 0x624   : > { %2105 = vst.msk [vmem:[#allocation5 + $0x10] sm:$0xff] %vm1286_vm4, %v2101_v47  ;;  %v2340_v51 = vld [vmem:[#allocation5 + $0x8] sm:$0xff]  ;;  %3383 = vrcp.f32 %v2339_v48 }
 0x625   : > { %v2098_v53 = vpop.xlane.xlu0 %2097  ;;  %3385 = vrcp.f32 %v2340_v51 }
 0x626   : > { %v2102_v54 = vadd.f32 %v2098_v53, %v2086_v49  ;;  %v2129_v18 = vpop.permute.xlu1 %2128 }
 0x627   : > { %v2134_v21 = vmul.f32 %v2129_v18, %v2110_v6 }
 0x628   : > { %2106 = vst.msk [vmem:[#allocation5 + $0x18] sm:$0xff] %vm1286_vm4, %v2102_v54 }
 0x62b   : > { %v2341_v55 = vld [vmem:[#allocation5 + $0x10] sm:$0xff] }
 0x62c   : > { %3387 = vrcp.f32 %v2341_v55 }
 0x62d   : > { %v2119_v1 = vpop.permute.xlu0 %2118 }
 0x62e   : > { %v3384_v57 = vpop.eup %3383  ;;  %v2132_v24 = vmul.f32 %v2119_v1, %v2108_v0 }
 0x62f   : > { %v3386_v58 = vpop.eup %3385  ;;  %2349 = vperm.xlu0 %3350, %v3384_v57   ;;  %v2342_v59 = vld [vmem:[#allocation5 + $0x18] sm:$0xff]  ;;  %v3357_v57 = vld [vmem:[%s4482_s9] sm:$0xff]  }
 0x630   : > { %2354 = vperm.xlu1 %3349, %v3386_v58   ;;  %3389 = vrcp.f32 %v2342_v59  ;;  %3172 = vmatpush3.bf16.msra.mxu1 %v3357_v57 }
 0x631   : > { %3173 = vmatprep.subr.bf16.mxu1 %v3732_v9 }
 0x636   : > { %v3388_v60 = vpop.eup %3387 }
 0x637   : > { %2359 = vperm.xlu0 %3350, %v3388_v60  }
 0x63a   : > { %v3390_v61 = vpop.eup %3389 }
 0x63b   : > { %2364 = vperm.xlu1 %3349, %v3390_v61  }
 0x660   : > { %v2179_v4 = vpop.f32.mrb[12].mxu1 }
 0x661   : > { %v2323_v7 = vadd.f32 %v2179_v4, %v2131_v2  ;;  %v2225_v8 = vpop.f32.mrb[16].mxu0  ;;  %v3151_v10 = vpop.f32.mrb[13].mxu1  ;;  %v3358_v2 = vld [vmem:[%s4482_s9 + $0x8] sm:$0xff]  }
 0x662   : > { %v2324_v11 = vadd.f32 %v2225_v8, %v2132_v24  ;;  %v3157_v12 = vpop.f32.mrb[17].mxu0  ;;  %v2182_v13 = vpop.f32.mrb[14].mxu1  ;;  %3174 = vmatpush3.bf16.msra.mxu1 %v3358_v2 }
 0x663   : > { %2327 = vst.msk [vmem:[#allocation6] sm:$0xff] %vm1295_vm2, %v2323_v7  ;;  %v2228_v14 = vpop.f32.mrb[18].mxu0  ;;  %v3152_v46 = vpop.f32.mrb[15].mxu1  ;;  %3187 = vmatprep.subr.bf16.mxu1 %v3732_v9 }
 0x664   : > { %2328 = vst.msk [vmem:[#allocation6 + $0x8] sm:$0xff] %vm1295_vm2, %v2324_v11  ;;  %v3158_v15 = vpop.f32.mrb[19].mxu0 }
 0x668   : > { %v2271_v16 = vpop.f32.mrb[16].mxu1 }
 0x669   : > { %v2325_v17 = vadd.f32 %v2271_v16, %v2133_v5  ;;  %v3163_v19 = vpop.f32.mrb[17].mxu1 }
 0x66a   : > { %v2274_v20 = vpop.f32.mrb[18].mxu1  ;;  %v2335_v45 = vld [vmem:[#allocation6] sm:$0xff] }
 0x66b   : > { %2329 = vst.msk [vmem:[#allocation6 + $0x10] sm:$0xff] %vm1295_vm2, %v2325_v17  ;;  %v3164_v30 = vpop.f32.mrb[19].mxu1  ;;  %v2336_v27 = vld [vmem:[#allocation6 + $0x8] sm:$0xff] }
 0x66c   : > { %v2317_v34 = vpop.f32.mrb[20].mxu0  ;;  %v3041_v30 = vld [vmem:[#allocation16] ss:$0 sm:$0xff] }
 0x66d   : > { %v2326_v37 = vadd.f32 %v2317_v34, %v2134_v21  ;;  %v3169_v22 = vpop.f32.mrb[21].mxu0 }
 0x66e   : > { %v2320_v23 = vpop.f32.mrb[22].mxu0 }
 0x66f   : > { %2330 = vst.msk [vmem:[#allocation6 + $0x18] sm:$0xff] %vm1295_vm2, %v2326_v37  ;;  %v3170_v25 = vpop.f32.mrb[23].mxu0 }
 0x670   : > { %v3397_v25 = vld [vmem:[%s4107_s28] sm:$0xff] }
 0x672   : > { %v2337_v44 = vld [vmem:[#allocation6 + $0x10] sm:$0xff] }
 0x676   : > { %v2338_v29 = vld [vmem:[#allocation6 + $0x18] sm:$0xff] }
 0x6ae   : > { %v2350_v38 = vpop.permute.xlu0 %2349 }
 0x6af   : > { %v2355_v42 = vpop.permute.xlu1 %2354  ;;  %v2367_v26 = vmul.f32 %v2350_v38, %v2335_v45 }
 0x6b0   : > { %v2368_v32 = vmul.f32 %v2355_v42, %v2336_v27 }
 0x6b6   : > { %v2360_v39 = vpop.permute.xlu0 %2359 }
 0x6b7   : > { %v2369_v43 = vmul.f32 %v2360_v39, %v2337_v44 }
 0x6b9   : > { %v2371_v33 = vcombine.low %v2367_v26, %v2369_v43  ;;  %v2372_v40 = vcombine.high %v2367_v26, %v2369_v43 }
 0x6ba   : > { %v2365_v28 = vpop.permute.xlu1 %2364 }
 0x6bb   : > { %v2370_v31 = vmul.f32 %v2365_v28, %v2338_v29  ;;  %v2379_v41 = vrot.slane %v2371_v33, %v4167_v52  ;;  %v2386_v47 = vrot.slane %v2372_v40, %v4167_v52  ;;  %v3359_v28 = vld [vmem:[%s4486_s13] sm:$0xff]   ;;  %v3360_v29 = vld [vmem:[%s4486_s13 + $0x8] sm:$0xff]  }
 0x6bc   : > { %3180 = vmatpush3.bf16.msra.mxu0 %v3359_v28 }
 0x6bd   : > { %v2387_v35 = vcombine.low %v2368_v32, %v2370_v31  ;;  %v2388_v36 = vcombine.high %v2368_v32, %v2370_v31  ;;  %3181 = vmatprep.subr.bf16.mxu0 %v3732_v9 }
 0x6bf   : > { %v2395_v48 = vrot.slane %v2387_v35, %v4167_v52  ;;  %v2402_v49 = vrot.slane %v2388_v36, %v4167_v52  ;;  %v3045_v35 = vld [vmem:[#allocation18] ss:$0 sm:$0xff] }
 0x6c0   : > { %3182 = vmatpush3.bf16.msra.mxu0 %v3360_v29 }
 0x6c1   : > { %v2403_v51 = vcombine.low %v2379_v41, %v2395_v48  ;;  %v2404_v53 = vcombine.high %v2379_v41, %v2395_v48  ;;  %v2419_v54 = vcombine.low %v2386_v47, %v2402_v49  ;;  %v2420_v55 = vcombine.high %v2386_v47, %v2402_v49  ;;  %v3046_v41 = vld [vmem:[#allocation19] ss:$0 sm:$0xff] }
 0x6c3   : > { %v2411_v58 = vrot.slane %v2403_v51, %v4171_v56  ;;  %v2418_v59 = vrot.slane %v2404_v53, %v4171_v56  ;;  %v2427_v60 = vrot.slane %v2419_v54, %v4171_v56  ;;  %v2434_v61 = vrot.slane %v2420_v55, %v4171_v56  ;;  %v3361_v51 = vld [vmem:[%s4488_s15] sm:$0xff]   ;;  %v3362_v53 = vld [vmem:[%s4488_s15 + $0x8] sm:$0xff]   ;;  %v3363_v54 = vld [vmem:[%s4488_s15 + $0x10] sm:$0xff]  }
 0x6c4   : > { %v3364_v55 = vld [vmem:[%s4488_s15 + $0x18] sm:$0xff]  }
 0x6c5   : > { %v2439_v62 = vcombine.low %v2411_v58, %v2418_v59  ;;  %v3039_v63 = vcombine.high %v2411_v58, %v2418_v59  ;;  %v2455_v0 = vcombine.low %v2427_v60, %v2434_v61  ;;  %v3040_v1 = vcombine.high %v2427_v60, %v2434_v61 }
 0x6c7   : > { %v2446_v3 = vrot.slane %v2439_v62, %v4167_v52  ;;  %v2454_v24 = vrot.slane %v3039_v63, %v4167_v52  ;;  %v2462_v4 = vrot.slane %v2455_v0, %v4167_v52  ;;  %v2470_v7 = vrot.slane %v3040_v1, %v4167_v52 }
 0x6c9   : > { %v2472_v8 = vcombine.high %v2446_v3, %v2454_v24  ;;  %v2488_v10 = vcombine.high %v2462_v4, %v2470_v7  ;;  %v2471_v11 = vcombine.low %v2446_v3, %v2454_v24  ;;  %v2487_v12 = vcombine.low %v2462_v4, %v2470_v7 }
 0x6cb   : > { %v2486_v13 = vrot.slane %v2472_v8, %v4171_v56  ;;  %v2502_v14 = vrot.slane %v2488_v10, %v4171_v56  ;;  %v2479_v46 = vrot.slane %v2471_v11, %v4171_v56  ;;  %v2495_v50 = vrot.slane %v2487_v12, %v4171_v56 }
 0x6cd   : > { %v2505_v15 = vcombine.low %v2486_v13, %v2502_v14  ;;  %v2504_v5 = vcombine.high %v2479_v46, %v2495_v50  ;;  %v2503_v6 = vcombine.low %v2479_v46, %v2495_v50  ;;  %v2506_v52 = vcombine.high %v2486_v13, %v2502_v14 }
 0x6cf   : > { %2512 = vrot.lane.b32.xlu1 %v2505_v15, %s3741_s29  ;;  %2508 = vrot.lane.b32.xlu0 %v2504_v5, %s3742_s21  ;;  %s4530_s29 = sld [smem:[#allocation39_spill]]  ;;  %s4531_s21 = sld [smem:[#allocation29_spill]] }
 0x6d3   : > { %2516 = vrot.lane.b32.xlu0 %v2506_v52, %s3743_s14 }
 0x6d5   : > { %v3047_v57 = vld [vmem:[%s4530_s29] ss:$0 sm:$0xff]  ;;  %s662_s14 = sand.u32 1, %s4531_s21   ;;  %s3626_s29 = sshll.u32 %s3744_s16, 4  ;;  %s3627_s29 = int_to_ptr.vmem [resolvable:$false] %s3626_s29 }
 0x6d6   : > { %s3000_s26 = sshll.u32 %s662_s14, 3  ;;  %s2802_s27 = scalar_lea.sflag [#allocation9], %s662_s14 }
 0x6d7   : > { %s664_s17 = scalar_lea.vmem [#allocation21], %s3000_s26  ;;  %s3628_s21 = scalar_lea.vmem %s3627_s29, 256 }
 0x6d8   : > { %s2816_s18 = sshll.u32 %s664_s17, 4  ;;  %s4427_s18 = int_to_ptr.vmem [resolvable:$true] %s2816_s18 }
 0x6d9   : > { %s3622_s24 = scalar_lea.vmem %s4427_s18, 128  ;;  %p3629_p2 = scmp.lt.s32.totalorder %s4427_s18, %s3627_s29 }
 0x6da   : > { %p3623_p1 = scmp.ne.s32.totalorder %s4427_s18, %s3622_s24  ;;  %p3630_p3 = scmp.lt.s32.totalorder %s3628_s21, %s3622_s24 }
 0x6dc   : > { %p3624_p10 = pnand %p3623_p1, %p4535_p8  ;;  %p3631_p5 = por %p3630_p3, %p3629_p2 }
 0x6de   : > { %p3625_p11 = pneg %p3624_p10 }
 0x6e0   : > { %p3632_p6 = pnand %p3631_p5, %p3625_p11 }
 0x741   : > { %v2509_v18 = vpop.permute.xlu0 %2508  ;;  %v2513_v16 = vpop.permute.xlu1 %2512 }
 0x742   : > { %v2519_v17 = vsel %vm1295_vm2, %v2503_v6, %v2509_v18 }
 0x743   : > { %v2521_v20 = vsel %vm2520_vm6, %v2519_v17, %v2513_v16 }
 0x745   : > { %v2517_v19 = vpop.permute.xlu0 %2516 }
 0x746   : > { %v2523_v56 = vsel %vm2522_vm7, %v2521_v20, %v2517_v19 }
 0x747   : > { %v2524_v21 = vpack.c.bf16 %v2523_v56, %v2523_v56  ;;  %v3051_v56 = vld [vmem:[%s4532_s22] ss:$0 sm:$0xff] }
 0x749   : > { %3176 = vmatmul.mubr.msk.bf16.vlgmr.msra.gmra.mrb[20].mxu1 %vm676_vm0, %v2524_v21 }
 0x74a   : > { %3195 = vmatprep.mubr.msk.bf16.mxu1 %vm3733_vm1, %v3732_v9  ;;  %3188 = vmatpush3.bf16.msra.mxu1 %v3361_v51 }
 0x74b   : > { %3189 = vmatprep.subr.bf16.mxu1 %v3732_v9 }
 0x74e   : > { %3190 = vmatpush3.bf16.msra.mxu1 %v3362_v53 }
 0x74f   : > { %3191 = vmatprep.subr.bf16.mxu1 %v3732_v9 }
 0x752   : > { %3192 = vmatpush3.bf16.msra.mxu1 %v3363_v54 }
 0x753   : > { %3193 = vmatprep.subr.bf16.mxu1 %v3732_v9 }
 0x756   : > { %3194 = vmatpush3.bf16.msra.mxu1 %v3364_v55 }
 0x81c   : > { %v2585_v34 = vpop.f32.mrb[20].mxu1 }
 0x81d   : > { %v2586_v37 = vadd.f32 %v3041_v30, %v2585_v34  ;;  %v3177_v22 = vpop.f32.mrb[21].mxu1 }
 0x81e   : > { %v2588_v23 = vpop.f32.mrb[22].mxu1 }
 0x81f   : > { %v4384_v38 = vadd.f32 %v3397_v25, %v2586_v37  ;;  %v3178_v42 = vpop.f32.mrb[23].mxu1 }
 0x821   : > { %v2594_v44 = vsel %vm676_vm0, %v4384_v38, 0.0 }
 0x822   : > { %2595 = vadd.xlane.f32.xlu1 %v2594_v44 }
 0x8af   : > { %v2596_v39 = vpop.xlane.xlu1 %2595 }
 0x8b0   : > { %v2597_v43 = vmul.f32 0.03125, %v2596_v39 }
 0x8b2   : > { %v2598_v45 = vsub.f32 %v4384_v38, %v2597_v43 }
 0x8b4   : > { %v2599_v26 = vmul.f32 %v2598_v45, %v2598_v45 }
 0x8b6   : > { %v2600_v27 = vsel %vm676_vm0, %v2599_v26, 0.0 }
 0x8b7   : > { %2601 = vadd.xlane.f32.xlu0 %v2600_v27 }
 0x944   : > { %v2602_v32 = vpop.xlane.xlu0 %2601 }
 0x945   : > { %v2603_v33 = vmul.f32 0.03125, %v2602_v32 }
 0x947   : > { %v2604_v40 = vadd.f32 1e-05, %v2603_v33 }
 0x949   : > { %3391 = vrsqrt.f32 %v2604_v40 }
 0x953   : > { %v3392_v31 = vpop.eup %3391 }
 0x954   : > { %v2606_v36 = vmul.f32 %v3392_v31, %v2598_v45 }
 0x956   : > { %v2613_v47 = vmul.f32 %v3045_v35, %v2606_v36 }
 0x958   : > { %v2620_v48 = vadd.f32 %v3046_v41, %v2613_v47 }
 0x95a   : > { %v2621_v49 = vpack.c.bf16 %v2620_v48, %v2620_v48 }
 0x95c   : > { %3184 = vmatmul.mubr.msk.bf16.vlgmr.msra.gmra.mrb[24].mxu0 %vm676_vm0, %v2621_v49 }
 0xa2f   : > { %v2682_v58 = vpop.f32.mrb[24].mxu0 }
 0xa30   : > { %v2683_v59 = vadd.f32 %v3047_v57, %v2682_v58  ;;  %v3185_v60 = vpop.f32.mrb[25].mxu0 }
 0xa31   : > { %v2685_v61 = vpop.f32.mrb[26].mxu0 }
 0xa32   : > { %v2689_v62 = vmul.f32 0.70710677, %v2683_v59  ;;  %v3186_v63 = vpop.f32.mrb[27].mxu0  ;;  %v2688_v16 = vmul.f32 0.5, %v2683_v59 }
 0xa34   : > { %v2690_v0 = vand.u32 2147483647, %v2689_v62  ;;  %vm2710_vm8 = vcmp.lt.f32.partialorder %v2689_v62, 0.0 }
 0xa36   : > { %v2691_v1 = vmul.f32 0.3275911, %v2690_v0  ;;  %v2704_v9 = vsub.f32 0.0, %v2690_v0 }
 0xa38   : > { %v2692_v2 = vadd.f32 1.0, %v2691_v1  ;;  %v2705_v24 = vmul.f32 %v2704_v9, %v2690_v0 }
 0xa3a   : > { %3393 = vrcp.f32 %v2692_v2  ;;  %v2706_v8 = vmul.f32 1.442695, %v2705_v24 }
 0xa3c   : > { %3395 = vpow2.f32 %v2706_v8 }
 0xa44   : > { %v3394_v3 = vpop.eup %3393 }
 0xa45   : > { %v2695_v4 = vmul.f32 1.0614054, %v3394_v3 }
 0xa46   : > { %v3396_v15 = vpop.eup %3395 }
 0xa47   : > { %v2696_v7 = vadd.f32 -1.4531521, %v2695_v4 }
 0xa49   : > { %v2697_v10 = vmul.f32 %v3394_v3, %v2696_v7 }
 0xa4b   : > { %v2698_v11 = vadd.f32 1.4214138, %v2697_v10 }
 0xa4d   : > { %v2699_v12 = vmul.f32 %v3394_v3, %v2698_v11 }
 0xa4f   : > { %v2700_v13 = vadd.f32 -0.28449672, %v2699_v12 }
 0xa51   : > { %v2701_v14 = vmul.f32 %v3394_v3, %v2700_v13 }
 0xa53   : > { %v2702_v46 = vadd.f32 0.2548296, %v2701_v14 }
 0xa55   : > { %v2703_v50 = vmul.f32 %v3394_v3, %v2702_v46 }
 0xa57   : > { %v2708_v5 = vmul.f32 %v3396_v15, %v2703_v50 }
 0xa59   : > { %v2709_v6 = vsub.f32 1.0, %v2708_v5 }
 0xa5b   : > { %v2711_v52 = vsub.f32 0.0, %v2709_v6 }
 0xa5d   : > { %v2712_v18 = vsel %vm2710_vm8, %v2711_v52, %v2709_v6 }
 0xa5e   : > { %v2713_v17 = vadd.f32 1.0, %v2712_v18 }
 0xa60   : > { %v2714_v19 = vmul.f32 %v2713_v17, %v2688_v16 }
 0xa62   : > { %v2715_v20 = vpack.c.bf16 %v2714_v19, %v2714_v19 }
 0xa64   : > { %3196 = vmatmul.mubr.msk.bf16.vlgmr.msra.gmra.mrb[24].mxu1 %vm2755_vm9, %v2715_v20 }
 0xb37   : > { %v2793_v21 = vpop.f32.mrb[24].mxu1 }
 0xb38   : > { %v2794_v30 = vadd.f32 %v3051_v56, %v2793_v21  ;;  %v3197_v34 = vpop.f32.mrb[25].mxu1 }
 0xb39   : > { %v2796_v37 = vpop.f32.mrb[26].mxu1 }
 0xb3a   : > { %v2799_v22 = vadd.f32 %v2794_v30, %v4384_v38  ;;  %v3198_v23 = vpop.f32.mrb[27].mxu1 }
 0xb3c   : > { %2800 = vst.msk [vmem:[%s664_s17] sm:$0xff] %vm676_vm0, %v2799_v22 }
 0xb3d   : > { %3635 = shalt.err (!%p3632_p6)
}
 0xb3e   : > { %s3636_s14 = scalar_lea.hbm %s4425_s20, 128  ;;  %s3640_s28 = scalar_lea.hbm %s4534_s19, 256 }
 0xb3f   : > { %p3637_p7 = scmp.ne.s32.totalorder %s4425_s20, %s3636_s14  ;;  %p3641_p0 = scmp.lt.u32.totalorder %s4425_s20, %s4534_s19 }
 0xb40   : > { %p3642_p4 = scmp.lt.u32.totalorder %s3640_s28, %s3636_s14  ;;  %p3644_p1 = scmp.lt.u32.totalorder %s3636_s14, %s4425_s20 }
 0xb41   : > { %p3638_p9 = pnand %p3637_p7, %p4535_p8 }
 0xb42   : > { %p3643_p13 = por %p3642_p4, %p3641_p0 }
 0xb43   : > { %p3639_p12 = pneg %p3638_p9 }
 0xb44   : > { %p3645_p10 = por %p3644_p1, %p3643_p13 }
 0xb46   : > { %p3646_p11 = pnand %p3645_p10, %p3639_p12 }
 0xb48   : > { %3649 = shalt.err (!%p3646_p11)
}
 0xb49   : > { %3231 = dma.vmem_to_hbm [thread:$0]  (%p4535_p8), %s4427_s18, 128, %s4425_s20, %s2802_s27  }
 0xb4a PF: > { %s4536_s17 = sld [smem:[#allocation32_spill]]  ;;  %s4537_s23 = sld [smem:[#allocation28_spill]] }
 0xb4b   : > { %s4538_s30 = sld [smem:[#allocation35_spill]] }
 0xb50   : > { %p3278_p2 = scmp.ge.s32.totalorder %s4536_s17, 2  ;;  %s2828_s24 = sand.u32 1, %s4537_s23  }
 0xb51   : > { %p4539_p3 = scmp.ne.s32.totalorder %s4538_s30, 0  ;;  %s2829_s16 = scalar_lea.sflag [#allocation9], %s2828_s24 }
 0xb53   : > { %p3259_p5 = pnand %p3278_p2, %p4539_p3 }
 0xb55   : > { %3695 = dma.done.wait (!%p3259_p5), %s2829_s16, 128  }
 0xb56   : > { %3697 = vsyncadd (!%p3259_p5), %s2829_s16, 4294967168  ;;  %s35_s29 = sadd.s32 1, %s4536_s17   ;;  %s4540_s24 = sld [smem:[#allocation29_spill]] }
 0xb57   : > { %p32_p6 = scmp.ge.s32.totalorder %s35_s29, 4   ;;  %s4541_s25 = sld [smem:[#allocation30_spill]] }
 0xb58   : > { %s4542_s26 = sld [smem:[#allocation36_spill]]  ;;  %s4543_s27 = sld [smem:[#allocation31_spill]] }
 0xb59   : > { %s4544_s28 = sld [smem:[#allocation33_spill]]  ;;  %34 = sbr.rel (!%p32_p6) target bundleno = 15 (0xf), region = 178 }
 0xb60   :  { %2834 = vsyncpa [#allocation8], 1 }
 0xb61   :  { %2836 = vsyncpa [#allocation8 + $0x1], 1 }
 0xb62   :  { %2837 = vsyncpa [#allocation11], 1 }
 0xb63   :  { %2838 = vsyncpa [#allocation14], 1 }
 0xb64   :  { %2839 = vsyncpa [#allocation17], 1 }
 0xb65   :  { %2840 = vsyncpa [#allocation20], 1 }
 0xb66   :  { %2841 = vsyncpa [#allocation9], 1 }
 0xb67   :  { %2843 = vsyncpa [#allocation9 + $0x1], 1 }

</bundles_post_ra>
